<compile_context>
chip_gen: v6e
topology: v6e:2x2x1
jax: 0.10.0
libtpu: 0.0.40
codegen_flags: <defaults>
</compile_context>

<pallas_src>
import functools
import math

import jax
import jax.numpy as jnp
from jax.experimental import pallas as pl
from jax.experimental.pallas import tpu as pltpu


def _mhta_kernel(x_ref, wqkv_ref, bqkv_ref, wo_ref, bo_ref, gamma_ref, beta_ref,
                 *out_refs, n_heads, d_k, eps, return_attention):
    # x_ref     : (b_blk, S, D) f32    one block of batch elements
    # wqkv_ref  : (D, 3D)      bf16    [W_q^T | W_k^T | W_v^T]
    # bqkv_ref  : (1, 3D)      f32     [b_q | b_k | b_v]
    # wo_ref    : (D, D)       bf16    W_o^T
    # bo_ref    : (1, D)       f32
    # gamma/beta: (1, D)       f32     LayerNorm affine params
    # out_refs  : out (b_blk, S, D) [, attn (b_blk, S, S)]
    out_ref = out_refs[0]
    attn_ref = out_refs[1] if return_attention else None

    b_blk, seq, d_model = x_ref.shape
    rows = b_blk * seq
    scale = 1.0 / math.sqrt(d_k)

    x_f32 = x_ref[...].astype(jnp.float32)            # (b_blk, S, D)
    x2d = x_f32.reshape(rows, d_model)                # leading-dims reshape only
    x_bf = x2d.astype(jnp.bfloat16)

    # Fused Q/K/V projection: one MXU matmul, M = b_blk*S, N = 3*D.
    qkv = jnp.dot(x_bf, wqkv_ref[...],
                  preferred_element_type=jnp.float32) + bqkv_ref[...]
    qkv = qkv.reshape(b_blk, seq, 3 * d_model)        # leading-dims reshape only

    wo_bf = wo_ref[...]                               # bf16 resident weight

    out_acc = jnp.zeros((rows, d_model), jnp.float32)
    attn_acc = (jnp.zeros((b_blk, seq, seq), jnp.float32)
                if return_attention else None)

    # Heads statically unrolled; each head is a static lane slice of width d_k.
    for h in range(n_heads):
        lo = h * d_k
        qh = qkv[:, :, lo:lo + d_k].astype(jnp.bfloat16)                # (b,S,dk)
        kh = qkv[:, :, d_model + lo:d_model + lo + d_k].astype(jnp.bfloat16)
        vh = qkv[:, :, 2 * d_model + lo:2 * d_model + lo + d_k].astype(jnp.bfloat16)

        # scores = qh @ kh^T / sqrt(d_k), per sample in the block.
        s = jnp.einsum("bqd,bkd->bqk", qh, kh,
                       preferred_element_type=jnp.float32) * scale      # (b,S,S)
        s = s - jnp.max(s, axis=-1, keepdims=True)
        p = jnp.exp(s)
        denom = jnp.sum(p, axis=-1, keepdims=True)
        p = p * pl.reciprocal(denom, approx=True)     # EUP divide (free slot)

        if return_attention:
            attn_acc = attn_acc + p

        ctx = jnp.einsum("bqk,bkd->bqd", p.astype(jnp.bfloat16), vh,
                         preferred_element_type=jnp.float32)            # (b,S,dk)

        # Per-head output projection: accumulate with a sublane slice of W_o^T
        # (avoids the lane-axis concatenate of per-head contexts).
        ctx2d = ctx.reshape(rows, d_k).astype(jnp.bfloat16)
        out_acc = out_acc + jnp.dot(ctx2d, wo_bf[lo:lo + d_k, :],
                                    preferred_element_type=jnp.float32)

    # Output bias + residual + LayerNorm (biased variance, eps inside rsqrt).
    z = out_acc + bo_ref[...] + x2d                   # (rows, D) f32
    mu = jnp.mean(z, axis=-1, keepdims=True)
    var = jnp.mean((z - mu) * (z - mu), axis=-1, keepdims=True)
    y = (z - mu) * jax.lax.rsqrt(var + eps)
    y = y * gamma_ref[...] + beta_ref[...]

    out_ref[...] = y.reshape(b_blk, seq, d_model).astype(out_ref.dtype)
    if return_attention:
        attn_ref[...] = (attn_acc * (1.0 / n_heads)).astype(attn_ref.dtype)


def multi_head_temporal_attention(x, wq, bq, wk, bk, wv, bv, wo, bo,
                                  gamma, beta, *, n_heads, eps=1e-5,
                                  return_attention=True, block_batch=None):
    """Forward pass of MultiHeadTemporalAttention (mask=None, eval mode).

    x         : (B, S, D) float32
    w* / b*   : nn.Linear weights in PyTorch (out, in) convention, biases (D,)
    gamma/beta: LayerNorm weight/bias, shape (D,)
    Returns (output (B, S, D), attention_weights (B, S, S)) if
    return_attention else just output.
    """
    B, S, D = x.shape
    assert D % n_heads == 0
    d_k = D // n_heads

    # Batch blocking: target ~256 MXU rows per projection matmul
    # (fills v6e/v7x 256-wide MXU; a multiple of v5e's 128x128 too).
    if block_batch is None:
        block_batch = max(1, min(B, 256 // S)) if S < 256 else 1
    b_blk = max(1, min(block_batch, B))
    n_blocks = -(-B // b_blk)
    B_pad = n_blocks * b_blk
    if B_pad != B:
        x = jnp.pad(x, ((0, B_pad - B), (0, 0), (0, 0)))

    # Glue in plain JAX: fused, pre-transposed bf16 weights; 2-D f32 vectors.
    wqkv_t = jnp.concatenate([wq.T, wk.T, wv.T], axis=1).astype(jnp.bfloat16)
    bqkv = jnp.concatenate([bq, bk, bv]).reshape(1, 3 * D).astype(jnp.float32)
    wo_t = wo.T.astype(jnp.bfloat16)
    bo2 = bo.reshape(1, D).astype(jnp.float32)
    g2 = gamma.reshape(1, D).astype(jnp.float32)
    be2 = beta.reshape(1, D).astype(jnp.float32)

    # VMEM budget from actual tile sizes, clamped to the device's capacity.
    f32b, bf16b = 4, 2
    rows = b_blk * S
    io_bytes = 2 * (2 * b_blk * S * D * f32b)               # x + out, dbl-buffered
    if return_attention:
        io_bytes += 2 * (b_blk * S * S * f32b)
    wgt_bytes = 2 * (D * 3 * D * bf16b + D * D * bf16b + 7 * D * f32b)
    live_bytes = rows * (3 * D + 4 * D) * f32b + 4 * b_blk * S * S * f32b
    vmem_limit = int(1.5 * (io_bytes + wgt_bytes + live_bytes)) + (1 << 20)
    try:
        vmem_cap = pltpu.get_tpu_info().vmem_capacity_bytes
    except Exception:
        vmem_cap = 64 << 20
    vmem_limit = max(4 << 20, min(vmem_limit, int(0.9 * vmem_cap)))

    kernel = functools.partial(_mhta_kernel, n_heads=n_heads, d_k=d_k, eps=eps,
                               return_attention=return_attention)

    if return_attention:
        out_shape = (jax.ShapeDtypeStruct((B_pad, S, D), x.dtype),
                     jax.ShapeDtypeStruct((B_pad, S, S), jnp.float32))
        out_specs = [pl.BlockSpec((b_blk, S, D), lambda i: (i, 0, 0)),
                     pl.BlockSpec((b_blk, S, S), lambda i: (i, 0, 0))]
    else:
        out_shape = jax.ShapeDtypeStruct((B_pad, S, D), x.dtype)
        out_specs = pl.BlockSpec((b_blk, S, D), lambda i: (i, 0, 0))

    result = pl.pallas_call(
        kernel,
        out_shape=out_shape,
        grid_spec=pltpu.PrefetchScalarGridSpec(
            num_scalar_prefetch=0,
            grid=(n_blocks,),
            in_specs=[
                pl.BlockSpec((b_blk, S, D), lambda i: (i, 0, 0)),   # x
                pl.BlockSpec((D, 3 * D), lambda i: (0, 0)),         # W_qkv^T
                pl.BlockSpec((1, 3 * D), lambda i: (0, 0)),         # b_qkv
                pl.BlockSpec((D, D), lambda i: (0, 0)),             # W_o^T
                pl.BlockSpec((1, D), lambda i: (0, 0)),             # b_o
                pl.BlockSpec((1, D), lambda i: (0, 0)),             # gamma
                pl.BlockSpec((1, D), lambda i: (0, 0)),             # beta
            ],
            out_specs=out_specs,
        ),
        compiler_params=pltpu.CompilerParams(
            dimension_semantics=("parallel",),
            vmem_limit_bytes=vmem_limit,
        ),
    )(x, wqkv_t, bqkv, wo_t, bo2, g2, be2)

    if return_attention:
        out, attn = result
        return out[:B], attn[:B]
    return result[:B]


def mhta_reference(x, wq, bq, wk, bk, wv, bv, wo, bo, gamma, beta,
                   *, n_heads, eps=1e-5):
    """Pure-JAX reference mirroring the PyTorch module (eval mode, no mask),
    with matmul operands cast to bf16 to match the kernel's MXU precision."""
    B, S, D = x.shape
    d_k = D // n_heads
    bf = jnp.bfloat16
    xb = x.astype(bf)
    q = (jnp.einsum("bsd,ed->bse", xb, wq.astype(bf),
                    preferred_element_type=jnp.float32) + bq)
    k = (jnp.einsum("bsd,ed->bse", xb, wk.astype(bf),
                    preferred_element_type=jnp.float32) + bk)
    v = (jnp.einsum("bsd,ed->bse", xb, wv.astype(bf),
                    preferred_element_type=jnp.float32) + bv)
    q = q.reshape(B, S, n_heads, d_k).transpose(0, 2, 1, 3)
    k = k.reshape(B, S, n_heads, d_k).transpose(0, 2, 1, 3)
    v = v.reshape(B, S, n_heads, d_k).transpose(0, 2, 1, 3)
    scores = jnp.einsum("bhqd,bhkd->bhqk", q.astype(bf), k.astype(bf),
                        preferred_element_type=jnp.float32) / math.sqrt(d_k)
    attn = jax.nn.softmax(scores, axis=-1)
    ctx = jnp.einsum("bhqk,bhkd->bhqd", attn.astype(bf), v.astype(bf),
                     preferred_element_type=jnp.float32)
    ctx = ctx.transpose(0, 2, 1, 3).reshape(B, S, D)
    out = jnp.einsum("bsd,ed->bse", ctx.astype(bf), wo.astype(bf),
                     preferred_element_type=jnp.float32) + bo
    z = out + x
    mu = z.mean(-1, keepdims=True)
    var = ((z - mu) ** 2).mean(-1, keepdims=True)
    y = (z - mu) / jnp.sqrt(var + eps) * gamma + beta
    return y, attn.mean(axis=1)


if __name__ == "__main__":
    # MultiHeadTemporalAttention(d_model=64, n_heads=8): d_k = 8
    B, S, D = 4, 16, 64
    n_heads = 8

    key = jax.random.PRNGKey(0)
    keys = jax.random.split(key, 11)

    x = jax.random.normal(keys[0], (B, S, D), dtype=jnp.float32)
    scale = (1.0 / D) ** 0.5
    wq = jax.random.normal(keys[1], (D, D), dtype=jnp.float32) * scale
    bq = jax.random.normal(keys[2], (D,), dtype=jnp.float32) * 0.1
    wk = jax.random.normal(keys[3], (D, D), dtype=jnp.float32) * scale
    bk = jax.random.normal(keys[4], (D,), dtype=jnp.float32) * 0.1
    wv = jax.random.normal(keys[5], (D, D), dtype=jnp.float32) * scale
    bv = jax.random.normal(keys[6], (D,), dtype=jnp.float32) * 0.1
    wo = jax.random.normal(keys[7], (D, D), dtype=jnp.float32) * scale
    bo = jax.random.normal(keys[8], (D,), dtype=jnp.float32) * 0.1
    gamma = 1.0 + 0.1 * jax.random.normal(keys[9], (D,), dtype=jnp.float32)
    beta = 0.1 * jax.random.normal(keys[10], (D,), dtype=jnp.float32)

    args = (x, wq, bq, wk, bk, wv, bv, wo, bo, gamma, beta)

    out_ref, attn_ref = mhta_reference(*args, n_heads=n_heads)

    # 1) Default call (auto batch blocking, attention weights returned).
    out, attn = multi_head_temporal_attention(*args, n_heads=n_heads)
    out = jax.block_until_ready(out)
    attn = jax.block_until_ready(attn)
    assert out.shape == (B, S, D) and attn.shape == (B, S, S)
    assert jnp.allclose(out, out_ref, atol=1e-2, rtol=1e-2), "output mismatch"
    assert jnp.allclose(attn, attn_ref, atol=1e-2, rtol=1e-2), "attn mismatch"

    # 2) Multi-step grid + batch padding path (block_batch=3 -> B padded 4->6).
    out2, attn2 = multi_head_temporal_attention(*args, n_heads=n_heads,
                                                block_batch=3)
    out2 = jax.block_until_ready(out2)
    attn2 = jax.block_until_ready(attn2)
    assert jnp.allclose(out2, out_ref, atol=1e-2, rtol=1e-2), "blocked output mismatch"
    assert jnp.allclose(attn2, attn_ref, atol=1e-2, rtol=1e-2), "blocked attn mismatch"

    # 3) Output-only variant (no attention-weights writeback).
    out3 = multi_head_temporal_attention(*args, n_heads=n_heads,
                                         return_attention=False)
    out3 = jax.block_until_ready(out3)
    assert jnp.allclose(out3, out_ref, atol=1e-2, rtol=1e-2), "no-attn output mismatch"

    print("KERNEL_OK")
</pallas_src>

<mosaic_0001>
module attributes {stable_mosaic.version = 11 : i64} {
  func.func @_mhta_kernel(%arg0: i32, %arg1: memref<4x16x64xf32, #tpu.memory_space<vmem>>, %arg2: memref<64x192xbf16, #tpu.memory_space<vmem>>, %arg3: memref<1x192xf32, #tpu.memory_space<vmem>>, %arg4: memref<64x64xbf16, #tpu.memory_space<vmem>>, %arg5: memref<1x64xf32, #tpu.memory_space<vmem>>, %arg6: memref<1x64xf32, #tpu.memory_space<vmem>>, %arg7: memref<1x64xf32, #tpu.memory_space<vmem>>, %arg8: memref<4x16x64xf32, #tpu.memory_space<vmem>>, %arg9: memref<4x16x16xf32, #tpu.memory_space<vmem>>) attributes {dimension_semantics = [#tpu.dimension_semantics<parallel>], iteration_bounds = array<i64: 1>, scalar_prefetch = 0 : i64, scratch_operands = 0 : i64, tpu.core_type = #tpu.core_type<tc>, window_params = [{transform_indices = @transform_0, window_bounds = array<i64: 4, 16, 64>}, {pipeline_mode = #tpu.pipeline_mode<synchronous>, transform_indices = @transform_1, window_bounds = array<i64: 64, 192>}, {pipeline_mode = #tpu.pipeline_mode<synchronous>, transform_indices = @transform_2, window_bounds = array<i64: 1, 192>}, {pipeline_mode = #tpu.pipeline_mode<synchronous>, transform_indices = @transform_3, window_bounds = array<i64: 64, 64>}, {pipeline_mode = #tpu.pipeline_mode<synchronous>, transform_indices = @transform_4, window_bounds = array<i64: 1, 64>}, {pipeline_mode = #tpu.pipeline_mode<synchronous>, transform_indices = @transform_5, window_bounds = array<i64: 1, 64>}, {pipeline_mode = #tpu.pipeline_mode<synchronous>, transform_indices = @transform_6, window_bounds = array<i64: 1, 64>}, {transform_indices = @transform_7, window_bounds = array<i64: 4, 16, 64>}, {transform_indices = @transform_8, window_bounds = array<i64: 4, 16, 16>}]} {
    %c0 = arith.constant 0 : index
    %c0_0 = arith.constant 0 : index
    %c0_1 = arith.constant 0 : index
    %0 = vector.load %arg1[%c0, %c0_0, %c0_1] : memref<4x16x64xf32, #tpu.memory_space<vmem>>, vector<4x16x64xf32>
    %1 = vector.shape_cast %0 : vector<4x16x64xf32> to vector<64x64xf32>
    %2 = arith.truncf %1 : vector<64x64xf32> to vector<64x64xbf16>
    %c0_2 = arith.constant 0 : index
    %c0_3 = arith.constant 0 : index
    %3 = vector.load %arg2[%c0_2, %c0_3] : memref<64x192xbf16, #tpu.memory_space<vmem>>, vector<64x192xbf16>
    %cst = arith.constant dense<0.000000e+00> : vector<64x192xf32>
    %4 = tpu.matmul %2, %3, %cst {dimension_numbers = #tpu.dot_dimension_numbers<[1], [0], [0], [1], [0, 0, 1, 1], [], []>} : vector<64x64xbf16>, vector<64x192xbf16>, vector<64x192xf32> -> vector<64x192xf32>
    %c0_4 = arith.constant 0 : index
    %c0_5 = arith.constant 0 : index
    %5 = vector.load %arg3[%c0_4, %c0_5] : memref<1x192xf32, #tpu.memory_space<vmem>>, vector<1x192xf32>
    %6 = vector.broadcast %5 : vector<1x192xf32> to vector<64x192xf32>
    %7 = arith.addf %4, %6 : vector<64x192xf32>
    %8 = vector.shape_cast %7 : vector<64x192xf32> to vector<4x16x192xf32>
    %c0_6 = arith.constant 0 : index
    %c0_7 = arith.constant 0 : index
    %9 = vector.load %arg4[%c0_6, %c0_7] : memref<64x64xbf16, #tpu.memory_space<vmem>>, vector<64x64xbf16>
    %cst_8 = arith.constant 0.000000e+00 : f32
    %10 = vector.broadcast %cst_8 : f32 to vector<64x64xf32>
    %cst_9 = arith.constant 0.000000e+00 : f32
    %11 = vector.broadcast %cst_9 : f32 to vector<4x16x16xf32>
    %12 = vector.extract_strided_slice %8 {offsets = [0, 0, 0], sizes = [4, 16, 8], strides = [1, 1, 1]} : vector<4x16x192xf32> to vector<4x16x8xf32>
    %13 = arith.truncf %12 : vector<4x16x8xf32> to vector<4x16x8xbf16>
    %14 = vector.extract_strided_slice %8 {offsets = [0, 0, 64], sizes = [4, 16, 8], strides = [1, 1, 1]} : vector<4x16x192xf32> to vector<4x16x8xf32>
    %15 = arith.truncf %14 : vector<4x16x8xf32> to vector<4x16x8xbf16>
    %16 = vector.extract_strided_slice %8 {offsets = [0, 0, 128], sizes = [4, 16, 8], strides = [1, 1, 1]} : vector<4x16x192xf32> to vector<4x16x8xf32>
    %17 = arith.truncf %16 : vector<4x16x8xf32> to vector<4x16x8xbf16>
    "tpu.trace_start"() <{level = 10 : i32, message = "bqd,bkd->bqk"}> : () -> ()
    %cst_10 = arith.constant dense<0.000000e+00> : vector<4x16x16xf32>
    %18 = tpu.matmul %13, %15, %cst_10 {dimension_numbers = #tpu.dot_dimension_numbers<[2], [2], [1], [1], [0, 0, 0, 1, 1, 1], [0], [0]>} : vector<4x16x8xbf16>, vector<4x16x8xbf16>, vector<4x16x16xf32> -> vector<4x16x16xf32>
    "tpu.trace_stop"() : () -> ()
    %cst_11 = arith.constant 0.353553385 : f32
    %19 = vector.broadcast %cst_11 : f32 to vector<4x16x16xf32>
    %20 = arith.mulf %18, %19 : vector<4x16x16xf32>
    %cst_12 = arith.constant dense<0xFF800000> : vector<4x16xf32>
    %21 = vector.multi_reduction <maximumf>, %20, %cst_12 [2] : vector<4x16x16xf32> to vector<4x16xf32>
    %22 = vector.shape_cast %21 : vector<4x16xf32> to vector<4x16x1xf32>
    %23 = vector.broadcast %22 : vector<4x16x1xf32> to vector<4x16x16xf32>
    %24 = arith.subf %20, %23 : vector<4x16x16xf32>
    %25 = math.exp %24 : vector<4x16x16xf32>
    %cst_13 = arith.constant dense<0.000000e+00> : vector<4x16xf32>
    %26 = vector.multi_reduction <add>, %25, %cst_13 [2] : vector<4x16x16xf32> to vector<4x16xf32>
    %27 = vector.shape_cast %26 : vector<4x16xf32> to vector<4x16x1xf32>
    %28 = tpu.reciprocal %27 {approx = true} : vector<4x16x1xf32> -> vector<4x16x1xf32>
    %29 = vector.broadcast %28 : vector<4x16x1xf32> to vector<4x16x16xf32>
    %30 = arith.mulf %25, %29 : vector<4x16x16xf32>
    %31 = arith.addf %11, %30 : vector<4x16x16xf32>
    %32 = arith.truncf %30 : vector<4x16x16xf32> to vector<4x16x16xbf16>
    "tpu.trace_start"() <{level = 10 : i32, message = "bqk,bkd->bqd"}> : () -> ()
    %cst_14 = arith.constant dense<0.000000e+00> : vector<4x16x8xf32>
    %33 = tpu.matmul %32, %17, %cst_14 {dimension_numbers = #tpu.dot_dimension_numbers<[2], [1], [1], [2], [0, 0, 0, 1, 1, 2], [0], [0]>} : vector<4x16x16xbf16>, vector<4x16x8xbf16>, vector<4x16x8xf32> -> vector<4x16x8xf32>
    "tpu.trace_stop"() : () -> ()
    %34 = vector.shape_cast %33 : vector<4x16x8xf32> to vector<64x8xf32>
    %35 = arith.truncf %34 : vector<64x8xf32> to vector<64x8xbf16>
    %36 = vector.extract_strided_slice %9 {offsets = [0, 0], sizes = [8, 64], strides = [1, 1]} : vector<64x64xbf16> to vector<8x64xbf16>
    %cst_15 = arith.constant dense<0.000000e+00> : vector<64x64xf32>
    %37 = tpu.matmul %35, %36, %cst_15 {dimension_numbers = #tpu.dot_dimension_numbers<[1], [0], [0], [1], [0, 0, 1, 1], [], []>} : vector<64x8xbf16>, vector<8x64xbf16>, vector<64x64xf32> -> vector<64x64xf32>
    %38 = arith.addf %10, %37 : vector<64x64xf32>
    %39 = vector.extract_strided_slice %8 {offsets = [0, 0, 8], sizes = [4, 16, 8], strides = [1, 1, 1]} : vector<4x16x192xf32> to vector<4x16x8xf32>
    %40 = arith.truncf %39 : vector<4x16x8xf32> to vector<4x16x8xbf16>
    %41 = vector.extract_strided_slice %8 {offsets = [0, 0, 72], sizes = [4, 16, 8], strides = [1, 1, 1]} : vector<4x16x192xf32> to vector<4x16x8xf32>
    %42 = arith.truncf %41 : vector<4x16x8xf32> to vector<4x16x8xbf16>
    %43 = vector.extract_strided_slice %8 {offsets = [0, 0, 136], sizes = [4, 16, 8], strides = [1, 1, 1]} : vector<4x16x192xf32> to vector<4x16x8xf32>
    %44 = arith.truncf %43 : vector<4x16x8xf32> to vector<4x16x8xbf16>
    "tpu.trace_start"() <{level = 10 : i32, message = "bqd,bkd->bqk"}> : () -> ()
    %cst_16 = arith.constant dense<0.000000e+00> : vector<4x16x16xf32>
    %45 = tpu.matmul %40, %42, %cst_16 {dimension_numbers = #tpu.dot_dimension_numbers<[2], [2], [1], [1], [0, 0, 0, 1, 1, 1], [0], [0]>} : vector<4x16x8xbf16>, vector<4x16x8xbf16>, vector<4x16x16xf32> -> vector<4x16x16xf32>
    "tpu.trace_stop"() : () -> ()
    %cst_17 = arith.constant 0.353553385 : f32
    %46 = vector.broadcast %cst_17 : f32 to vector<4x16x16xf32>
    %47 = arith.mulf %45, %46 : vector<4x16x16xf32>
    %cst_18 = arith.constant dense<0xFF800000> : vector<4x16xf32>
    %48 = vector.multi_reduction <maximumf>, %47, %cst_18 [2] : vector<4x16x16xf32> to vector<4x16xf32>
    %49 = vector.shape_cast %48 : vector<4x16xf32> to vector<4x16x1xf32>
    %50 = vector.broadcast %49 : vector<4x16x1xf32> to vector<4x16x16xf32>
    %51 = arith.subf %47, %50 : vector<4x16x16xf32>
    %52 = math.exp %51 : vector<4x16x16xf32>
    %cst_19 = arith.constant dense<0.000000e+00> : vector<4x16xf32>
    %53 = vector.multi_reduction <add>, %52, %cst_19 [2] : vector<4x16x16xf32> to vector<4x16xf32>
    %54 = vector.shape_cast %53 : vector<4x16xf32> to vector<4x16x1xf32>
    %55 = tpu.reciprocal %54 {approx = true} : vector<4x16x1xf32> -> vector<4x16x1xf32>
    %56 = vector.broadcast %55 : vector<4x16x1xf32> to vector<4x16x16xf32>
    %57 = arith.mulf %52, %56 : vector<4x16x16xf32>
    %58 = arith.addf %31, %57 : vector<4x16x16xf32>
    %59 = arith.truncf %57 : vector<4x16x16xf32> to vector<4x16x16xbf16>
    "tpu.trace_start"() <{level = 10 : i32, message = "bqk,bkd->bqd"}> : () -> ()
    %cst_20 = arith.constant dense<0.000000e+00> : vector<4x16x8xf32>
    %60 = tpu.matmul %59, %44, %cst_20 {dimension_numbers = #tpu.dot_dimension_numbers<[2], [1], [1], [2], [0, 0, 0, 1, 1, 2], [0], [0]>} : vector<4x16x16xbf16>, vector<4x16x8xbf16>, vector<4x16x8xf32> -> vector<4x16x8xf32>
    "tpu.trace_stop"() : () -> ()
    %61 = vector.shape_cast %60 : vector<4x16x8xf32> to vector<64x8xf32>
    %62 = arith.truncf %61 : vector<64x8xf32> to vector<64x8xbf16>
    %63 = vector.extract_strided_slice %9 {offsets = [8, 0], sizes = [8, 64], strides = [1, 1]} : vector<64x64xbf16> to vector<8x64xbf16>
    %cst_21 = arith.constant dense<0.000000e+00> : vector<64x64xf32>
    %64 = tpu.matmul %62, %63, %cst_21 {dimension_numbers = #tpu.dot_dimension_numbers<[1], [0], [0], [1], [0, 0, 1, 1], [], []>} : vector<64x8xbf16>, vector<8x64xbf16>, vector<64x64xf32> -> vector<64x64xf32>
    %65 = arith.addf %38, %64 : vector<64x64xf32>
    %66 = vector.extract_strided_slice %8 {offsets = [0, 0, 16], sizes = [4, 16, 8], strides = [1, 1, 1]} : vector<4x16x192xf32> to vector<4x16x8xf32>
    %67 = arith.truncf %66 : vector<4x16x8xf32> to vector<4x16x8xbf16>
    %68 = vector.extract_strided_slice %8 {offsets = [0, 0, 80], sizes = [4, 16, 8], strides = [1, 1, 1]} : vector<4x16x192xf32> to vector<4x16x8xf32>
    %69 = arith.truncf %68 : vector<4x16x8xf32> to vector<4x16x8xbf16>
    %70 = vector.extract_strided_slice %8 {offsets = [0, 0, 144], sizes = [4, 16, 8], strides = [1, 1, 1]} : vector<4x16x192xf32> to vector<4x16x8xf32>
    %71 = arith.truncf %70 : vector<4x16x8xf32> to vector<4x16x8xbf16>
    "tpu.trace_start"() <{level = 10 : i32, message = "bqd,bkd->bqk"}> : () -> ()
    %cst_22 = arith.constant dense<0.000000e+00> : vector<4x16x16xf32>
    %72 = tpu.matmul %67, %69, %cst_22 {dimension_numbers = #tpu.dot_dimension_numbers<[2], [2], [1], [1], [0, 0, 0, 1, 1, 1], [0], [0]>} : vector<4x16x8xbf16>, vector<4x16x8xbf16>, vector<4x16x16xf32> -> vector<4x16x16xf32>
    "tpu.trace_stop"() : () -> ()
    %cst_23 = arith.constant 0.353553385 : f32
    %73 = vector.broadcast %cst_23 : f32 to vector<4x16x16xf32>
    %74 = arith.mulf %72, %73 : vector<4x16x16xf32>
    %cst_24 = arith.constant dense<0xFF800000> : vector<4x16xf32>
    %75 = vector.multi_reduction <maximumf>, %74, %cst_24 [2] : vector<4x16x16xf32> to vector<4x16xf32>
    %76 = vector.shape_cast %75 : vector<4x16xf32> to vector<4x16x1xf32>
    %77 = vector.broadcast %76 : vector<4x16x1xf32> to vector<4x16x16xf32>
    %78 = arith.subf %74, %77 : vector<4x16x16xf32>
    %79 = math.exp %78 : vector<4x16x16xf32>
    %cst_25 = arith.constant dense<0.000000e+00> : vector<4x16xf32>
    %80 = vector.multi_reduction <add>, %79, %cst_25 [2] : vector<4x16x16xf32> to vector<4x16xf32>
    %81 = vector.shape_cast %80 : vector<4x16xf32> to vector<4x16x1xf32>
    %82 = tpu.reciprocal %81 {approx = true} : vector<4x16x1xf32> -> vector<4x16x1xf32>
    %83 = vector.broadcast %82 : vector<4x16x1xf32> to vector<4x16x16xf32>
    %84 = arith.mulf %79, %83 : vector<4x16x16xf32>
    %85 = arith.addf %58, %84 : vector<4x16x16xf32>
    %86 = arith.truncf %84 : vector<4x16x16xf32> to vector<4x16x16xbf16>
    "tpu.trace_start"() <{level = 10 : i32, message = "bqk,bkd->bqd"}> : () -> ()
    %cst_26 = arith.constant dense<0.000000e+00> : vector<4x16x8xf32>
    %87 = tpu.matmul %86, %71, %cst_26 {dimension_numbers = #tpu.dot_dimension_numbers<[2], [1], [1], [2], [0, 0, 0, 1, 1, 2], [0], [0]>} : vector<4x16x16xbf16>, vector<4x16x8xbf16>, vector<4x16x8xf32> -> vector<4x16x8xf32>
    "tpu.trace_stop"() : () -> ()
    %88 = vector.shape_cast %87 : vector<4x16x8xf32> to vector<64x8xf32>
    %89 = arith.truncf %88 : vector<64x8xf32> to vector<64x8xbf16>
    %90 = vector.extract_strided_slice %9 {offsets = [16, 0], sizes = [8, 64], strides = [1, 1]} : vector<64x64xbf16> to vector<8x64xbf16>
    %cst_27 = arith.constant dense<0.000000e+00> : vector<64x64xf32>
    %91 = tpu.matmul %89, %90, %cst_27 {dimension_numbers = #tpu.dot_dimension_numbers<[1], [0], [0], [1], [0, 0, 1, 1], [], []>} : vector<64x8xbf16>, vector<8x64xbf16>, vector<64x64xf32> -> vector<64x64xf32>
    %92 = arith.addf %65, %91 : vector<64x64xf32>
    %93 = vector.extract_strided_slice %8 {offsets = [0, 0, 24], sizes = [4, 16, 8], strides = [1, 1, 1]} : vector<4x16x192xf32> to vector<4x16x8xf32>
    %94 = arith.truncf %93 : vector<4x16x8xf32> to vector<4x16x8xbf16>
    %95 = vector.extract_strided_slice %8 {offsets = [0, 0, 88], sizes = [4, 16, 8], strides = [1, 1, 1]} : vector<4x16x192xf32> to vector<4x16x8xf32>
    %96 = arith.truncf %95 : vector<4x16x8xf32> to vector<4x16x8xbf16>
    %97 = vector.extract_strided_slice %8 {offsets = [0, 0, 152], sizes = [4, 16, 8], strides = [1, 1, 1]} : vector<4x16x192xf32> to vector<4x16x8xf32>
    %98 = arith.truncf %97 : vector<4x16x8xf32> to vector<4x16x8xbf16>
    "tpu.trace_start"() <{level = 10 : i32, message = "bqd,bkd->bqk"}> : () -> ()
    %cst_28 = arith.constant dense<0.000000e+00> : vector<4x16x16xf32>
    %99 = tpu.matmul %94, %96, %cst_28 {dimension_numbers = #tpu.dot_dimension_numbers<[2], [2], [1], [1], [0, 0, 0, 1, 1, 1], [0], [0]>} : vector<4x16x8xbf16>, vector<4x16x8xbf16>, vector<4x16x16xf32> -> vector<4x16x16xf32>
    "tpu.trace_stop"() : () -> ()
    %cst_29 = arith.constant 0.353553385 : f32
    %100 = vector.broadcast %cst_29 : f32 to vector<4x16x16xf32>
    %101 = arith.mulf %99, %100 : vector<4x16x16xf32>
    %cst_30 = arith.constant dense<0xFF800000> : vector<4x16xf32>
    %102 = vector.multi_reduction <maximumf>, %101, %cst_30 [2] : vector<4x16x16xf32> to vector<4x16xf32>
    %103 = vector.shape_cast %102 : vector<4x16xf32> to vector<4x16x1xf32>
    %104 = vector.broadcast %103 : vector<4x16x1xf32> to vector<4x16x16xf32>
    %105 = arith.subf %101, %104 : vector<4x16x16xf32>
    %106 = math.exp %105 : vector<4x16x16xf32>
    %cst_31 = arith.constant dense<0.000000e+00> : vector<4x16xf32>
    %107 = vector.multi_reduction <add>, %106, %cst_31 [2] : vector<4x16x16xf32> to vector<4x16xf32>
    %108 = vector.shape_cast %107 : vector<4x16xf32> to vector<4x16x1xf32>
    %109 = tpu.reciprocal %108 {approx = true} : vector<4x16x1xf32> -> vector<4x16x1xf32>
    %110 = vector.broadcast %109 : vector<4x16x1xf32> to vector<4x16x16xf32>
    %111 = arith.mulf %106, %110 : vector<4x16x16xf32>
    %112 = arith.addf %85, %111 : vector<4x16x16xf32>
    %113 = arith.truncf %111 : vector<4x16x16xf32> to vector<4x16x16xbf16>
    "tpu.trace_start"() <{level = 10 : i32, message = "bqk,bkd->bqd"}> : () -> ()
    %cst_32 = arith.constant dense<0.000000e+00> : vector<4x16x8xf32>
    %114 = tpu.matmul %113, %98, %cst_32 {dimension_numbers = #tpu.dot_dimension_numbers<[2], [1], [1], [2], [0, 0, 0, 1, 1, 2], [0], [0]>} : vector<4x16x16xbf16>, vector<4x16x8xbf16>, vector<4x16x8xf32> -> vector<4x16x8xf32>
    "tpu.trace_stop"() : () -> ()
    %115 = vector.shape_cast %114 : vector<4x16x8xf32> to vector<64x8xf32>
    %116 = arith.truncf %115 : vector<64x8xf32> to vector<64x8xbf16>
    %117 = vector.extract_strided_slice %9 {offsets = [24, 0], sizes = [8, 64], strides = [1, 1]} : vector<64x64xbf16> to vector<8x64xbf16>
    %cst_33 = arith.constant dense<0.000000e+00> : vector<64x64xf32>
    %118 = tpu.matmul %116, %117, %cst_33 {dimension_numbers = #tpu.dot_dimension_numbers<[1], [0], [0], [1], [0, 0, 1, 1], [], []>} : vector<64x8xbf16>, vector<8x64xbf16>, vector<64x64xf32> -> vector<64x64xf32>
    %119 = arith.addf %92, %118 : vector<64x64xf32>
    %120 = vector.extract_strided_slice %8 {offsets = [0, 0, 32], sizes = [4, 16, 8], strides = [1, 1, 1]} : vector<4x16x192xf32> to vector<4x16x8xf32>
    %121 = arith.truncf %120 : vector<4x16x8xf32> to vector<4x16x8xbf16>
    %122 = vector.extract_strided_slice %8 {offsets = [0, 0, 96], sizes = [4, 16, 8], strides = [1, 1, 1]} : vector<4x16x192xf32> to vector<4x16x8xf32>
    %123 = arith.truncf %122 : vector<4x16x8xf32> to vector<4x16x8xbf16>
    %124 = vector.extract_strided_slice %8 {offsets = [0, 0, 160], sizes = [4, 16, 8], strides = [1, 1, 1]} : vector<4x16x192xf32> to vector<4x16x8xf32>
    %125 = arith.truncf %124 : vector<4x16x8xf32> to vector<4x16x8xbf16>
    "tpu.trace_start"() <{level = 10 : i32, message = "bqd,bkd->bqk"}> : () -> ()
    %cst_34 = arith.constant dense<0.000000e+00> : vector<4x16x16xf32>
    %126 = tpu.matmul %121, %123, %cst_34 {dimension_numbers = #tpu.dot_dimension_numbers<[2], [2], [1], [1], [0, 0, 0, 1, 1, 1], [0], [0]>} : vector<4x16x8xbf16>, vector<4x16x8xbf16>, vector<4x16x16xf32> -> vector<4x16x16xf32>
    "tpu.trace_stop"() : () -> ()
    %cst_35 = arith.constant 0.353553385 : f32
    %127 = vector.broadcast %cst_35 : f32 to vector<4x16x16xf32>
    %128 = arith.mulf %126, %127 : vector<4x16x16xf32>
    %cst_36 = arith.constant dense<0xFF800000> : vector<4x16xf32>
    %129 = vector.multi_reduction <maximumf>, %128, %cst_36 [2] : vector<4x16x16xf32> to vector<4x16xf32>
    %130 = vector.shape_cast %129 : vector<4x16xf32> to vector<4x16x1xf32>
    %131 = vector.broadcast %130 : vector<4x16x1xf32> to vector<4x16x16xf32>
    %132 = arith.subf %128, %131 : vector<4x16x16xf32>
    %133 = math.exp %132 : vector<4x16x16xf32>
    %cst_37 = arith.constant dense<0.000000e+00> : vector<4x16xf32>
    %134 = vector.multi_reduction <add>, %133, %cst_37 [2] : vector<4x16x16xf32> to vector<4x16xf32>
    %135 = vector.shape_cast %134 : vector<4x16xf32> to vector<4x16x1xf32>
    %136 = tpu.reciprocal %135 {approx = true} : vector<4x16x1xf32> -> vector<4x16x1xf32>
    %137 = vector.broadcast %136 : vector<4x16x1xf32> to vector<4x16x16xf32>
    %138 = arith.mulf %133, %137 : vector<4x16x16xf32>
    %139 = arith.addf %112, %138 : vector<4x16x16xf32>
    %140 = arith.truncf %138 : vector<4x16x16xf32> to vector<4x16x16xbf16>
    "tpu.trace_start"() <{level = 10 : i32, message = "bqk,bkd->bqd"}> : () -> ()
    %cst_38 = arith.constant dense<0.000000e+00> : vector<4x16x8xf32>
    %141 = tpu.matmul %140, %125, %cst_38 {dimension_numbers = #tpu.dot_dimension_numbers<[2], [1], [1], [2], [0, 0, 0, 1, 1, 2], [0], [0]>} : vector<4x16x16xbf16>, vector<4x16x8xbf16>, vector<4x16x8xf32> -> vector<4x16x8xf32>
    "tpu.trace_stop"() : () -> ()
    %142 = vector.shape_cast %141 : vector<4x16x8xf32> to vector<64x8xf32>
    %143 = arith.truncf %142 : vector<64x8xf32> to vector<64x8xbf16>
    %144 = vector.extract_strided_slice %9 {offsets = [32, 0], sizes = [8, 64], strides = [1, 1]} : vector<64x64xbf16> to vector<8x64xbf16>
    %cst_39 = arith.constant dense<0.000000e+00> : vector<64x64xf32>
    %145 = tpu.matmul %143, %144, %cst_39 {dimension_numbers = #tpu.dot_dimension_numbers<[1], [0], [0], [1], [0, 0, 1, 1], [], []>} : vector<64x8xbf16>, vector<8x64xbf16>, vector<64x64xf32> -> vector<64x64xf32>
    %146 = arith.addf %119, %145 : vector<64x64xf32>
    %147 = vector.extract_strided_slice %8 {offsets = [0, 0, 40], sizes = [4, 16, 8], strides = [1, 1, 1]} : vector<4x16x192xf32> to vector<4x16x8xf32>
    %148 = arith.truncf %147 : vector<4x16x8xf32> to vector<4x16x8xbf16>
    %149 = vector.extract_strided_slice %8 {offsets = [0, 0, 104], sizes = [4, 16, 8], strides = [1, 1, 1]} : vector<4x16x192xf32> to vector<4x16x8xf32>
    %150 = arith.truncf %149 : vector<4x16x8xf32> to vector<4x16x8xbf16>
    %151 = vector.extract_strided_slice %8 {offsets = [0, 0, 168], sizes = [4, 16, 8], strides = [1, 1, 1]} : vector<4x16x192xf32> to vector<4x16x8xf32>
    %152 = arith.truncf %151 : vector<4x16x8xf32> to vector<4x16x8xbf16>
    "tpu.trace_start"() <{level = 10 : i32, message = "bqd,bkd->bqk"}> : () -> ()
    %cst_40 = arith.constant dense<0.000000e+00> : vector<4x16x16xf32>
    %153 = tpu.matmul %148, %150, %cst_40 {dimension_numbers = #tpu.dot_dimension_numbers<[2], [2], [1], [1], [0, 0, 0, 1, 1, 1], [0], [0]>} : vector<4x16x8xbf16>, vector<4x16x8xbf16>, vector<4x16x16xf32> -> vector<4x16x16xf32>
    "tpu.trace_stop"() : () -> ()
    %cst_41 = arith.constant 0.353553385 : f32
    %154 = vector.broadcast %cst_41 : f32 to vector<4x16x16xf32>
    %155 = arith.mulf %153, %154 : vector<4x16x16xf32>
    %cst_42 = arith.constant dense<0xFF800000> : vector<4x16xf32>
    %156 = vector.multi_reduction <maximumf>, %155, %cst_42 [2] : vector<4x16x16xf32> to vector<4x16xf32>
    %157 = vector.shape_cast %156 : vector<4x16xf32> to vector<4x16x1xf32>
    %158 = vector.broadcast %157 : vector<4x16x1xf32> to vector<4x16x16xf32>
    %159 = arith.subf %155, %158 : vector<4x16x16xf32>
    %160 = math.exp %159 : vector<4x16x16xf32>
    %cst_43 = arith.constant dense<0.000000e+00> : vector<4x16xf32>
    %161 = vector.multi_reduction <add>, %160, %cst_43 [2] : vector<4x16x16xf32> to vector<4x16xf32>
    %162 = vector.shape_cast %161 : vector<4x16xf32> to vector<4x16x1xf32>
    %163 = tpu.reciprocal %162 {approx = true} : vector<4x16x1xf32> -> vector<4x16x1xf32>
    %164 = vector.broadcast %163 : vector<4x16x1xf32> to vector<4x16x16xf32>
    %165 = arith.mulf %160, %164 : vector<4x16x16xf32>
    %166 = arith.addf %139, %165 : vector<4x16x16xf32>
    %167 = arith.truncf %165 : vector<4x16x16xf32> to vector<4x16x16xbf16>
    "tpu.trace_start"() <{level = 10 : i32, message = "bqk,bkd->bqd"}> : () -> ()
    %cst_44 = arith.constant dense<0.000000e+00> : vector<4x16x8xf32>
    %168 = tpu.matmul %167, %152, %cst_44 {dimension_numbers = #tpu.dot_dimension_numbers<[2], [1], [1], [2], [0, 0, 0, 1, 1, 2], [0], [0]>} : vector<4x16x16xbf16>, vector<4x16x8xbf16>, vector<4x16x8xf32> -> vector<4x16x8xf32>
    "tpu.trace_stop"() : () -> ()
    %169 = vector.shape_cast %168 : vector<4x16x8xf32> to vector<64x8xf32>
    %170 = arith.truncf %169 : vector<64x8xf32> to vector<64x8xbf16>
    %171 = vector.extract_strided_slice %9 {offsets = [40, 0], sizes = [8, 64], strides = [1, 1]} : vector<64x64xbf16> to vector<8x64xbf16>
    %cst_45 = arith.constant dense<0.000000e+00> : vector<64x64xf32>
    %172 = tpu.matmul %170, %171, %cst_45 {dimension_numbers = #tpu.dot_dimension_numbers<[1], [0], [0], [1], [0, 0, 1, 1], [], []>} : vector<64x8xbf16>, vector<8x64xbf16>, vector<64x64xf32> -> vector<64x64xf32>
    %173 = arith.addf %146, %172 : vector<64x64xf32>
    %174 = vector.extract_strided_slice %8 {offsets = [0, 0, 48], sizes = [4, 16, 8], strides = [1, 1, 1]} : vector<4x16x192xf32> to vector<4x16x8xf32>
    %175 = arith.truncf %174 : vector<4x16x8xf32> to vector<4x16x8xbf16>
    %176 = vector.extract_strided_slice %8 {offsets = [0, 0, 112], sizes = [4, 16, 8], strides = [1, 1, 1]} : vector<4x16x192xf32> to vector<4x16x8xf32>
    %177 = arith.truncf %176 : vector<4x16x8xf32> to vector<4x16x8xbf16>
    %178 = vector.extract_strided_slice %8 {offsets = [0, 0, 176], sizes = [4, 16, 8], strides = [1, 1, 1]} : vector<4x16x192xf32> to vector<4x16x8xf32>
    %179 = arith.truncf %178 : vector<4x16x8xf32> to vector<4x16x8xbf16>
    "tpu.trace_start"() <{level = 10 : i32, message = "bqd,bkd->bqk"}> : () -> ()
    %cst_46 = arith.constant dense<0.000000e+00> : vector<4x16x16xf32>
    %180 = tpu.matmul %175, %177, %cst_46 {dimension_numbers = #tpu.dot_dimension_numbers<[2], [2], [1], [1], [0, 0, 0, 1, 1, 1], [0], [0]>} : vector<4x16x8xbf16>, vector<4x16x8xbf16>, vector<4x16x16xf32> -> vector<4x16x16xf32>
    "tpu.trace_stop"() : () -> ()
    %cst_47 = arith.constant 0.353553385 : f32
    %181 = vector.broadcast %cst_47 : f32 to vector<4x16x16xf32>
    %182 = arith.mulf %180, %181 : vector<4x16x16xf32>
    %cst_48 = arith.constant dense<0xFF800000> : vector<4x16xf32>
    %183 = vector.multi_reduction <maximumf>, %182, %cst_48 [2] : vector<4x16x16xf32> to vector<4x16xf32>
    %184 = vector.shape_cast %183 : vector<4x16xf32> to vector<4x16x1xf32>
    %185 = vector.broadcast %184 : vector<4x16x1xf32> to vector<4x16x16xf32>
    %186 = arith.subf %182, %185 : vector<4x16x16xf32>
    %187 = math.exp %186 : vector<4x16x16xf32>
    %cst_49 = arith.constant dense<0.000000e+00> : vector<4x16xf32>
    %188 = vector.multi_reduction <add>, %187, %cst_49 [2] : vector<4x16x16xf32> to vector<4x16xf32>
    %189 = vector.shape_cast %188 : vector<4x16xf32> to vector<4x16x1xf32>
    %190 = tpu.reciprocal %189 {approx = true} : vector<4x16x1xf32> -> vector<4x16x1xf32>
    %191 = vector.broadcast %190 : vector<4x16x1xf32> to vector<4x16x16xf32>
    %192 = arith.mulf %187, %191 : vector<4x16x16xf32>
    %193 = arith.addf %166, %192 : vector<4x16x16xf32>
    %194 = arith.truncf %192 : vector<4x16x16xf32> to vector<4x16x16xbf16>
    "tpu.trace_start"() <{level = 10 : i32, message = "bqk,bkd->bqd"}> : () -> ()
    %cst_50 = arith.constant dense<0.000000e+00> : vector<4x16x8xf32>
    %195 = tpu.matmul %194, %179, %cst_50 {dimension_numbers = #tpu.dot_dimension_numbers<[2], [1], [1], [2], [0, 0, 0, 1, 1, 2], [0], [0]>} : vector<4x16x16xbf16>, vector<4x16x8xbf16>, vector<4x16x8xf32> -> vector<4x16x8xf32>
    "tpu.trace_stop"() : () -> ()
    %196 = vector.shape_cast %195 : vector<4x16x8xf32> to vector<64x8xf32>
    %197 = arith.truncf %196 : vector<64x8xf32> to vector<64x8xbf16>
    %198 = vector.extract_strided_slice %9 {offsets = [48, 0], sizes = [8, 64], strides = [1, 1]} : vector<64x64xbf16> to vector<8x64xbf16>
    %cst_51 = arith.constant dense<0.000000e+00> : vector<64x64xf32>
    %199 = tpu.matmul %197, %198, %cst_51 {dimension_numbers = #tpu.dot_dimension_numbers<[1], [0], [0], [1], [0, 0, 1, 1], [], []>} : vector<64x8xbf16>, vector<8x64xbf16>, vector<64x64xf32> -> vector<64x64xf32>
    %200 = arith.addf %173, %199 : vector<64x64xf32>
    %201 = vector.extract_strided_slice %8 {offsets = [0, 0, 56], sizes = [4, 16, 8], strides = [1, 1, 1]} : vector<4x16x192xf32> to vector<4x16x8xf32>
    %202 = arith.truncf %201 : vector<4x16x8xf32> to vector<4x16x8xbf16>
    %203 = vector.extract_strided_slice %8 {offsets = [0, 0, 120], sizes = [4, 16, 8], strides = [1, 1, 1]} : vector<4x16x192xf32> to vector<4x16x8xf32>
    %204 = arith.truncf %203 : vector<4x16x8xf32> to vector<4x16x8xbf16>
    %205 = vector.extract_strided_slice %8 {offsets = [0, 0, 184], sizes = [4, 16, 8], strides = [1, 1, 1]} : vector<4x16x192xf32> to vector<4x16x8xf32>
    %206 = arith.truncf %205 : vector<4x16x8xf32> to vector<4x16x8xbf16>
    "tpu.trace_start"() <{level = 10 : i32, message = "bqd,bkd->bqk"}> : () -> ()
    %cst_52 = arith.constant dense<0.000000e+00> : vector<4x16x16xf32>
    %207 = tpu.matmul %202, %204, %cst_52 {dimension_numbers = #tpu.dot_dimension_numbers<[2], [2], [1], [1], [0, 0, 0, 1, 1, 1], [0], [0]>} : vector<4x16x8xbf16>, vector<4x16x8xbf16>, vector<4x16x16xf32> -> vector<4x16x16xf32>
    "tpu.trace_stop"() : () -> ()
    %cst_53 = arith.constant 0.353553385 : f32
    %208 = vector.broadcast %cst_53 : f32 to vector<4x16x16xf32>
    %209 = arith.mulf %207, %208 : vector<4x16x16xf32>
    %cst_54 = arith.constant dense<0xFF800000> : vector<4x16xf32>
    %210 = vector.multi_reduction <maximumf>, %209, %cst_54 [2] : vector<4x16x16xf32> to vector<4x16xf32>
    %211 = vector.shape_cast %210 : vector<4x16xf32> to vector<4x16x1xf32>
    %212 = vector.broadcast %211 : vector<4x16x1xf32> to vector<4x16x16xf32>
    %213 = arith.subf %209, %212 : vector<4x16x16xf32>
    %214 = math.exp %213 : vector<4x16x16xf32>
    %cst_55 = arith.constant dense<0.000000e+00> : vector<4x16xf32>
    %215 = vector.multi_reduction <add>, %214, %cst_55 [2] : vector<4x16x16xf32> to vector<4x16xf32>
    %216 = vector.shape_cast %215 : vector<4x16xf32> to vector<4x16x1xf32>
    %217 = tpu.reciprocal %216 {approx = true} : vector<4x16x1xf32> -> vector<4x16x1xf32>
    %218 = vector.broadcast %217 : vector<4x16x1xf32> to vector<4x16x16xf32>
    %219 = arith.mulf %214, %218 : vector<4x16x16xf32>
    %220 = arith.addf %193, %219 : vector<4x16x16xf32>
    %221 = arith.truncf %219 : vector<4x16x16xf32> to vector<4x16x16xbf16>
    "tpu.trace_start"() <{level = 10 : i32, message = "bqk,bkd->bqd"}> : () -> ()
    %cst_56 = arith.constant dense<0.000000e+00> : vector<4x16x8xf32>
    %222 = tpu.matmul %221, %206, %cst_56 {dimension_numbers = #tpu.dot_dimension_numbers<[2], [1], [1], [2], [0, 0, 0, 1, 1, 2], [0], [0]>} : vector<4x16x16xbf16>, vector<4x16x8xbf16>, vector<4x16x8xf32> -> vector<4x16x8xf32>
    "tpu.trace_stop"() : () -> ()
    %223 = vector.shape_cast %222 : vector<4x16x8xf32> to vector<64x8xf32>
    %224 = arith.truncf %223 : vector<64x8xf32> to vector<64x8xbf16>
    %225 = vector.extract_strided_slice %9 {offsets = [56, 0], sizes = [8, 64], strides = [1, 1]} : vector<64x64xbf16> to vector<8x64xbf16>
    %cst_57 = arith.constant dense<0.000000e+00> : vector<64x64xf32>
    %226 = tpu.matmul %224, %225, %cst_57 {dimension_numbers = #tpu.dot_dimension_numbers<[1], [0], [0], [1], [0, 0, 1, 1], [], []>} : vector<64x8xbf16>, vector<8x64xbf16>, vector<64x64xf32> -> vector<64x64xf32>
    %227 = arith.addf %200, %226 : vector<64x64xf32>
    %c0_58 = arith.constant 0 : index
    %c0_59 = arith.constant 0 : index
    %228 = vector.load %arg5[%c0_58, %c0_59] : memref<1x64xf32, #tpu.memory_space<vmem>>, vector<1x64xf32>
    %229 = vector.broadcast %228 : vector<1x64xf32> to vector<64x64xf32>
    %230 = arith.addf %227, %229 : vector<64x64xf32>
    %231 = arith.addf %230, %1 : vector<64x64xf32>
    %cst_60 = arith.constant dense<0.000000e+00> : vector<64xf32>
    %232 = vector.multi_reduction <add>, %231, %cst_60 [1] : vector<64x64xf32> to vector<64xf32>
    %233 = vector.shape_cast %232 : vector<64xf32> to vector<64x1xf32>
    %cst_61 = arith.constant 6.400000e+01 : f32
    %234 = vector.broadcast %cst_61 : f32 to vector<64x1xf32>
    %235 = arith.divf %233, %234 : vector<64x1xf32>
    %236 = vector.broadcast %235 : vector<64x1xf32> to vector<64x64xf32>
    %237 = arith.subf %231, %236 : vector<64x64xf32>
    %238 = vector.broadcast %235 : vector<64x1xf32> to vector<64x64xf32>
    %239 = arith.subf %231, %238 : vector<64x64xf32>
    %240 = arith.mulf %237, %239 : vector<64x64xf32>
    %cst_62 = arith.constant dense<0.000000e+00> : vector<64xf32>
    %241 = vector.multi_reduction <add>, %240, %cst_62 [1] : vector<64x64xf32> to vector<64xf32>
    %242 = vector.shape_cast %241 : vector<64xf32> to vector<64x1xf32>
    %cst_63 = arith.constant 6.400000e+01 : f32
    %243 = vector.broadcast %cst_63 : f32 to vector<64x1xf32>
    %244 = arith.divf %242, %243 : vector<64x1xf32>
    %245 = vector.broadcast %235 : vector<64x1xf32> to vector<64x64xf32>
    %246 = arith.subf %231, %245 : vector<64x64xf32>
    %cst_64 = arith.constant 9.99999974E-6 : f32
    %247 = vector.broadcast %cst_64 : f32 to vector<64x1xf32>
    %248 = arith.addf %244, %247 : vector<64x1xf32>
    %249 = math.rsqrt %248 : vector<64x1xf32>
    %250 = vector.broadcast %249 : vector<64x1xf32> to vector<64x64xf32>
    %251 = arith.mulf %246, %250 : vector<64x64xf32>
    %c0_65 = arith.constant 0 : index
    %c0_66 = arith.constant 0 : index
    %252 = vector.load %arg6[%c0_65, %c0_66] : memref<1x64xf32, #tpu.memory_space<vmem>>, vector<1x64xf32>
    %253 = vector.broadcast %252 : vector<1x64xf32> to vector<64x64xf32>
    %254 = arith.mulf %251, %253 : vector<64x64xf32>
    %c0_67 = arith.constant 0 : index
    %c0_68 = arith.constant 0 : index
    %255 = vector.load %arg7[%c0_67, %c0_68] : memref<1x64xf32, #tpu.memory_space<vmem>>, vector<1x64xf32>
    %256 = vector.broadcast %255 : vector<1x64xf32> to vector<64x64xf32>
    %257 = arith.addf %254, %256 : vector<64x64xf32>
    %258 = vector.shape_cast %257 : vector<64x64xf32> to vector<4x16x64xf32>
    %c0_69 = arith.constant 0 : index
    %c0_70 = arith.constant 0 : index
    %c0_71 = arith.constant 0 : index
    %259 = vector.load %arg8[%c0_69, %c0_70, %c0_71] : memref<4x16x64xf32, #tpu.memory_space<vmem>>, vector<4x16x64xf32>
    tpu.vector_store %arg8[%c0_69, %c0_70, %c0_71], %258 {strides = array<i32>} : memref<4x16x64xf32, #tpu.memory_space<vmem>>, vector<4x16x64xf32>,
    %cst_72 = arith.constant 1.250000e-01 : f32
    %260 = vector.broadcast %cst_72 : f32 to vector<4x16x16xf32>
    %261 = arith.mulf %220, %260 : vector<4x16x16xf32>
    %c0_73 = arith.constant 0 : index
    %c0_74 = arith.constant 0 : index
    %c0_75 = arith.constant 0 : index
    %262 = vector.load %arg9[%c0_73, %c0_74, %c0_75] : memref<4x16x16xf32, #tpu.memory_space<vmem>>, vector<4x16x16xf32>
    tpu.vector_store %arg9[%c0_73, %c0_74, %c0_75], %261 {strides = array<i32>} : memref<4x16x16xf32, #tpu.memory_space<vmem>>, vector<4x16x16xf32>,
    return
  }
  func.func @transform_0(%arg0: i32) -> (i32, i32, i32) {
    %c0_i32 = arith.constant 0 : i32
    %c0_i32_0 = arith.constant 0 : i32
    %c0_i32_1 = arith.constant 0 : i32
    return %arg0, %c0_i32, %c0_i32_0 : i32, i32, i32
  }
  func.func @transform_1(%arg0: i32) -> (i32, i32) {
    %c0_i32 = arith.constant 0 : i32
    %c0_i32_0 = arith.constant 0 : i32
    %c0_i32_1 = arith.constant 0 : i32
    return %c0_i32, %c0_i32_0 : i32, i32
  }
  func.func @transform_2(%arg0: i32) -> (i32, i32) {
    %c0_i32 = arith.constant 0 : i32
    %c0_i32_0 = arith.constant 0 : i32
    %c0_i32_1 = arith.constant 0 : i32
    return %c0_i32, %c0_i32_0 : i32, i32
  }
  func.func @transform_3(%arg0: i32) -> (i32, i32) {
    %c0_i32 = arith.constant 0 : i32
    %c0_i32_0 = arith.constant 0 : i32
    %c0_i32_1 = arith.constant 0 : i32
    return %c0_i32, %c0_i32_0 : i32, i32
  }
  func.func @transform_4(%arg0: i32) -> (i32, i32) {
    %c0_i32 = arith.constant 0 : i32
    %c0_i32_0 = arith.constant 0 : i32
    %c0_i32_1 = arith.constant 0 : i32
    return %c0_i32, %c0_i32_0 : i32, i32
  }
  func.func @transform_5(%arg0: i32) -> (i32, i32) {
    %c0_i32 = arith.constant 0 : i32
    %c0_i32_0 = arith.constant 0 : i32
    %c0_i32_1 = arith.constant 0 : i32
    return %c0_i32, %c0_i32_0 : i32, i32
  }
  func.func @transform_6(%arg0: i32) -> (i32, i32) {
    %c0_i32 = arith.constant 0 : i32
    %c0_i32_0 = arith.constant 0 : i32
    %c0_i32_1 = arith.constant 0 : i32
    return %c0_i32, %c0_i32_0 : i32, i32
  }
  func.func @transform_7(%arg0: i32) -> (i32, i32, i32) {
    %c0_i32 = arith.constant 0 : i32
    %c0_i32_0 = arith.constant 0 : i32
    %c0_i32_1 = arith.constant 0 : i32
    return %arg0, %c0_i32, %c0_i32_0 : i32, i32, i32
  }
  func.func @transform_8(%arg0: i32) -> (i32, i32, i32) {
    %c0_i32 = arith.constant 0 : i32
    %c0_i32_0 = arith.constant 0 : i32
    %c0_i32_1 = arith.constant 0 : i32
    return %arg0, %c0_i32, %c0_i32_0 : i32, i32, i32
  }
}

</mosaic_0001>

<bundles_post_ra>
// kernel: tpu_custom_call.1
= control target key start
LH: loop header
LB: loop body
LE: loop exit
PB: predicated region body
PF: predicated region fallthrough
CT: control target
= control target key end

     0   :  { %14 = vsyncpa [#allocation3], 0  ;;  %s7648_s0 = inlined_call_operand.hbm [shape: f32[4,16,64], index: 0, kind: input, shape index: {}]   ;;  %s7649_s1 = inlined_call_operand.hbm [shape: bf16[64,192], index: 1, kind: input, shape index: {}]   ;;  %s7650_s2 = inlined_call_operand.vmem [shape: f32[1,192], index: 2, kind: input, shape index: {}]   ;;  %s7651_s3 = inlined_call_operand.hbm [shape: bf16[64,64], index: 3, kind: input, shape index: {}]   ;;  %s7652_s4 = inlined_call_operand.vmem [shape: f32[1,64], index: 4, kind: input, shape index: {}]   ;;  %s7653_s5 = inlined_call_operand.vmem [shape: f32[1,64], index: 5, kind: input, shape index: {}]   ;;  %s7654_s6 = inlined_call_operand.vmem [shape: f32[1,64], index: 6, kind: input, shape index: {}]   ;;  %s7655_s7 = inlined_call_operand.hbm [shape: f32[4,16,64], index: 7, kind: output, shape index: {0}]   ;;  %s7656_s8 = inlined_call_operand.hbm [shape: f32[4,16,16], index: 8, kind: output, shape index: {1}]  }
   0x1   :  { %15 = vsyncpa [#allocation6], 0 }
   0x2   :  { %16 = vsyncpa [#allocation4], 0 }
   0x3   :  { %17 = vsyncpa [#allocation10], 0  ;;  %s6349_s27 = smov [#allocation5]   ;;  %s6350_s29 = smov [#allocation2]  }
   0x4   :  { %s35_s28 = sshll.u32 %s6349_s27, 4  ;;  %s23_s30 = sshll.u32 %s6350_s29, 4  ;;  %s36_s28 = int_to_ptr.vmem [resolvable:$true] %s35_s28  ;;  %s24_s30 = int_to_ptr.vmem [resolvable:$true] %s23_s30 }
   0x5   :  { %s6249_s9 = scalar_lea.vmem %s36_s28, 1024  ;;  %p6254_p1 = scmp.lt.s32.totalorder %s36_s28, %s36_s28 }
   0x6   :  { %p6250_p0 = scmp.ne.s32.totalorder %s36_s28, %s6249_s9  ;;  %p6255_p2 = scmp.lt.s32.totalorder %s6249_s9, %s6249_s9 }
   0x8   :  { %p6256_p3 = por %p6255_p2, %p6254_p1 }
   0xa   :  { %p6257_p4 = pnand %p6256_p3, %p6250_p0 }
   0xc   :  { %6260 = shalt.err (!%p6257_p4)
}
   0xd   :  { %s6351_s10 = smov 128   ;;  %s6352_s11 = smov 8  }
   0xe   :  { %41 = dma.hbm_to_vmem [thread:$0]  %s7649_s1, 1024, %s36_s28, [#allocation6], %s6351_s10, %s6351_s10, %s6352_s11  }
   0xf   :  { %s6269_s14 = scalar_lea.vmem %s24_s30, 1024  ;;  %p6274_p6 = scmp.lt.s32.totalorder %s24_s30, %s24_s30 }
  0x10   :  { %p6270_p5 = scmp.ne.s32.totalorder %s24_s30, %s6269_s14  ;;  %p6275_p7 = scmp.lt.s32.totalorder %s6269_s14, %s6269_s14 }
  0x12   :  { %p6276_p8 = por %p6275_p7, %p6274_p6 }
  0x14   :  { %p6277_p9 = pnand %p6276_p8, %p6270_p5 }
  0x16   :  { %6280 = shalt.err (!%p6277_p9)
}
  0x17   :  { %29 = dma.hbm_to_vmem [thread:$0]  %s7648_s0, 1024, %s24_s30, [#allocation3], %s6351_s10, %s6351_s10, %s6352_s11  }
  0x18   :  { %s6353_s17 = smov [#allocation7]  }
  0x19   :  { %s49_s18 = sshll.u32 %s6353_s17, 4  ;;  %s50_s18 = int_to_ptr.vmem [resolvable:$true] %s49_s18 }
  0x1a   :  { %s6289_s19 = scalar_lea.vmem %s50_s18, 512  ;;  %p6294_p11 = scmp.lt.s32.totalorder %s50_s18, %s50_s18 }
  0x1b   :  { %p6290_p10 = scmp.ne.s32.totalorder %s50_s18, %s6289_s19  ;;  %p6295_p12 = scmp.lt.s32.totalorder %s6289_s19, %s6289_s19 }
  0x1d   :  { %p6296_p13 = por %p6295_p12, %p6294_p11 }
  0x1f   :  { %p6297_p0 = pnand %p6296_p13, %p6290_p10 }
  0x21   :  { %6300 = shalt.err (!%p6297_p0)
}
  0x22   :  { %s6354_s1 = smov 64   ;;  %s6355_s20 = smov 4  }
  0x23   :  { %55 = dma.hbm_to_vmem [thread:$0]  %s7651_s3, 512, %s50_s18, [#allocation6], %s6354_s1, %s6354_s1, %s6355_s20  }
  0x24   :  { %6341 = dma.done.wait [#allocation3], 1024  }
  0x25   :  { %6342 = vsyncadd [#allocation3], 4294966272 }
  0x26   :  { %6343 = dma.done.wait [#allocation6], 1536  }
  0x27   :  { %6344 = vsyncadd [#allocation6], 4294965760  ;;  %v6356_v0 = vmov 0   ;;  %v5949_v1 = vld [vmem:[#allocation5 + $0x34] ss:$8 sps:$4 sm:$0xff]   ;;  %v72_v9 = vld [vmem:[#allocation2] sm:$0xff]  ;;  %v94_v22 = vlaneseq }
  0x28   :  { %189 = vmatprep.mubr.bf16.mxu0 %v6356_v0  ;;  %v5951_v2 = vld [vmem:[#allocation5 + $0x30] ss:$8 sps:$4 sm:$0xff]   ;;  %165 = vmatprep.subr.bf16.mxu0 %v5949_v1  ;;  %v5952_v3 = vld [vmem:[#allocation5 + $0x24] ss:$8 sps:$4 sm:$0xff]   ;;  %v5954_v4 = vld [vmem:[#allocation5 + $0x20] ss:$8 sps:$4 sm:$0xff]  }
  0x29   :  { %166 = vmatpush1.bf16.msra.mxu0 %v5951_v2  ;;  %v5955_v5 = vld [vmem:[#allocation5 + $0x14] ss:$8 sps:$4 sm:$0xff]   ;;  %v5957_v6 = vld [vmem:[#allocation5 + $0x10] ss:$8 sps:$4 sm:$0xff]   ;;  %v5958_v7 = vld [vmem:[#allocation5 + $0x4] ss:$8 sps:$4 sm:$0xff]  }
  0x2a   :  { %167 = vmatprep.subr.bf16.mxu0 %v5952_v3  ;;  %v5960_v8 = vld [vmem:[#allocation5] ss:$8 sps:$4 sm:$0xff]   ;;  %vm144_vm0 = vcmask 523264   ;;  %v74_v12 = vld [vmem:[#allocation2 + $0x10] sm:$0xff]  ;;  %v75_v13 = vld [vmem:[#allocation2 + $0x18] sm:$0xff]  ;;  %v7657_v21 = vmov 0.0  }
  0x2b   :  { %v73_v10 = vld [vmem:[#allocation2 + $0x8] sm:$0xff]  ;;  %v81_v14 = vpack.c.bf16 %v75_v13, %v74_v12  ;;  %v76_v15 = vld [vmem:[#allocation2 + $0x20] sm:$0xff]  ;;  %v78_v18 = vld [vmem:[#allocation2 + $0x30] sm:$0xff]  ;;  %5452 = vmatprep.subr.bf16.mxu1 %v7657_v21  ;;  %v95_v23 = vshrl.u32 %v94_v22, 7  ;;  %vm6358_vm1 = vmmov 0   ;;  %vm249_vm2 = vcmask 64512  }
  0x2c   :  { %v80_v11 = vpack.c.bf16 %v73_v10, %v72_v9  ;;  %v77_v16 = vld [vmem:[#allocation2 + $0x28] sm:$0xff]  ;;  %v79_v19 = vld [vmem:[#allocation2 + $0x38] sm:$0xff]  ;;  %v92_v26 = vld [vmem:[%s7650_s2] sm:$0x3]  ;;  %5454 = vmatprep.mubr.msk.bf16.mxu1 %vm6358_vm1, %v7657_v21  ;;  %vm455_vm3 = vcmask 130048   ;;  %s6359_s2 = smov 56  }
  0x2d   :  { %168 = vmatpush1.bf16.msra.mxu0 %v5954_v4  ;;  %v82_v17 = vpack.c.bf16 %v77_v16, %v76_v15  ;;  %v83_v20 = vpack.c.bf16 %v79_v19, %v78_v18  ;;  %v100_v24 = vsub.s32 1, %v95_v23  ;;  %v96_v25 = vsub.s32 0, %v95_v23  ;;  %s6360_s23 = smov 120   ;;  %s6361_s24 = smov 48  }
  0x2e   :  { %169 = vmatprep.subr.bf16.mxu0 %v5955_v5  ;;  %s6362_s25 = smov 112   ;;  %vm1256_vm4 = vcmask 1043456   ;;  %s6363_s26 = smov 40  }
  0x2f   :  { %v101_v27 = vrot.slane %v92_v26, %v100_v24  ;;  %v97_v29 = vrot.slane %v92_v26, %v96_v25  ;;  %s6364_s27 = smov 104   ;;  %s6365_s28 = smov 32  }
  0x30   :  { %s6366_s29 = smov 96   ;;  %s6367_s30 = smov 24  }
  0x31   :  { %170 = vmatpush1.bf16.msra.mxu0 %v5957_v6  ;;  %s6368_s9 = smov 88   ;;  %s6369_s12 = smov 16  }
  0x32   :  { %171 = vmatprep.subr.bf16.mxu0 %v5958_v7  ;;  %s6370_s13 = smov 80   ;;  %s6371_s14 = smov 72  }
  0x35   :  { %172 = vmatpush1.bf16.msra.mxu0 %v5960_v8 }
  0x36   :  { %5482 = vmatprep.subr.bf16.mxu0 %v7657_v21 }
  0x38   :  { %5181 = vmatmul.mubr.msk.bf16.vlgmr.msra.gmra.mxu0 %vm144_vm0, %v80_v11 }
  0x39   :  { %199 = vmatprep.mubr.bf16.mxu0 %v6356_v0 }
  0x40   :  { %5182 = vmatmul.mubr.msk.bf16.gmra.mxu0 %vm144_vm0, %v81_v14 }
  0x41   :  { %209 = vmatprep.mubr.bf16.mxu0 %v6356_v0 }
  0x48   :  { %5183 = vmatmul.mubr.msk.bf16.gmra.mxu0 %vm144_vm0, %v82_v17 }
  0x49   :  { %219 = vmatprep.mubr.bf16.mxu0 %v6356_v0 }
  0x50   :  { %5184 = vmatmul.mubr.msk.bf16.gmra.mxu0 %vm144_vm0, %v83_v20 }
  0x51   :  { %5484 = vmatprep.mubr.msk.bf16.mxu0 %vm6358_vm1, %v7657_v21 }
  0xf8   :  { %v191_v28 = vpop.f32.mrf.mxu0 }
  0xf9   :  { %v192_v33 = vadd.f32 %v191_v28, %v97_v29 }
  0xfa   :  { %v193_v30 = vpop.f32.mrf.mxu0 }
  0xfb   :  { %v194_v31 = vadd.f32 %v193_v30, %v101_v27 }
  0xfc   :  { %v195_v32 = vpop.f32.mrf.mxu0 }
  0xfd   :  { %v196_v34 = vadd.f32 %v195_v32, %v97_v29 }
  0xfe   :  { %v197_v35 = vpop.f32.mrf.mxu0 }
  0xff   :  { %v6449_v36 = vpack.c.bf16 %v196_v34, %v192_v33  ;;  %v198_v37 = vadd.f32 %v197_v35, %v101_v27 }
 0x100   :  { %v201_v38 = vpop.f32.mrf.mxu0 }
 0x101   :  { %v6451_v39 = vpack.c.bf16 %v198_v37, %v194_v31  ;;  %247 = vrot.lane.b32.xlu0 %v6449_v36, %s6354_s1  ;;  %v202_v42 = vadd.f32 %v201_v38, %v97_v29 }
 0x102   :  { %v203_v40 = vpop.f32.mrf.mxu0 }
 0x103   :  { %v204_v45 = vadd.f32 %v203_v40, %v101_v27 }
 0x104   :  { %v205_v41 = vpop.f32.mrf.mxu0 }
 0x105   :  { %v206_v43 = vadd.f32 %v205_v41, %v97_v29 }
 0x106   :  { %v207_v44 = vpop.f32.mrf.mxu0 }
 0x107   :  { %v6455_v46 = vpack.c.bf16 %v206_v43, %v202_v42  ;;  %v208_v47 = vadd.f32 %v207_v44, %v101_v27 }
 0x108   :  { %v211_v48 = vpop.f32.mrf.mxu0 }
 0x109   :  { %v6457_v49 = vpack.c.bf16 %v208_v47, %v204_v45  ;;  %298 = vrot.lane.b32.xlu0 %v6455_v46, %s6354_s1  ;;  %v212_v53 = vadd.f32 %v211_v48, %v97_v29 }
 0x10a   :  { %v213_v50 = vpop.f32.mrf.mxu0 }
 0x10b   :  { %v214_v51 = vadd.f32 %v213_v50, %v101_v27  ;;  %5483 = vmatpush3.bf16.msra.mxu0 %v6457_v49 }
 0x10c   :  { %v215_v52 = vpop.f32.mrf.mxu0  ;;  %5494 = vmatprep.subr.bf16.mxu0 %v7657_v21 }
 0x10d   :  { %v216_v54 = vadd.f32 %v215_v52, %v97_v29 }
 0x10e   :  { %v217_v55 = vpop.f32.mrf.mxu0 }
 0x10f   :  { %v6463_v56 = vpack.c.bf16 %v216_v54, %v212_v53  ;;  %v218_v57 = vadd.f32 %v217_v55, %v101_v27 }
 0x110   :  { %v221_v58 = vpop.f32.mrf.mxu0 }
 0x111   :  { %v6465_v59 = vpack.c.bf16 %v218_v57, %v214_v51  ;;  %348 = vrot.lane.b32.xlu1 %v6463_v56, %s6354_s1  ;;  %v222_v63 = vadd.f32 %v221_v58, %v97_v29 }
 0x112   :  { %v223_v60 = vpop.f32.mrf.mxu0 }
 0x113   :  { %v224_v61 = vadd.f32 %v223_v60, %v101_v27 }
 0x114   :  { %v225_v62 = vpop.f32.mrf.mxu0 }
 0x115   :  { %v226_v0 = vadd.f32 %v225_v62, %v97_v29 }
 0x116   :  { %v227_v1 = vpop.f32.mrf.mxu0 }
 0x117   :  { %v6469_v2 = vpack.c.bf16 %v226_v0, %v222_v63  ;;  %v228_v3 = vadd.f32 %v227_v1, %v101_v27 }
 0x119   :  { %v6471_v4 = vpack.c.bf16 %v228_v3, %v224_v61  ;;  %398 = vrot.lane.b32.xlu1 %v6469_v2, %s6354_s1 }
 0x173   :  { %v248_v5 = vpop.permute.xlu0 %247 }
 0x174   :  { %v254_v6 = vsel %vm249_vm2, %v248_v5, 0 }
 0x175   :  { %5453 = vmatpush3.bf16.xpose.msra.mxu1 %v254_v6 }
 0x176   :  { %5458 = vmatprep.subr.bf16.mxu1 %v7657_v21 }
 0x17b   :  { %v299_v7 = vpop.permute.xlu0 %298 }
 0x17c   :  { %v304_v8 = vsel %vm249_vm2, %v299_v7, 0  ;;  %5455 = vmatmul.mubr.msk.bf16.vlgmr.msra.gmra.mxu1 %vm249_vm2, %v6449_v36 }
 0x17d   :  { %5459 = vmatpush3.bf16.xpose.msra.mxu1 %v304_v8  ;;  %5460 = vmatprep.mubr.msk.bf16.mxu1 %vm6358_vm1, %v7657_v21 }
 0x17e   :  { %5464 = vmatprep.subr.bf16.mxu1 %v7657_v21 }
 0x183   :  { %v349_v9 = vpop.permute.xlu1 %348 }
 0x184   :  { %v354_v10 = vsel %vm249_vm2, %v349_v9, 0  ;;  %5461 = vmatmul.mubr.msk.bf16.vlgmr.msra.gmra.mxu1 %vm249_vm2, %v6455_v46 }
 0x185   :  { %5465 = vmatpush3.bf16.xpose.msra.mxu1 %v354_v10  ;;  %5466 = vmatprep.mubr.msk.bf16.mxu1 %vm6358_vm1, %v7657_v21 }
 0x186   :  { %5470 = vmatprep.subr.bf16.mxu1 %v7657_v21 }
 0x18b   :  { %v399_v11 = vpop.permute.xlu1 %398 }
 0x18c   :  { %v404_v12 = vsel %vm249_vm2, %v399_v11, 0  ;;  %5467 = vmatmul.mubr.msk.bf16.vlgmr.msra.gmra.mxu1 %vm249_vm2, %v6463_v56 }
 0x18d   :  { %5471 = vmatpush3.bf16.xpose.msra.mxu1 %v404_v12  ;;  %5472 = vmatprep.mubr.msk.bf16.mxu1 %vm6358_vm1, %v7657_v21 }
 0x18e   :  { %5476 = vmatprep.subr.bf16.mxu1 %v7657_v21 }
 0x194   :  { %5473 = vmatmul.mubr.msk.bf16.vlgmr.msra.gmra.mxu1 %vm249_vm2, %v6469_v2 }
 0x195   :  { %5477 = vmatpush3.bf16.msra.mxu1 %v6451_v39  ;;  %5478 = vmatprep.mubr.msk.bf16.mxu1 %vm6358_vm1, %v7657_v21 }
 0x196   :  { %5488 = vmatprep.subr.bf16.mxu1 %v7657_v21 }
 0x23c   :  { %v290_v13 = vpop.f32.mrf.mxu1 }
 0x23d   :  { %v447_v14 = vmul.f32 0.35355338, %v290_v13 }
 0x23e   :  { %v5456_v15 = vpop.f32.mrf.mxu1 }
 0x23f   :  { %v456_v16 = vsel %vm455_vm3, %v447_v14, -inf }
 0x240   :  { %457 = vmax.xlane.f32.xlu0 %v456_v16  ;;  %v293_v17 = vpop.f32.mrf.mxu1 }
 0x241   :  { %v448_v18 = vmul.f32 0.35355338, %v293_v17 }
 0x242   :  { %v5457_v19 = vpop.f32.mrf.mxu1 }
 0x243   :  { %v459_v20 = vsel %vm455_vm3, %v448_v18, -inf }
 0x244   :  { %460 = vmax.xlane.f32.xlu1 %v459_v20  ;;  %v340_v22 = vpop.f32.mrf.mxu1 }
 0x245   :  { %v449_v23 = vmul.f32 0.35355338, %v340_v22 }
 0x246   :  { %v5462_v24 = vpop.f32.mrf.mxu1 }
 0x247   :  { %v462_v25 = vsel %vm455_vm3, %v449_v23, -inf }
 0x248   :  { %463 = vmax.xlane.f32.xlu0 %v462_v25  ;;  %v343_v26 = vpop.f32.mrf.mxu1 }
 0x249   :  { %v450_v27 = vmul.f32 0.35355338, %v343_v26 }
 0x24a   :  { %v5463_v28 = vpop.f32.mrf.mxu1 }
 0x24b   :  { %v465_v29 = vsel %vm455_vm3, %v450_v27, -inf }
 0x24c   :  { %466 = vmax.xlane.f32.xlu0 %v465_v29  ;;  %v390_v30 = vpop.f32.mrf.mxu1 }
 0x24d   :  { %v451_v31 = vmul.f32 0.35355338, %v390_v30 }
 0x24e   :  { %v5468_v32 = vpop.f32.mrf.mxu1 }
 0x24f   :  { %v468_v33 = vsel %vm455_vm3, %v451_v31, -inf }
 0x250   :  { %469 = vmax.xlane.f32.xlu1 %v468_v33  ;;  %v393_v34 = vpop.f32.mrf.mxu1 }
 0x251   :  { %v452_v35 = vmul.f32 0.35355338, %v393_v34 }
 0x252   :  { %v5469_v37 = vpop.f32.mrf.mxu1 }
 0x253   :  { %v471_v38 = vsel %vm455_vm3, %v452_v35, -inf }
 0x254   :  { %472 = vmax.xlane.f32.xlu0 %v471_v38  ;;  %v440_v40 = vpop.f32.mrf.mxu1 }
 0x255   :  { %v453_v41 = vmul.f32 0.35355338, %v440_v40 }
 0x256   :  { %v5474_v42 = vpop.f32.mrf.mxu1 }
 0x257   :  { %v474_v43 = vsel %vm455_vm3, %v453_v41, -inf }
 0x258   :  { %475 = vmax.xlane.f32.xlu1 %v474_v43  ;;  %v443_v44 = vpop.f32.mrf.mxu1 }
 0x259   :  { %v454_v45 = vmul.f32 0.35355338, %v443_v44 }
 0x25a   :  { %v5475_v47 = vpop.f32.mrf.mxu1 }
 0x25b   :  { %v477_v48 = vsel %vm455_vm3, %v454_v45, -inf }
 0x25c   :  { %478 = vmax.xlane.f32.xlu0 %v477_v48 }
 0x269   :  { %738 = vrot.lane.b32.xlu1 %v6449_v36, %s6359_s2 }
 0x2c9   :  { %v458_v50 = vpop.xlane.xlu0 %457 }
 0x2ca   :  { %v480_v51 = vsub.f32 %v447_v14, %v458_v50 }
 0x2cc   :  { %v488_v52 = vmul.f32 1.442695, %v480_v51 }
 0x2cd   :  { %v461_v53 = vpop.xlane.xlu1 %460 }
 0x2ce   :  { %5961 = vpow2.f32 %v488_v52  ;;  %v481_v54 = vsub.f32 %v448_v18, %v461_v53 }
 0x2d0   :  { %v490_v55 = vmul.f32 1.442695, %v481_v54 }
 0x2d1   :  { %v464_v57 = vpop.xlane.xlu0 %463 }
 0x2d2   :  { %5963 = vpow2.f32 %v490_v55  ;;  %v482_v58 = vsub.f32 %v449_v23, %v464_v57 }
 0x2d4   :  { %v492_v60 = vmul.f32 1.442695, %v482_v58 }
 0x2d5   :  { %v467_v61 = vpop.xlane.xlu0 %466 }
 0x2d6   :  { %5965 = vpow2.f32 %v492_v60  ;;  %v483_v62 = vsub.f32 %v450_v27, %v467_v61 }
 0x2d8   :  { %v494_v63 = vmul.f32 1.442695, %v483_v62 }
 0x2d9   :  { %v470_v0 = vpop.xlane.xlu1 %469 }
 0x2da   :  { %5967 = vpow2.f32 %v494_v63  ;;  %v484_v1 = vsub.f32 %v451_v31, %v470_v0 }
 0x2db   :  { %v5962_v3 = vpop.eup %5961 }
 0x2dc   :  { %v496_v5 = vmul.f32 1.442695, %v484_v1  ;;  %v504_v6 = vsel %vm455_vm3, %v5962_v3, 0.0 }
 0x2dd   :  { %505 = vadd.xlane.f32.xlu1 %v504_v6  ;;  %v473_v7 = vpop.xlane.xlu0 %472 }
 0x2de   :  { %5969 = vpow2.f32 %v496_v5  ;;  %v485_v8 = vsub.f32 %v452_v35, %v473_v7 }
 0x2df   :  { %v5964_v9 = vpop.eup %5963 }
 0x2e0   :  { %v498_v10 = vmul.f32 1.442695, %v485_v8  ;;  %v507_v11 = vsel %vm455_vm3, %v5964_v9, 0.0 }
 0x2e1   :  { %v476_v12 = vpop.xlane.xlu1 %475  ;;  %508 = vadd.xlane.f32.xlu0 %v507_v11 }
 0x2e2   :  { %5971 = vpow2.f32 %v498_v10  ;;  %v486_v13 = vsub.f32 %v453_v41, %v476_v12 }
 0x2e3   :  { %v5966_v14 = vpop.eup %5965 }
 0x2e4   :  { %v500_v15 = vmul.f32 1.442695, %v486_v13  ;;  %v510_v16 = vsel %vm455_vm3, %v5966_v14, 0.0 }
 0x2e5   :  { %511 = vadd.xlane.f32.xlu1 %v510_v16  ;;  %v479_v17 = vpop.xlane.xlu0 %478  ;;  %v739_v31 = vpop.permute.xlu1 %738 }
 0x2e6   :  { %5973 = vpow2.f32 %v500_v15  ;;  %v487_v18 = vsub.f32 %v454_v45, %v479_v17  ;;  %v744_v62 = vsel %vm249_vm2, %v739_v31, 0 }
 0x2e7   :  { %v5968_v19 = vpop.eup %5967 }
 0x2e8   :  { %v502_v20 = vmul.f32 1.442695, %v487_v18  ;;  %v513_v22 = vsel %vm455_vm3, %v5968_v19, 0.0 }
 0x2e9   :  { %514 = vadd.xlane.f32.xlu0 %v513_v22 }
 0x2ea   :  { %5975 = vpow2.f32 %v502_v20 }
 0x2eb   :  { %v5970_v23 = vpop.eup %5969 }
 0x2ec   :  { %v516_v24 = vsel %vm455_vm3, %v5970_v23, 0.0 }
 0x2ed   :  { %517 = vadd.xlane.f32.xlu1 %v516_v24 }
 0x2ef   :  { %v5972_v25 = vpop.eup %5971 }
 0x2f0   :  { %v519_v26 = vsel %vm455_vm3, %v5972_v25, 0.0 }
 0x2f1   :  { %520 = vadd.xlane.f32.xlu0 %v519_v26 }
 0x2f3   :  { %v6517_v27 = vpop.eup %5973 }
 0x2f4   :  { %v522_v28 = vsel %vm455_vm3, %v6517_v27, 0.0 }
 0x2f5   :  { %523 = vadd.xlane.f32.xlu1 %v522_v28 }
 0x2f7   :  { %v5976_v29 = vpop.eup %5975 }
 0x2f8   :  { %v525_v30 = vsel %vm455_vm3, %v5976_v29, 0.0 }
 0x2f9   :  { %526 = vadd.xlane.f32.xlu0 %v525_v30 }
 0x306   :  { %736 = vrot.lane.b32.xlu1 %v6449_v36, %s6360_s23 }
 0x30a   :  { %840 = vrot.lane.b32.xlu1 %v6463_v56, %s6359_s2 }
 0x30e   :  { %891 = vrot.lane.b32.xlu1 %v6469_v2, %s6359_s2 }
 0x30f   :  { %789 = vrot.lane.b32.xlu0 %v6455_v46, %s6359_s2 }
 0x312   :  { %889 = vrot.lane.b32.xlu1 %v6469_v2, %s6360_s23 }
 0x313   :  { %787 = vrot.lane.b32.xlu0 %v6455_v46, %s6360_s23 }
 0x317   :  { %838 = vrot.lane.b32.xlu0 %v6463_v56, %s6360_s23 }
 0x366   :  { %v506_v32 = vpop.xlane.xlu1 %505 }
 0x367   :  { %5977 = vrcp.f32 %v506_v32 }
 0x36a   :  { %v509_v33 = vpop.xlane.xlu0 %508 }
 0x36b   :  { %5979 = vrcp.f32 %v509_v33 }
 0x36e   :  { %v512_v34 = vpop.xlane.xlu1 %511 }
 0x36f   :  { %5981 = vrcp.f32 %v512_v34 }
 0x372   :  { %v515_v35 = vpop.xlane.xlu0 %514 }
 0x373   :  { %5983 = vrcp.f32 %v515_v35 }
 0x374   :  { %v5978_v37 = vpop.eup %5977 }
 0x375   :  { %v6536_v41 = vmul.f32 %v5978_v37, %v5962_v3 }
 0x376   :  { %v518_v38 = vpop.xlane.xlu1 %517 }
 0x377   :  { %5985 = vrcp.f32 %v518_v38 }
 0x378   :  { %v5980_v40 = vpop.eup %5979 }
 0x379   :  { %v6538_v42 = vmul.f32 %v5980_v40, %v5964_v9 }
 0x37a   :  { %v521_v43 = vpop.xlane.xlu0 %520 }
 0x37b   :  { %5987 = vrcp.f32 %v521_v43  ;;  %v552_v44 = vpack.c.bf16 %v6538_v42, %v6536_v41 }
 0x37c   :  { %v5982_v45 = vpop.eup %5981 }
 0x37d   :  { %5479 = vmatmul.mubr.msk.bf16.vlgmr.msra.gmra.mxu1 %vm455_vm3, %v552_v44  ;;  %v6547_v50 = vmul.f32 %v5982_v45, %v5966_v14 }
 0x37e   :  { %5489 = vmatpush3.bf16.msra.mxu1 %v6465_v59  ;;  %v524_v47 = vpop.xlane.xlu1 %523  ;;  %5490 = vmatprep.mubr.msk.bf16.mxu1 %vm6358_vm1, %v7657_v21 }
 0x37f   :  { %5500 = vmatprep.subr.bf16.mxu1 %v7657_v21  ;;  %5989 = vrcp.f32 %v524_v47 }
 0x380   :  { %v5984_v48 = vpop.eup %5983 }
 0x381   :  { %v6549_v51 = vmul.f32 %v5984_v48, %v5968_v19 }
 0x382   :  { %v527_v52 = vpop.xlane.xlu0 %526  ;;  %v737_v61 = vpop.permute.xlu1 %736 }
 0x383   :  { %5991 = vrcp.f32 %v527_v52  ;;  %v553_v53 = vpack.c.bf16 %v6549_v51, %v6547_v50 }
 0x384   :  { %v5986_v54 = vpop.eup %5985 }
 0x385   :  { %5485 = vmatmul.mubr.msk.bf16.vlgmr.msra.gmra.mxu0 %vm455_vm3, %v553_v53  ;;  %v6558_v57 = vmul.f32 %v5986_v54, %v5970_v23 }
 0x386   :  { %5495 = vmatpush3.bf16.msra.mxu0 %v6471_v4  ;;  %5496 = vmatprep.mubr.msk.bf16.mxu0 %vm6358_vm1, %v7657_v21  ;;  %v790_v1 = vpop.permute.xlu0 %789  ;;  %v841_v6 = vpop.permute.xlu1 %840 }
 0x387   :  { %5506 = vmatprep.subr.bf16.mxu0 %v7657_v21  ;;  %v846_v8 = vsel %vm249_vm2, %v841_v6, 0  ;;  %v795_v9 = vsel %vm249_vm2, %v790_v1, 0 }
 0x388   :  { %v5988_v55 = vpop.eup %5987 }
 0x389   :  { %v6560_v58 = vmul.f32 %v5988_v55, %v5972_v25 }
 0x38a   :  { %v788_v10 = vpop.permute.xlu0 %787  ;;  %v892_v11 = vpop.permute.xlu1 %891 }
 0x38b   :  { %v554_v60 = vpack.c.bf16 %v6560_v58, %v6558_v57  ;;  %v897_v13 = vsel %vm249_vm2, %v892_v11, 0 }
 0x38c   :  { %v5990_v63 = vpop.eup %5989 }
 0x38d   :  { %5491 = vmatmul.mubr.msk.bf16.vlgmr.msra.gmra.mxu1 %vm455_vm3, %v554_v60  ;;  %v6570_v3 = vmul.f32 %v5990_v63, %v6517_v27 }
 0x38e   :  { %5501 = vmatpush3.bf16.xpose.msra.mxu1 %v744_v62  ;;  %5502 = vmatprep.mubr.msk.bf16.mxu1 %vm6358_vm1, %v7657_v21  ;;  %v839_v12 = vpop.permute.xlu0 %838  ;;  %v890_v14 = vpop.permute.xlu1 %889 }
 0x38f   :  { %5512 = vmatprep.subr.bf16.mxu1 %v7657_v21 }
 0x390   :  { %v5992_v0 = vpop.eup %5991 }
 0x391   :  { %v6572_v5 = vmul.f32 %v5992_v0, %v5976_v29 }
 0x393   :  { %v555_v7 = vpack.c.bf16 %v6572_v5, %v6570_v3 }
 0x395   :  { %5497 = vmatmul.mubr.msk.bf16.vlgmr.msra.gmra.mxu0 %vm455_vm3, %v555_v7  ;;  %5503 = vmatmul.mubr.msk.bf16.vlgmr.msra.gmra.mxu1 %vm249_vm2, %v737_v61 }
 0x396   :  { %5507 = vmatpush3.bf16.xpose.msra.mxu0 %v795_v9  ;;  %5513 = vmatpush3.bf16.xpose.msra.mxu1 %v846_v8 }
 0x397   :  { %5508 = vmatprep.mubr.msk.bf16.mxu0 %vm6358_vm1, %v7657_v21  ;;  %5514 = vmatprep.mubr.msk.bf16.mxu1 %vm6358_vm1, %v7657_v21 }
 0x398   :  { %5518 = vmatprep.subr.bf16.mxu0 %v7657_v21  ;;  %5524 = vmatprep.subr.bf16.mxu1 %v7657_v21 }
 0x39d   :  { %5509 = vmatmul.mubr.msk.bf16.vlgmr.msra.gmra.mxu0 %vm249_vm2, %v788_v10  ;;  %5515 = vmatmul.mubr.msk.bf16.vlgmr.msra.gmra.mxu1 %vm249_vm2, %v839_v12 }
 0x39e   :  { %5519 = vmatpush3.bf16.xpose.msra.mxu0 %v897_v13  ;;  %5520 = vmatprep.mubr.msk.bf16.mxu0 %vm6358_vm1, %v7657_v21 }
 0x39f   :  { %5526 = vmatprep.mubr.msk.bf16.mxu1 %vm6358_vm1, %v7657_v21  ;;  %5530 = vmatprep.subr.bf16.mxu0 %v7657_v21 }
 0x3a5   :  { %5521 = vmatmul.mubr.msk.bf16.vlgmr.msra.gmra.mxu0 %vm249_vm2, %v890_v14 }
 0x3a6   :  { %5532 = vmatprep.mubr.msk.bf16.mxu0 %vm6358_vm1, %v7657_v21 }
 0x43d   :  { %v6597_v15 = vpop.f32.mrf.mxu1 }
 0x43f   :  { %v5480_v16 = vpop.f32.mrf.mxu1 }
 0x441   :  { %v6599_v17 = vpop.f32.mrf.mxu1 }
 0x442   :  { %v732_v18 = vpack.c.bf16 %v6599_v17, %v6597_v15 }
 0x443   :  { %v5481_v19 = vpop.f32.mrf.mxu1 }
 0x445   :  { %v6603_v20 = vpop.f32.mrf.mxu0 }
 0x447   :  { %v5486_v22 = vpop.f32.mrf.mxu0 }
 0x449   :  { %v6605_v23 = vpop.f32.mrf.mxu0 }
 0x44a   :  { %v733_v24 = vpack.c.bf16 %v6605_v23, %v6603_v20 }
 0x44b   :  { %v5487_v25 = vpop.f32.mrf.mxu0 }
 0x44d   :  { %v6609_v26 = vpop.f32.mrf.mxu1 }
 0x44f   :  { %v5492_v27 = vpop.f32.mrf.mxu1 }
 0x451   :  { %v6611_v28 = vpop.f32.mrf.mxu1 }
 0x452   :  { %v734_v29 = vpack.c.bf16 %v6611_v28, %v6609_v26  ;;  %v231_v28 = vld [vmem:[#allocation7 + $0x4] sm:$0xf] }
 0x453   :  { %v5493_v30 = vpop.f32.mrf.mxu1 }
 0x455   :  { %v6615_v31 = vpop.f32.mrf.mxu0  ;;  %v780_v32 = vpop.f32.mrf.mxu1 }
 0x456   :  { %v940_v33 = vmul.f32 0.35355338, %v780_v32 }
 0x457   :  { %v5498_v34 = vpop.f32.mrf.mxu0  ;;  %v5504_v35 = vpop.f32.mrf.mxu1 }
 0x458   :  { %v948_v37 = vsel %vm455_vm3, %v940_v33, -inf }
 0x459   :  { %949 = vmax.xlane.f32.xlu0 %v948_v37  ;;  %v6618_v38 = vpop.f32.mrf.mxu0  ;;  %v783_v40 = vpop.f32.mrf.mxu1 }
 0x45a   :  { %v735_v43 = vpack.c.bf16 %v6618_v38, %v6615_v31  ;;  %v941_v44 = vmul.f32 0.35355338, %v783_v40 }
 0x45b   :  { %v5499_v45 = vpop.f32.mrf.mxu0  ;;  %v5505_v47 = vpop.f32.mrf.mxu1 }
 0x45c   :  { %v951_v48 = vsel %vm455_vm3, %v941_v44, -inf }
 0x45d   :  { %952 = vmax.xlane.f32.xlu1 %v951_v48  ;;  %v831_v52 = vpop.f32.mrf.mxu0  ;;  %v882_v53 = vpop.f32.mrf.mxu1 }
 0x45e   :  { %v942_v54 = vmul.f32 0.35355338, %v831_v52  ;;  %v944_v55 = vmul.f32 0.35355338, %v882_v53 }
 0x45f   :  { %v5510_v60 = vpop.f32.mrf.mxu0  ;;  %v5516_v61 = vpop.f32.mrf.mxu1 }
 0x460   :  { %v954_v62 = vsel %vm455_vm3, %v942_v54, -inf  ;;  %v960_v63 = vsel %vm455_vm3, %v944_v55, -inf }
 0x461   :  { %955 = vmax.xlane.f32.xlu0 %v954_v62  ;;  %v834_v0 = vpop.f32.mrf.mxu0  ;;  %961 = vmax.xlane.f32.xlu1 %v960_v63  ;;  %v885_v1 = vpop.f32.mrf.mxu1 }
 0x462   :  { %v943_v6 = vmul.f32 0.35355338, %v834_v0  ;;  %v945_v9 = vmul.f32 0.35355338, %v885_v1 }
 0x463   :  { %v5511_v7 = vpop.f32.mrf.mxu0  ;;  %v5517_v8 = vpop.f32.mrf.mxu1 }
 0x464   :  { %v957_v10 = vsel %vm455_vm3, %v943_v6, -inf  ;;  %v963_v16 = vsel %vm455_vm3, %v945_v9, -inf }
 0x465   :  { %958 = vmax.xlane.f32.xlu0 %v957_v10  ;;  %v933_v11 = vpop.f32.mrf.mxu0 }
 0x466   :  { %v946_v12 = vmul.f32 0.35355338, %v933_v11 }
 0x467   :  { %v5522_v13 = vpop.f32.mrf.mxu0 }
 0x468   :  { %v966_v14 = vsel %vm455_vm3, %v946_v12, -inf }
 0x469   :  { %v936_v19 = vpop.f32.mrf.mxu0  ;;  %967 = vmax.xlane.f32.xlu1 %v966_v14  ;;  %964 = vmax.xlane.f32.xlu0 %v963_v16 }
 0x46a   :  { %v947_v22 = vmul.f32 0.35355338, %v936_v19 }
 0x46b   :  { %v5523_v25 = vpop.f32.mrf.mxu0 }
 0x46c   :  { %v969_v27 = vsel %vm455_vm3, %v947_v22, -inf }
 0x46d   :  { %970 = vmax.xlane.f32.xlu0 %v969_v27 }
 0x47a   :  { %1049 = vrot.lane.b32.xlu1 %v6451_v39, %s6360_s23 }
 0x4e2   :  { %v950_v30 = vpop.xlane.xlu0 %949 }
 0x4e3   :  { %v972_v32 = vsub.f32 %v940_v33, %v950_v30 }
 0x4e5   :  { %v980_v34 = vmul.f32 1.442695, %v972_v32 }
 0x4e6   :  { %v953_v35 = vpop.xlane.xlu1 %952 }
 0x4e7   :  { %5993 = vpow2.f32 %v980_v34  ;;  %v973_v37 = vsub.f32 %v941_v44, %v953_v35 }
 0x4e9   :  { %v982_v40 = vmul.f32 1.442695, %v973_v37 }
 0x4ea   :  { %v962_v45 = vpop.xlane.xlu1 %961  ;;  %v956_v47 = vpop.xlane.xlu0 %955 }
 0x4eb   :  { %5995 = vpow2.f32 %v982_v40  ;;  %v976_v48 = vsub.f32 %v944_v55, %v962_v45  ;;  %v974_v52 = vsub.f32 %v942_v54, %v956_v47 }
 0x4ed   :  { %v984_v53 = vmul.f32 1.442695, %v974_v52  ;;  %v988_v60 = vmul.f32 1.442695, %v976_v48 }
 0x4ee   :  { %v959_v61 = vpop.xlane.xlu0 %958 }
 0x4ef   :  { %v975_v62 = vsub.f32 %v943_v6, %v959_v61  ;;  %5997 = vpow2.f32 %v984_v53 }
 0x4f0   :  { %5999 = vpow2.f32 %v988_v60 }
 0x4f1   :  { %v986_v63 = vmul.f32 1.442695, %v975_v62 }
 0x4f2   :  { %v968_v0 = vpop.xlane.xlu1 %967  ;;  %v965_v1 = vpop.xlane.xlu0 %964 }
 0x4f3   :  { %6001 = vpow2.f32 %v986_v63  ;;  %v978_v33 = vsub.f32 %v946_v12, %v968_v0  ;;  %v977_v7 = vsub.f32 %v945_v9, %v965_v1 }
 0x4f4   :  { %v6631_v8 = vpop.eup %5993 }
 0x4f5   :  { %v992_v44 = vmul.f32 1.442695, %v978_v33  ;;  %v990_v10 = vmul.f32 1.442695, %v977_v7  ;;  %v996_v55 = vsel %vm455_vm3, %v6631_v8, 0.0 }
 0x4f6   :  { %v1050_v54 = vpop.permute.xlu1 %1049  ;;  %997 = vadd.xlane.f32.xlu1 %v996_v55  ;;  %v971_v11 = vpop.xlane.xlu0 %970 }
 0x4f7   :  { %6003 = vpow2.f32 %v992_v44  ;;  %v979_v6 = vsub.f32 %v947_v22, %v971_v11  ;;  %5525 = vmatpush3.bf16.msra.mxu1 %v1050_v54 }
 0x4f8   :  { %v5996_v13 = vpop.eup %5995  ;;  %6005 = vpow2.f32 %v990_v10  ;;  %5536 = vmatprep.subr.bf16.mxu1 %v7657_v21 }
 0x4f9   :  { %v994_v14 = vmul.f32 1.442695, %v979_v6  ;;  %v999_v9 = vsel %vm455_vm3, %v5996_v13, 0.0 }
 0x4fa   :  { %1000 = vadd.xlane.f32.xlu0 %v999_v9 }
 0x4fb   :  { %6007 = vpow2.f32 %v994_v14  ;;  %v230_v14 = vld [vmem:[#allocation7] sm:$0xf] }
 0x4fc   :  { %v5998_v12 = vpop.eup %5997 }
 0x4fd   :  { %v1002_v16 = vsel %vm455_vm3, %v5998_v12, 0.0  ;;  %v6638_v19 = vpop.eup %5999 }
 0x4fe   :  { %1003 = vadd.xlane.f32.xlu1 %v1002_v16  ;;  %v1008_v22 = vsel %vm455_vm3, %v6638_v19, 0.0 }
 0x500   :  { %v6002_v25 = vpop.eup %6001 }
 0x501   :  { %v1005_v27 = vsel %vm455_vm3, %v6002_v25, 0.0 }
 0x502   :  { %1006 = vadd.xlane.f32.xlu0 %v1005_v27  ;;  %1009 = vadd.xlane.f32.xlu1 %v1008_v22 }
 0x504   :  { %v6643_v30 = vpop.eup %6003 }
 0x505   :  { %v6645_v32 = vpop.eup %6005  ;;  %v1014_v34 = vsel %vm455_vm3, %v6643_v30, 0.0 }
 0x506   :  { %v1011_v35 = vsel %vm455_vm3, %v6645_v32, 0.0  ;;  %1015 = vadd.xlane.f32.xlu1 %v1014_v34 }
 0x507   :  { %1012 = vadd.xlane.f32.xlu0 %v1011_v35 }
 0x508   :  { %v6651_v37 = vpop.eup %6007 }
 0x509   :  { %v1017_v40 = vsel %vm455_vm3, %v6651_v37, 0.0 }
 0x50b   :  { %1018 = vadd.xlane.f32.xlu0 %v1017_v40 }
 0x517   :  { %1145 = vrot.lane.b32.xlu1 %v6465_v59, %s6360_s23 }
 0x51b   :  { %1193 = vrot.lane.b32.xlu1 %v6471_v4, %s6360_s23 }
 0x51f   :  { %1458 = vrot.lane.b32.xlu1 %v6455_v46, %s6361_s24 }
 0x521   :  { %1097 = vrot.lane.b32.xlu0 %v6457_v49, %s6360_s23 }
 0x523   :  { %1509 = vrot.lane.b32.xlu1 %v6463_v56, %s6361_s24 }
 0x525   :  { %1407 = vrot.lane.b32.xlu0 %v6449_v36, %s6361_s24 }
 0x527   :  { %1560 = vrot.lane.b32.xlu1 %v6469_v2, %s6361_s24 }
 0x529   :  { %1405 = vrot.lane.b32.xlu0 %v6449_v36, %s6362_s25 }
 0x52b   :  { %1558 = vrot.lane.b32.xlu1 %v6469_v2, %s6362_s25 }
 0x52d   :  { %1456 = vrot.lane.b32.xlu0 %v6455_v46, %s6362_s25 }
 0x531   :  { %1507 = vrot.lane.b32.xlu0 %v6463_v56, %s6362_s25 }
 0x57f   :  { %v998_v45 = vpop.xlane.xlu1 %997 }
 0x580   :  { %6009 = vrcp.f32 %v998_v45 }
 0x583   :  { %v1001_v47 = vpop.xlane.xlu0 %1000 }
 0x584   :  { %6011 = vrcp.f32 %v1001_v47 }
 0x587   :  { %v1004_v48 = vpop.xlane.xlu1 %1003 }
 0x588   :  { %6013 = vrcp.f32 %v1004_v48 }
 0x58b   :  { %v1007_v52 = vpop.xlane.xlu0 %1006  ;;  %v1010_v53 = vpop.xlane.xlu1 %1009 }
 0x58c   :  { %6015 = vrcp.f32 %v1007_v52 }
 0x58d   :  { %v6010_v60 = vpop.eup %6009  ;;  %6017 = vrcp.f32 %v1010_v53 }
 0x58e   :  { %v6674_v0 = vmul.f32 %v6010_v60, %v6631_v8 }
 0x58f   :  { %v1016_v61 = vpop.xlane.xlu1 %1015 }
 0x590   :  { %v1013_v62 = vpop.xlane.xlu0 %1012 }
 0x591   :  { %v6012_v63 = vpop.eup %6011  ;;  %6019 = vrcp.f32 %v1013_v62 }
 0x592   :  { %v6676_v1 = vmul.f32 %v6012_v63, %v5996_v13  ;;  %6021 = vrcp.f32 %v1016_v61 }
 0x593   :  { %v1146_v44 = vpop.permute.xlu1 %1145 }
 0x594   :  { %v1019_v33 = vpop.xlane.xlu0 %1018  ;;  %v1044_v7 = vpack.c.bf16 %v6676_v1, %v6674_v0 }
 0x595   :  { %6023 = vrcp.f32 %v1019_v33  ;;  %v6014_v10 = vpop.eup %6013 }
 0x596   :  { %5527 = vmatmul.mubr.msk.bf16.vlgmr.msra.gmra.mxu1 %vm455_vm3, %v1044_v7  ;;  %v6684_v8 = vmul.f32 %v6014_v10, %v5998_v12 }
 0x597   :  { %5537 = vmatpush3.bf16.msra.mxu1 %v1146_v44  ;;  %5538 = vmatprep.mubr.msk.bf16.mxu1 %vm6358_vm1, %v7657_v21  ;;  %v1194_v9 = vpop.permute.xlu1 %1193 }
 0x598   :  { %v1098_v55 = vpop.permute.xlu0 %1097  ;;  %5916 = vmatprep.subr.msk.bf16.mxu1 %vm1256_vm4, %v231_v28 }
 0x599   :  { %v6016_v54 = vpop.eup %6015  ;;  %5531 = vmatpush3.bf16.msra.mxu0 %v1098_v55 }
 0x59a   :  { %5542 = vmatprep.subr.bf16.mxu0 %v7657_v21  ;;  %v6686_v11 = vmul.f32 %v6016_v54, %v6002_v25  ;;  %v6018_v13 = vpop.eup %6017 }
 0x59b   :  { %v6694_v12 = vmul.f32 %v6018_v13, %v6638_v19 }
 0x59c   :  { %v1045_v6 = vpack.c.bf16 %v6686_v11, %v6684_v8  ;;  %v1408_v15 = vpop.permute.xlu0 %1407 }
 0x59d   :  { %v1413_v63 = vsel %vm249_vm2, %v1408_v15, 0 }
 0x59e   :  { %5533 = vmatmul.mubr.msk.bf16.vlgmr.msra.gmra.mxu0 %vm455_vm3, %v1045_v6  ;;  %v6020_v16 = vpop.eup %6019 }
 0x59f   :  { %5543 = vmatpush3.bf16.msra.mxu0 %v1194_v9  ;;  %5544 = vmatprep.mubr.msk.bf16.mxu0 %vm6358_vm1, %v7657_v21  ;;  %v6022_v27 = vpop.eup %6021  ;;  %v6697_v25 = vmul.f32 %v6020_v16, %v6645_v32  ;;  %v1338_v32 = vsel %vm1256_vm4, %v230_v14, 0 }
 0x5a0   :  { %5917 = vmatprep.subr.msk.bf16.mxu0 %vm1256_vm4, %v230_v14  ;;  %v6703_v35 = vmul.f32 %v6022_v27, %v6643_v30  ;;  %v1459_v30 = vpop.permute.xlu1 %1458 }
 0x5a1   :  { %v1046_v34 = vpack.c.bf16 %v6697_v25, %v6694_v12 }
 0x5a2   :  { %v6024_v22 = vpop.eup %6023 }
 0x5a3   :  { %v6706_v40 = vmul.f32 %v6024_v22, %v6651_v37  ;;  %5539 = vmatmul.mubr.msk.bf16.vlgmr.msra.gmra.mxu1 %vm455_vm3, %v1046_v34  ;;  %v1464_v37 = vsel %vm249_vm2, %v1459_v30, 0 }
 0x5a4   :  { %v1510_v17 = vpop.permute.xlu1 %1509 }
 0x5a5   :  { %v1047_v19 = vpack.c.bf16 %v6706_v40, %v6703_v35  ;;  %v1515_v34 = vsel %vm249_vm2, %v1510_v17, 0 }
 0x5a7   :  { %5545 = vmatmul.mubr.msk.bf16.vlgmr.msra.gmra.mxu0 %vm455_vm3, %v1047_v19 }
 0x5a8   :  { %5560 = vmatprep.mubr.msk.bf16.mxu0 %vm249_vm2, %v732_v18  ;;  %5559 = vmatpush3.bf16.msra.mxu0 %v1338_v32  ;;  %v1406_v18 = vpop.permute.xlu0 %1405  ;;  %v1561_v20 = vpop.permute.xlu1 %1560 }
 0x5a9   :  { %5574 = vmatprep.subr.bf16.mxu0 %v7657_v21 }
 0x5ac   :  { %v1457_v23 = vpop.permute.xlu0 %1456  ;;  %v1559_v26 = vpop.permute.xlu1 %1558 }
 0x5af   :  { %5561 = vmatmul.mubr.msk.bf16.vlgmr.msra.gmra.mxu0 %vm249_vm2, %v733_v24  ;;  %v1566_v24 = vsel %vm249_vm2, %v1561_v20, 0 }
 0x5b0   :  { %5575 = vmatpush3.bf16.xpose.msra.mxu0 %v1464_v37  ;;  %5564 = vmatprep.mubr.msk.bf16.mxu0 %vm249_vm2, %v734_v29  ;;  %v1258_v29 = vsel %vm1256_vm4, %v231_v28, 0  ;;  %v1508_v37 = vpop.permute.xlu0 %1507 }
 0x5b1   :  { %5586 = vmatprep.subr.bf16.mxu0 %v7657_v21  ;;  %5549 = vmatpush3.bf16.msra.mxu1 %v1258_v29 }
 0x5b2   :  { %5568 = vmatprep.subr.bf16.mxu1 %v7657_v21 }
 0x5b7   :  { %5565 = vmatmul.mubr.msk.bf16.gmra.mxu0 %vm249_vm2, %v735_v43 }
 0x5b8   :  { %5576 = vmatprep.mubr.msk.bf16.mxu0 %vm6358_vm1, %v7657_v21 }
 0x5bf   :  { %5577 = vmatmul.mubr.msk.bf16.vlgmr.msra.gmra.mxu0 %vm249_vm2, %v1457_v23 }
 0x5c0   :  { %5587 = vmatpush3.bf16.xpose.msra.mxu0 %v1566_v24  ;;  %5588 = vmatprep.mubr.msk.bf16.mxu0 %vm6358_vm1, %v7657_v21 }
 0x5c1   :  { %5598 = vmatprep.subr.bf16.mxu0 %v7657_v21 }
 0x5c7   :  { %5589 = vmatmul.mubr.msk.bf16.vlgmr.msra.gmra.mxu0 %vm249_vm2, %v1559_v26 }
 0x5c8   :  { %5600 = vmatprep.mubr.msk.bf16.mxu0 %vm6358_vm1, %v7657_v21 }
 0x656   :  { %v1089_v31 = vpop.f32.mrf.mxu1 }
 0x658   :  { %v5528_v38 = vpop.f32.mrf.mxu1 }
 0x65a   :  { %v1092_v43 = vpop.f32.mrf.mxu1 }
 0x65b   :  { %v1240_v45 = vpack.c.bf16 %v1092_v43, %v1089_v31 }
 0x65c   :  { %v5529_v47 = vpop.f32.mrf.mxu1 }
 0x65d   :  { %5550 = vmatprep.mubr.msk.bf16.mxu1 %vm249_vm2, %v1240_v45 }
 0x65e   :  { %v1137_v48 = vpop.f32.mrf.mxu0 }
 0x660   :  { %v5534_v52 = vpop.f32.mrf.mxu0 }
 0x662   :  { %v1140_v53 = vpop.f32.mrf.mxu0 }
 0x663   :  { %v1241_v60 = vpack.c.bf16 %v1140_v53, %v1137_v48  ;;  %v1185_v61 = vpop.f32.mrf.mxu1 }
 0x664   :  { %v5535_v62 = vpop.f32.mrf.mxu0 }
 0x665   :  { %5551 = vmatmul.mubr.msk.bf16.vlgmr.msra.gmra.mxu1 %vm249_vm2, %v1241_v60  ;;  %v5540_v33 = vpop.f32.mrf.mxu1 }
 0x666   :  { %5569 = vmatpush3.bf16.xpose.msra.mxu1 %v1413_v63 }
 0x667   :  { %v1233_v7 = vpop.f32.mrf.mxu0  ;;  %5580 = vmatprep.subr.bf16.mxu1 %v7657_v21  ;;  %v1188_v44 = vpop.f32.mrf.mxu1 }
 0x668   :  { %v1242_v10 = vpack.c.bf16 %v1188_v44, %v1185_v61 }
 0x669   :  { %v5546_v55 = vpop.f32.mrf.mxu0  ;;  %v5541_v54 = vpop.f32.mrf.mxu1 }
 0x66a   :  { %5554 = vmatprep.mubr.msk.bf16.mxu1 %vm249_vm2, %v1242_v10 }
 0x66b   :  { %v1236_v6 = vpop.f32.mrf.mxu0 }
 0x66c   :  { %v1243_v13 = vpack.c.bf16 %v1236_v6, %v1233_v7 }
 0x66d   :  { %v5547_v14 = vpop.f32.mrf.mxu0 }
 0x66e   :  { %5555 = vmatmul.mubr.msk.bf16.gmra.mxu1 %vm249_vm2, %v1243_v13 }
 0x66f   :  { %v6751_v9 = vpop.f32.mrf.mxu0  ;;  %5570 = vmatprep.mubr.msk.bf16.mxu1 %vm6358_vm1, %v7657_v21 }
 0x671   :  { %v6755_v16 = vpop.f32.mrf.mxu0 }
 0x673   :  { %v6757_v27 = vpop.f32.mrf.mxu0 }
 0x675   :  { %v6759_v22 = vpop.f32.mrf.mxu0 }
 0x676   :  { %7659 = vst [vmem:[#allocation15_spill] sm:$0xff] %v6759_v22  ;;  %5571 = vmatmul.mubr.msk.bf16.vlgmr.msra.gmra.mxu1 %vm249_vm2, %v1406_v18 }
 0x677   :  { %5581 = vmatpush3.bf16.xpose.msra.mxu1 %v1515_v34  ;;  %v6763_v19 = vpop.f32.mrf.mxu0  ;;  %5582 = vmatprep.mubr.msk.bf16.mxu1 %vm6358_vm1, %v7657_v21 }
 0x678   :  { %5592 = vmatprep.subr.bf16.mxu1 %v7657_v21 }
 0x679   :  { %v6768_v32 = vpop.f32.mrf.mxu0 }
 0x67b   :  { %v6770_v30 = vpop.f32.mrf.mxu0 }
 0x67d   :  { %v6772_v15 = vpop.f32.mrf.mxu0 }
 0x67e   :  { %7660 = vst [vmem:[#allocation16_spill] sm:$0xff] %v6772_v15  ;;  %5583 = vmatmul.mubr.msk.bf16.vlgmr.msra.gmra.mxu1 %vm249_vm2, %v1508_v37 }
 0x67f   :  { %v1500_v17 = vpop.f32.mrf.mxu0  ;;  %5594 = vmatprep.mubr.msk.bf16.mxu1 %vm6358_vm1, %v7657_v21 }
 0x680   :  { %v1611_v63 = vmul.f32 0.35355338, %v1500_v17 }
 0x681   :  { %v5578_v18 = vpop.f32.mrf.mxu0 }
 0x682   :  { %v1623_v6 = vsel %vm455_vm3, %v1611_v63, -inf }
 0x683   :  { %v1503_v20 = vpop.f32.mrf.mxu0 }
 0x684   :  { %v1612_v55 = vmul.f32 0.35355338, %v1503_v20 }
 0x685   :  { %v5579_v23 = vpop.f32.mrf.mxu0 }
 0x686   :  { %v1626_v17 = vsel %vm455_vm3, %v1612_v55, -inf }
 0x687   :  { %v1602_v24 = vpop.f32.mrf.mxu0 }
 0x688   :  { %v1615_v37 = vmul.f32 0.35355338, %v1602_v24 }
 0x689   :  { %v5590_v26 = vpop.f32.mrf.mxu0 }
 0x68b   :  { %v1605_v28 = vpop.f32.mrf.mxu0 }
 0x68d   :  { %v5591_v29 = vpop.f32.mrf.mxu0 }
 0x68e   :  { %v1616_v29 = vmul.f32 0.35355338, %v1605_v28 }
 0x725   :  { %v6777_v31 = vpop.f32.mrf.mxu1 }
 0x727   :  { %v6779_v38 = vpop.f32.mrf.mxu1 }
 0x729   :  { %v6781_v43 = vpop.f32.mrf.mxu1 }
 0x72b   :  { %v6783_v45 = vpop.f32.mrf.mxu1 }
 0x72e   :  { %v6785_v47 = vpop.f32.mrf.mxu1 }
 0x730   :  { %v6787_v48 = vpop.f32.mrf.mxu1 }
 0x732   :  { %v6789_v52 = vpop.f32.mrf.mxu1 }
 0x734   :  { %v6791_v53 = vpop.f32.mrf.mxu1 }
 0x735   :  { %7661 = vst [vmem:[#allocation17_spill] sm:$0xff] %v6791_v53 }
 0x736   :  { %v1449_v60 = vpop.f32.mrf.mxu1 }
 0x737   :  { %v6793_v61 = vmul.f32 0.35355338, %v1449_v60  ;;  %v1635_v60 = vsel %vm455_vm3, %v1615_v37, -inf }
 0x738   :  { %v5572_v62 = vpop.f32.mrf.mxu1 }
 0x739   :  { %v1617_v33 = vsel %vm455_vm3, %v6793_v61, -inf }
 0x73a   :  { %1618 = vmax.xlane.f32.xlu0 %v1617_v33  ;;  %v1452_v7 = vpop.f32.mrf.mxu1  ;;  %v1638_v33 = vsel %vm455_vm3, %v1616_v29, -inf }
 0x73b   :  { %v1610_v44 = vmul.f32 0.35355338, %v1452_v7 }
 0x73c   :  { %v5573_v10 = vpop.f32.mrf.mxu1 }
 0x73d   :  { %v1620_v54 = vsel %vm455_vm3, %v1610_v44, -inf }
 0x73e   :  { %1621 = vmax.xlane.f32.xlu1 %v1620_v54  ;;  %1624 = vmax.xlane.f32.xlu0 %v1623_v6  ;;  %v1551_v13 = vpop.f32.mrf.mxu1 }
 0x73f   :  { %v6799_v14 = vmul.f32 0.35355338, %v1551_v13 }
 0x740   :  { %v5584_v34 = vpop.f32.mrf.mxu1 }
 0x741   :  { %v1629_v18 = vsel %vm455_vm3, %v6799_v14, -inf }
 0x742   :  { %1627 = vmax.xlane.f32.xlu0 %v1626_v17  ;;  %1630 = vmax.xlane.f32.xlu1 %v1629_v18  ;;  %v1554_v23 = vpop.f32.mrf.mxu1 }
 0x743   :  { %v1614_v20 = vmul.f32 0.35355338, %v1554_v23 }
 0x744   :  { %v5585_v26 = vpop.f32.mrf.mxu1 }
 0x745   :  { %v1632_v62 = vsel %vm455_vm3, %v1614_v20, -inf }
 0x746   :  { %1636 = vmax.xlane.f32.xlu1 %v1635_v60  ;;  %1633 = vmax.xlane.f32.xlu0 %v1632_v62 }
 0x74a   :  { %1639 = vmax.xlane.f32.xlu0 %v1638_v33 }
 0x7c3   :  { %v1619_v24 = vpop.xlane.xlu0 %1618 }
 0x7c7   :  { %v1622_v7 = vpop.xlane.xlu1 %1621  ;;  %v1625_v10 = vpop.xlane.xlu0 %1624 }
 0x7c8   :  { %v1643_v54 = vsub.f32 %v1611_v63, %v1625_v10  ;;  %v1642_v21 = vsub.f32 %v1610_v44, %v1622_v7 }
 0x7ca   :  { %v1653_v6 = vmul.f32 1.442695, %v1643_v54  ;;  %v1651_v33 = vmul.f32 1.442695, %v1642_v21 }
 0x7cb   :  { %v1631_v13 = vpop.xlane.xlu1 %1630  ;;  %v1628_v34 = vpop.xlane.xlu0 %1627 }
 0x7cc   :  { %v1644_v17 = vsub.f32 %v1612_v55, %v1628_v34  ;;  %6025 = vpow2.f32 %v1653_v6  ;;  %v1641_v6 = vsub.f32 %v6793_v61, %v1619_v24 }
 0x7ce   :  { %v1655_v18 = vmul.f32 1.442695, %v1644_v17  ;;  %v1649_v34 = vmul.f32 1.442695, %v1641_v6  ;;  %v1645_v17 = vsub.f32 %v6799_v14, %v1631_v13 }
 0x7cf   :  { %v1637_v28 = vpop.xlane.xlu1 %1636  ;;  %v1634_v23 = vpop.xlane.xlu0 %1633 }
 0x7d0   :  { %v1647_v26 = vsub.f32 %v1615_v37, %v1637_v28  ;;  %6027 = vpow2.f32 %v1655_v18  ;;  %v1646_v53 = vsub.f32 %v1614_v20, %v1634_v23  ;;  %v1657_v18 = vmul.f32 1.442695, %v1645_v17 }
 0x7d2   :  { %v1661_v60 = vmul.f32 1.442695, %v1647_v26  ;;  %v1659_v10 = vmul.f32 1.442695, %v1646_v53 }
 0x7d3   :  { %v1640_v62 = vpop.xlane.xlu0 %1639 }
 0x7d4   :  { %6029 = vpow2.f32 %v1661_v60  ;;  %v1648_v15 = vsub.f32 %v1616_v29, %v1640_v62 }
 0x7d6   :  { %v1663_v22 = vmul.f32 1.442695, %v1648_v15 }
 0x7d8   :  { %6031 = vpow2.f32 %v1663_v22 }
 0x7d9   :  { %v6026_v63 = vpop.eup %6025  ;;  %6033 = vpow2.f32 %v1651_v33  ;;  %v7662_v33 = vmov 0.0  }
 0x7da   :  { %v1671_v55 = vsel %vm455_vm3, %v6026_v63, 0.0  ;;  %6035 = vpow2.f32 %v1659_v10 }
 0x7db   :  { %1672 = vadd.xlane.f32.xlu1 %v1671_v55  ;;  %6037 = vpow2.f32 %v1649_v34  ;;  %v1038_v55 = vadd.f32 %v6684_v8, %v6547_v50 }
 0x7dc   :  { %6039 = vpow2.f32 %v1657_v18 }
 0x7dd   :  { %v6028_v54 = vpop.eup %6027 }
 0x7de   :  { %v1674_v37 = vsel %vm455_vm3, %v6028_v54, 0.0 }
 0x7df   :  { %1675 = vadd.xlane.f32.xlu0 %v1674_v37 }
 0x7e1   :  { %v6809_v44 = vpop.eup %6029 }
 0x7e2   :  { %v1683_v29 = vsel %vm455_vm3, %v6809_v44, 0.0 }
 0x7e3   :  { %1684 = vadd.xlane.f32.xlu1 %v1683_v29 }
 0x7e5   :  { %v6813_v21 = vpop.eup %6031 }
 0x7e6   :  { %v1686_v22 = vsel %vm455_vm3, %v6813_v21, 0.0  ;;  %v6817_v15 = vpop.eup %6033 }
 0x7e7   :  { %1687 = vadd.xlane.f32.xlu0 %v1686_v22  ;;  %v1668_v53 = vsel %vm455_vm3, %v6817_v15, 0.0  ;;  %v6821_v20 = vpop.eup %6035 }
 0x7e8   :  { %v1680_v7 = vsel %vm455_vm3, %v6821_v20, 0.0  ;;  %v6835_v28 = vpop.eup %6037 }
 0x7e9   :  { %v1665_v61 = vsel %vm455_vm3, %v6835_v28, 0.0  ;;  %v6841_v14 = vpop.eup %6039 }
 0x7ea   :  { %v1677_v24 = vsel %vm455_vm3, %v6841_v14, 0.0 }
 0x7eb   :  { %1669 = vadd.xlane.f32.xlu0 %v1668_v53 }
 0x7ef   :  { %1681 = vadd.xlane.f32.xlu0 %v1680_v7  ;;  %v1039_v7 = vadd.f32 %v6686_v11, %v6549_v51  ;;  %v1043_v51 = vadd.f32 %v6706_v40, %v6572_v5  ;;  %v1041_v5 = vadd.f32 %v6697_v25, %v6560_v58 }
 0x7f4   :  { %1717 = vrot.lane.b32.xlu1 %v6451_v39, %s6362_s25 }
 0x805   :  { %1764 = vrot.lane.b32.xlu0 %v6457_v49, %s6362_s25 }
 0x809   :  { %1999 = vrot.lane.b32.xlu0 %v6449_v36, %s6363_s26 }
 0x80d   :  { %2050 = vrot.lane.b32.xlu0 %v6455_v46, %s6363_s26 }
 0x811   :  { %2048 = vrot.lane.b32.xlu0 %v6455_v46, %s6364_s27 }
 0x815   :  { %2099 = vrot.lane.b32.xlu0 %v6463_v56, %s6364_s27 }
 0x818   :  { %1666 = vadd.xlane.f32.xlu1 %v1665_v61  ;;  %v1042_v61 = vadd.f32 %v6703_v35, %v6570_v3 }
 0x81c   :  { %1678 = vadd.xlane.f32.xlu1 %v1677_v24 }
 0x82d   :  { %1811 = vrot.lane.b32.xlu1 %v6465_v59, %s6362_s25 }
 0x831   :  { %1858 = vrot.lane.b32.xlu1 %v6471_v4, %s6362_s25 }
 0x835   :  { %1997 = vrot.lane.b32.xlu1 %v6449_v36, %s6364_s27 }
 0x839   :  { %2101 = vrot.lane.b32.xlu1 %v6463_v56, %s6363_s26 }
 0x83d   :  { %2152 = vrot.lane.b32.xlu1 %v6469_v2, %s6363_s26 }
 0x841   :  { %2150 = vrot.lane.b32.xlu1 %v6469_v2, %s6364_s27 }
 0x864   :  { %v1673_v13 = vpop.xlane.xlu1 %1672 }
 0x865   :  { %6041 = vrcp.f32 %v1673_v13 }
 0x868   :  { %v1676_v23 = vpop.xlane.xlu0 %1675 }
 0x869   :  { %6043 = vrcp.f32 %v1676_v23 }
 0x86c   :  { %v1685_v26 = vpop.xlane.xlu1 %1684 }
 0x86d   :  { %6045 = vrcp.f32 %v1685_v26 }
 0x870   :  { %v1718_v60 = vpop.permute.xlu1 %1717  ;;  %v1688_v62 = vpop.xlane.xlu0 %1687 }
 0x871   :  { %6047 = vrcp.f32 %v1688_v62  ;;  %5593 = vmatpush3.bf16.msra.mxu1 %v1718_v60 }
 0x872   :  { %5604 = vmatprep.subr.bf16.mxu1 %v7662_v33  ;;  %v6042_v10 = vpop.eup %6041 }
 0x873   :  { %v1699_v29 = vmul.f32 %v6042_v10, %v6026_v63 }
 0x874   :  { %v1670_v37 = vpop.xlane.xlu0 %1669 }
 0x875   :  { %6049 = vrcp.f32 %v1670_v37  ;;  %v6858_v22 = vadd.f32 %v1699_v29, %v1038_v55 }
 0x876   :  { %v6044_v53 = vpop.eup %6043 }
 0x877   :  { %v1700_v34 = vmul.f32 %v6044_v53, %v6028_v54  ;;  %v1037_v54 = vadd.f32 %v6676_v1, %v6538_v42 }
 0x878   :  { %v1682_v6 = vpop.xlane.xlu0 %1681 }
 0x879   :  { %6051 = vrcp.f32 %v1682_v6  ;;  %v6862_v18 = vadd.f32 %v1700_v34, %v1039_v7  ;;  %v1714_v13 = vpack.c.bf16 %v1700_v34, %v1699_v29 }
 0x87a   :  { %v6046_v17 = vpop.eup %6045 }
 0x87b   :  { %v1703_v50 = vmul.f32 %v6046_v17, %v6809_v44 }
 0x87c   :  { %v1765_v8 = vpop.permute.xlu0 %1764 }
 0x87d   :  { %5599 = vmatpush3.bf16.msra.mxu0 %v1765_v8  ;;  %v6867_v63 = vadd.f32 %v1703_v50, %v1042_v61  ;;  %v232_v8 = vld [vmem:[#allocation7 + $0x8] sm:$0xf] }
 0x87e   :  { %v6048_v24 = vpop.eup %6047  ;;  %5610 = vmatprep.subr.bf16.mxu0 %v7662_v33 }
 0x87f   :  { %v1704_v11 = vmul.f32 %v6048_v24, %v6813_v21  ;;  %v1922_v24 = vsel %vm1256_vm4, %v232_v8, 0 }
 0x880   :  { %5601 = vmatmul.mubr.msk.bf16.vlgmr.msra.gmra.mxu0 %vm455_vm3, %v1714_v13  ;;  %v2000_v37 = vpop.permute.xlu0 %1999 }
 0x881   :  { %5612 = vmatprep.mubr.msk.bf16.mxu0 %vm6358_vm1, %v7662_v33  ;;  %v6876_v3 = vadd.f32 %v1704_v11, %v1043_v51  ;;  %v1716_v1 = vpack.c.bf16 %v1704_v11, %v1703_v50  ;;  %v2005_v25 = vsel %vm249_vm2, %v2000_v37, 0 }
 0x882   :  { %v6050_v35 = vpop.eup %6049 }
 0x883   :  { %v1698_v44 = vmul.f32 %v6050_v35, %v6817_v15  ;;  %v1036_v15 = vadd.f32 %v6674_v0, %v6536_v41  ;;  %v1040_v41 = vadd.f32 %v6694_v12, %v6558_v57 }
 0x885   :  { %v6881_v23 = vadd.f32 %v1698_v44, %v1037_v54 }
 0x886   :  { %v6052_v26 = vpop.eup %6051 }
 0x887   :  { %v1702_v40 = vmul.f32 %v6052_v26, %v6821_v20 }
 0x889   :  { %v6886_v21 = vadd.f32 %v1702_v40, %v1041_v5 }
 0x8a1   :  { %v1667_v60 = vpop.xlane.xlu1 %1666 }
 0x8a2   :  { %6053 = vrcp.f32 %v1667_v60 }
 0x8a5   :  { %v1679_v62 = vpop.xlane.xlu1 %1678 }
 0x8a6   :  { %6055 = vrcp.f32 %v1679_v62 }
 0x8a9   :  { %v1812_v10 = vpop.permute.xlu1 %1811 }
 0x8ad   :  { %v1859_v55 = vpop.permute.xlu1 %1858 }
 0x8ae   :  { %5611 = vmatpush3.bf16.msra.mxu0 %v1859_v55 }
 0x8af   :  { %v6054_v42 = vpop.eup %6053  ;;  %5626 = vmatprep.subr.bf16.mxu0 %v7662_v33 }
 0x8b0   :  { %v1697_v58 = vmul.f32 %v6054_v42, %v6835_v28  ;;  %v2051_v28 = vpop.permute.xlu0 %2050 }
 0x8b1   :  { %5613 = vmatmul.mubr.msk.bf16.vlgmr.msra.gmra.mxu0 %vm455_vm3, %v1716_v1  ;;  %v1998_v20 = vpop.permute.xlu1 %1997  ;;  %v2056_v17 = vsel %vm249_vm2, %v2051_v28, 0 }
 0x8b2   :  { %5627 = vmatpush3.bf16.xpose.msra.mxu0 %v2005_v25  ;;  %v6894_v29 = vadd.f32 %v1697_v58, %v1036_v15  ;;  %v1713_v53 = vpack.c.bf16 %v1698_v44, %v1697_v58  ;;  %5628 = vmatprep.mubr.msk.bf16.mxu0 %vm6358_vm1, %v7662_v33 }
 0x8b3   :  { %v6056_v7 = vpop.eup %6055  ;;  %5632 = vmatprep.subr.bf16.mxu0 %v7662_v33 }
 0x8b4   :  { %5595 = vmatmul.mubr.msk.bf16.vlgmr.msra.gmra.mxu1 %vm455_vm3, %v1713_v53  ;;  %v1701_v0 = vmul.f32 %v6056_v7, %v6841_v14  ;;  %v2049_v12 = vpop.permute.xlu0 %2048 }
 0x8b5   :  { %5605 = vmatpush3.bf16.msra.mxu1 %v1812_v10  ;;  %5606 = vmatprep.mubr.msk.bf16.mxu1 %vm6358_vm1, %v7662_v33  ;;  %v2102_v34 = vpop.permute.xlu1 %2101 }
 0x8b6   :  { %v6905_v6 = vadd.f32 %v1701_v0, %v1040_v41  ;;  %v1715_v61 = vpack.c.bf16 %v1702_v40, %v1701_v0  ;;  %5918 = vmatprep.subr.msk.bf16.mxu1 %vm1256_vm4, %v232_v8  ;;  %v2107_v58 = vsel %vm249_vm2, %v2102_v34, 0 }
 0x8b9   :  { %5629 = vmatmul.mubr.msk.bf16.vlgmr.msra.gmra.mxu0 %vm249_vm2, %v1998_v20  ;;  %v2153_v57 = vpop.permute.xlu1 %2152 }
 0x8ba   :  { %5633 = vmatpush3.bf16.xpose.msra.mxu0 %v2056_v17  ;;  %5634 = vmatprep.mubr.msk.bf16.mxu0 %vm6358_vm1, %v7662_v33  ;;  %v2158_v14 = vsel %vm249_vm2, %v2153_v57, 0 }
 0x8bb   :  { %5644 = vmatprep.subr.bf16.mxu0 %v7662_v33 }
 0x8bc   :  { %5607 = vmatmul.mubr.msk.bf16.vlgmr.msra.gmra.mxu1 %vm455_vm3, %v1715_v61 }
 0x8bd   :  { %v2151_v50 = vpop.permute.xlu1 %2150  ;;  %5617 = vmatpush3.bf16.msra.mxu1 %v1922_v24 }
 0x8be   :  { %5638 = vmatprep.subr.bf16.mxu1 %v7662_v33 }
 0x8c1   :  { %5635 = vmatmul.mubr.msk.bf16.vlgmr.msra.gmra.mxu0 %vm249_vm2, %v2049_v12 }
 0x8c2   :  { %5645 = vmatpush3.bf16.xpose.msra.mxu0 %v2158_v14  ;;  %5646 = vmatprep.mubr.msk.bf16.mxu0 %vm6358_vm1, %v7662_v33 }
 0x8c3   :  { %5656 = vmatprep.subr.bf16.mxu0 %v7662_v33 }
 0x8c9   :  { %5647 = vmatmul.mubr.msk.bf16.vlgmr.msra.gmra.mxu0 %vm249_vm2, %v2151_v50 }
 0x8ca   :  { %5658 = vmatprep.mubr.msk.bf16.mxu0 %vm6358_vm1, %v7662_v33 }
 0x940   :  { %v1804_v13 = vpop.f32.mrf.mxu0 }
 0x942   :  { %v5602_v51 = vpop.f32.mrf.mxu0 }
 0x944   :  { %v1807_v11 = vpop.f32.mrf.mxu0 }
 0x945   :  { %v1906_v37 = vpack.c.bf16 %v1807_v11, %v1804_v13 }
 0x946   :  { %v5603_v35 = vpop.f32.mrf.mxu0 }
 0x971   :  { %v1898_v54 = vpop.f32.mrf.mxu0 }
 0x973   :  { %v5614_v44 = vpop.f32.mrf.mxu0 }
 0x974   :  { %v1757_v26 = vpop.f32.mrf.mxu1 }
 0x975   :  { %v1901_v5 = vpop.f32.mrf.mxu0 }
 0x976   :  { %v5596_v40 = vpop.f32.mrf.mxu1  ;;  %v1908_v34 = vpack.c.bf16 %v1901_v5, %v1898_v54  ;;  %v2100_v54 = vpop.permute.xlu0 %2099 }
 0x977   :  { %v5615_v60 = vpop.f32.mrf.mxu0 }
 0x978   :  { %v1760_v62 = vpop.f32.mrf.mxu1  ;;  %v1383_v60 = vadd.f32 %v6751_v9, %v6777_v31 }
 0x979   :  { %v1905_v10 = vpack.c.bf16 %v1760_v62, %v1757_v26  ;;  %v2041_v55 = vpop.f32.mrf.mxu0 }
 0x97a   :  { %v2201_v42 = vmul.f32 0.35355338, %v2041_v55  ;;  %v5597_v1 = vpop.f32.mrf.mxu1 }
 0x97b   :  { %5618 = vmatprep.mubr.msk.bf16.mxu1 %vm249_vm2, %v1905_v10  ;;  %v5630_v15 = vpop.f32.mrf.mxu0  ;;  %v1375_v10 = vadd.f32 %v6755_v16, %v6779_v38  ;;  %v1399_v16 = vadd.f32 %v6763_v19, %v6785_v47 }
 0x97c   :  { %v1851_v25 = vpop.f32.mrf.mxu1  ;;  %5619 = vmatmul.mubr.msk.bf16.vlgmr.msra.gmra.mxu1 %vm249_vm2, %v1906_v37  ;;  %v2209_v20 = vsel %vm455_vm3, %v2201_v42, -inf  ;;  %v1386_v15 = vadd.f32 %v6757_v27, %v6781_v43  ;;  %v1391_v27 = vadd.f32 %v6768_v32, %v6787_v48 }
 0x97d   :  { %5639 = vmatpush3.bf16.xpose.msra.mxu1 %v2107_v58  ;;  %2210 = vmax.xlane.f32.xlu0 %v2209_v20  ;;  %v2044_v53 = vpop.f32.mrf.mxu0 }
 0x97e   :  { %v2202_v7 = vmul.f32 0.35355338, %v2044_v53  ;;  %v5608_v41 = vpop.f32.mrf.mxu1  ;;  %5650 = vmatprep.subr.bf16.mxu1 %v7662_v33 }
 0x97f   :  { %v5631_v0 = vpop.f32.mrf.mxu0 }
 0x980   :  { %v1854_v28 = vpop.f32.mrf.mxu1  ;;  %v2212_v17 = vsel %vm455_vm3, %v2202_v7, -inf }
 0x981   :  { %v1907_v61 = vpack.c.bf16 %v1854_v28, %v1851_v25  ;;  %2213 = vmax.xlane.f32.xlu1 %v2212_v17  ;;  %v2092_v57 = vpop.f32.mrf.mxu0 }
 0x982   :  { %v2203_v12 = vmul.f32 0.35355338, %v2092_v57  ;;  %v5609_v14 = vpop.f32.mrf.mxu1 }
 0x983   :  { %5622 = vmatprep.mubr.msk.bf16.mxu1 %vm249_vm2, %v1907_v61  ;;  %v5636_v50 = vpop.f32.mrf.mxu0 }
 0x984   :  { %5623 = vmatmul.mubr.msk.bf16.gmra.mxu1 %vm249_vm2, %v1908_v34  ;;  %v2215_v8 = vsel %vm455_vm3, %v2203_v12, -inf }
 0x985   :  { %2216 = vmax.xlane.f32.xlu0 %v2215_v8  ;;  %v2095_v24 = vpop.f32.mrf.mxu0  ;;  %5640 = vmatprep.mubr.msk.bf16.mxu1 %vm6358_vm1, %v7662_v33 }
 0x986   :  { %v2204_v13 = vmul.f32 0.35355338, %v2095_v24 }
 0x987   :  { %v5637_v51 = vpop.f32.mrf.mxu0 }
 0x988   :  { %v2218_v11 = vsel %vm455_vm3, %v2204_v13, -inf }
 0x989   :  { %2219 = vmax.xlane.f32.xlu0 %v2218_v11  ;;  %v2194_v35 = vpop.f32.mrf.mxu0 }
 0x98b   :  { %v5648_v44 = vpop.f32.mrf.mxu0 }
 0x98c   :  { %5641 = vmatmul.mubr.msk.bf16.vlgmr.msra.gmra.mxu1 %vm249_vm2, %v2100_v54 }
 0x98d   :  { %v2197_v26 = vpop.f32.mrf.mxu0  ;;  %5652 = vmatprep.mubr.msk.bf16.mxu1 %vm6358_vm1, %v7662_v33 }
 0x98e   :  { %v2208_v11 = vmul.f32 0.35355338, %v2197_v26 }
 0x98f   :  { %v5649_v5 = vpop.f32.mrf.mxu0 }
 0xa06   :  { %v2211_v40 = vpop.xlane.xlu0 %2210 }
 0xa07   :  { %v2233_v58 = vsub.f32 %v2201_v42, %v2211_v40  ;;  %v1402_v42 = vadd.f32 %v6770_v30, %v6789_v52  ;;  %v2207_v30 = vmul.f32 0.35355338, %v2194_v35 }
 0xa09   :  { %v2241_v31 = vmul.f32 1.442695, %v2233_v58  ;;  %v2227_v54 = vsel %vm455_vm3, %v2207_v30, -inf }
 0xa0a   :  { %v2214_v25 = vpop.xlane.xlu1 %2213 }
 0xa0b   :  { %v2234_v0 = vsub.f32 %v2202_v7, %v2214_v25  ;;  %6057 = vpow2.f32 %v2241_v31 }
 0xa0d   :  { %v2243_v61 = vmul.f32 1.442695, %v2234_v0 }
 0xa0e   :  { %v2217_v37 = vpop.xlane.xlu0 %2216 }
 0xa0f   :  { %v2235_v38 = vsub.f32 %v2203_v12, %v2217_v37  ;;  %6059 = vpow2.f32 %v2243_v61 }
 0xa11   :  { %v2245_v7 = vmul.f32 1.442695, %v2235_v38 }
 0xa12   :  { %v2220_v28 = vpop.xlane.xlu0 %2219 }
 0xa13   :  { %v2236_v34 = vsub.f32 %v2204_v13, %v2220_v28  ;;  %6061 = vpow2.f32 %v2245_v7 }
 0xa15   :  { %v2247_v32 = vmul.f32 1.442695, %v2236_v34 }
 0xa17   :  { %6063 = vpow2.f32 %v2247_v32 }
 0xa18   :  { %v6058_v5 = vpop.eup %6057 }
 0xa19   :  { %v2257_v35 = vsel %vm455_vm3, %v6058_v5, 0.0 }
 0xa1c   :  { %v6060_v40 = vpop.eup %6059 }
 0xa3c   :  { %v5620_v62 = vpop.f32.mrf.mxu1 }
 0xa3d   :  { %v6943_v55 = vadd.f32 %v5620_v62, %v1383_v60  ;;  %v2230_v60 = vsel %vm455_vm3, %v2208_v11, -inf  ;;  %v6062_v62 = vpop.eup %6061 }
 0xa3e   :  { %v1958_v1 = vpop.f32.mrf.mxu1  ;;  %v2263_v37 = vsel %vm455_vm3, %v6062_v62, 0.0  ;;  %v6064_v26 = vpop.eup %6063 }
 0xa3f   :  { %v6947_v20 = vadd.f32 %v1958_v1, %v1375_v10  ;;  %v2260_v10 = vsel %vm455_vm3, %v6060_v40, 0.0  ;;  %v2266_v1 = vsel %vm455_vm3, %v6064_v26, 0.0 }
 0xa40   :  { %v5621_v53 = vpop.f32.mrf.mxu1 }
 0xa41   :  { %v6949_v41 = vadd.f32 %v5621_v53, %v1386_v15 }
 0xa42   :  { %v6951_v9 = vpop.f32.mrf.mxu1 }
 0xa44   :  { %v5624_v17 = vpop.f32.mrf.mxu1 }
 0xa45   :  { %v6957_v43 = vadd.f32 %v5624_v17, %v1399_v16 }
 0xa46   :  { %v1974_v57 = vpop.f32.mrf.mxu1 }
 0xa47   :  { %v6961_v14 = vadd.f32 %v1974_v57, %v1391_v27 }
 0xa48   :  { %v5625_v19 = vpop.f32.mrf.mxu1 }
 0xa49   :  { %v6963_v47 = vadd.f32 %v5625_v19, %v1402_v42 }
 0xa4a   :  { %v6965_v12 = vpop.f32.mrf.mxu1 }
 0xa4c   :  { %v2143_v48 = vpop.f32.mrf.mxu1 }
 0xa4d   :  { %v6967_v50 = vmul.f32 0.35355338, %v2143_v48 }
 0xa4e   :  { %v5642_v8 = vpop.f32.mrf.mxu1 }
 0xa4f   :  { %v2221_v52 = vsel %vm455_vm3, %v6967_v50, -inf }
 0xa50   :  { %2222 = vmax.xlane.f32.xlu1 %v2221_v52  ;;  %v2146_v24 = vpop.f32.mrf.mxu1 }
 0xa51   :  { %v2206_v13 = vmul.f32 0.35355338, %v2146_v24 }
 0xa52   :  { %v5643_v51 = vpop.f32.mrf.mxu1 }
 0xa53   :  { %v2224_v44 = vsel %vm455_vm3, %v2206_v13, -inf }
 0xa54   :  { %2228 = vmax.xlane.f32.xlu1 %v2227_v54  ;;  %2225 = vmax.xlane.f32.xlu0 %v2224_v44 }
 0xa58   :  { %2231 = vmax.xlane.f32.xlu0 %v2230_v60  ;;  %2258 = vadd.xlane.f32.xlu1 %v2257_v35 }
 0xa5c   :  { %2261 = vadd.xlane.f32.xlu0 %v2260_v10  ;;  %2264 = vadd.xlane.f32.xlu1 %v2263_v37 }
 0xa60   :  { %2267 = vadd.xlane.f32.xlu0 %v2266_v1 }
 0xad9   :  { %v2223_v15 = vpop.xlane.xlu1 %2222 }
 0xadd   :  { %v2229_v58 = vpop.xlane.xlu1 %2228  ;;  %v2226_v25 = vpop.xlane.xlu0 %2225 }
 0xade   :  { %v2239_v53 = vsub.f32 %v2207_v30, %v2229_v58  ;;  %v2238_v0 = vsub.f32 %v2206_v13, %v2226_v25 }
 0xae0   :  { %v2253_v16 = vmul.f32 1.442695, %v2239_v53  ;;  %v2251_v31 = vmul.f32 1.442695, %v2238_v0 }
 0xae1   :  { %v2259_v38 = vpop.xlane.xlu1 %2258  ;;  %v2232_v28 = vpop.xlane.xlu0 %2231 }
 0xae2   :  { %6065 = vpow2.f32 %v2253_v16  ;;  %v2240_v17 = vsub.f32 %v2208_v11, %v2232_v28 }
 0xae3   :  { %6067 = vrcp.f32 %v2259_v38 }
 0xae4   :  { %v2255_v27 = vmul.f32 1.442695, %v2240_v17  ;;  %6069 = vpow2.f32 %v2251_v31 }
 0xae5   :  { %v2265_v42 = vpop.xlane.xlu1 %2264  ;;  %v2262_v61 = vpop.xlane.xlu0 %2261 }
 0xae6   :  { %6071 = vpow2.f32 %v2255_v27 }
 0xae7   :  { %6073 = vrcp.f32 %v2265_v42 }
 0xae8   :  { %6075 = vrcp.f32 %v2262_v61 }
 0xae9   :  { %v2268_v57 = vpop.xlane.xlu0 %2267 }
 0xaea   :  { %6077 = vrcp.f32 %v2268_v57 }
 0xaef   :  { %v6066_v7 = vpop.eup %6065 }
 0xaf0   :  { %v2275_v34 = vsel %vm455_vm3, %v6066_v7, 0.0  ;;  %v6068_v19 = vpop.eup %6067 }
 0xaf1   :  { %2276 = vadd.xlane.f32.xlu1 %v2275_v34  ;;  %v6070_v32 = vpop.eup %6069  ;;  %v2289_v48 = vmul.f32 %v6068_v19, %v6058_v5 }
 0xaf2   :  { %v2272_v60 = vsel %vm455_vm3, %v6070_v32, 0.0 }
 0xaf3   :  { %v6072_v8 = vpop.eup %6071  ;;  %v6981_v24 = vadd.f32 %v2289_v48, %v6894_v29  ;;  %v2237_v29 = vsub.f32 %v6967_v50, %v2223_v15 }
 0xaf4   :  { %v6074_v30 = vpop.eup %6073  ;;  %v2278_v52 = vsel %vm455_vm3, %v6072_v8, 0.0 }
 0xaf5   :  { %v6076_v13 = vpop.eup %6075  ;;  %2279 = vadd.xlane.f32.xlu0 %v2278_v52  ;;  %v2291_v51 = vmul.f32 %v6074_v30, %v6062_v62 }
 0xaf6   :  { %v2290_v11 = vmul.f32 %v6076_v13, %v6060_v40 }
 0xaf7   :  { %v6078_v54 = vpop.eup %6077  ;;  %v6984_v44 = vadd.f32 %v2291_v51, %v6858_v22  ;;  %v2249_v22 = vmul.f32 1.442695, %v2237_v29 }
 0xaf8   :  { %v6988_v35 = vadd.f32 %v2290_v11, %v6881_v23  ;;  %v2292_v5 = vmul.f32 %v6078_v54, %v6064_v26  ;;  %v2305_v37 = vpack.c.bf16 %v2290_v11, %v2289_v48 }
 0xaf9   :  { %2273 = vadd.xlane.f32.xlu0 %v2272_v60  ;;  %6079 = vpow2.f32 %v2249_v22 }
 0xafa   :  { %v6991_v10 = vadd.f32 %v2292_v5, %v6862_v18  ;;  %v2306_v58 = vpack.c.bf16 %v2292_v5, %v2291_v51 }
 0xb02   :  { %2309 = vrot.lane.b32.xlu1 %v6451_v39, %s6364_s27 }
 0xb06   :  { %v6080_v18 = vpop.eup %6079 }
 0xb07   :  { %v2269_v23 = vsel %vm455_vm3, %v6080_v18, 0.0 }
 0xb0f   :  { %2356 = vrot.lane.b32.xlu0 %v6457_v49, %s6364_s27 }
 0xb13   :  { %2591 = vrot.lane.b32.xlu0 %v6449_v36, %s6365_s28 }
 0xb17   :  { %2642 = vrot.lane.b32.xlu0 %v6455_v46, %s6365_s28 }
 0xb1b   :  { %2640 = vrot.lane.b32.xlu0 %v6455_v46, %s6366_s29 }
 0xb1f   :  { %2691 = vrot.lane.b32.xlu0 %v6463_v56, %s6366_s29 }
 0xb26   :  { %2270 = vadd.xlane.f32.xlu1 %v2269_v23 }
 0xb37   :  { %2403 = vrot.lane.b32.xlu1 %v6465_v59, %s6364_s27 }
 0xb3b   :  { %2450 = vrot.lane.b32.xlu1 %v6471_v4, %s6364_s27 }
 0xb3f   :  { %2589 = vrot.lane.b32.xlu1 %v6449_v36, %s6366_s29 }
 0xb43   :  { %2693 = vrot.lane.b32.xlu1 %v6463_v56, %s6365_s28 }
 0xb47   :  { %2744 = vrot.lane.b32.xlu1 %v6469_v2, %s6365_s28 }
 0xb4b   :  { %2742 = vrot.lane.b32.xlu1 %v6469_v2, %s6366_s29 }
 0xb7a   :  { %v2277_v50 = vpop.xlane.xlu1 %2276 }
 0xb7b   :  { %6081 = vrcp.f32 %v2277_v50 }
 0xb7e   :  { %v2310_v40 = vpop.permute.xlu1 %2309  ;;  %v2280_v62 = vpop.xlane.xlu0 %2279 }
 0xb7f   :  { %6083 = vrcp.f32 %v2280_v62  ;;  %5651 = vmatpush3.bf16.msra.mxu1 %v2310_v40 }
 0xb80   :  { %5662 = vmatprep.subr.bf16.mxu1 %v7662_v33 }
 0xb82   :  { %5653 = vmatmul.mubr.msk.bf16.vlgmr.msra.gmra.mxu1 %vm455_vm3, %v2305_v37  ;;  %v2274_v26 = vpop.xlane.xlu0 %2273 }
 0xb83   :  { %6085 = vrcp.f32 %v2274_v26  ;;  %5664 = vmatprep.mubr.msk.bf16.mxu1 %vm6358_vm1, %v7662_v33 }
 0xb86   :  { %v2357_v1 = vpop.permute.xlu0 %2356 }
 0xb87   :  { %5657 = vmatpush3.bf16.msra.mxu0 %v2357_v1 }
 0xb88   :  { %v6082_v15 = vpop.eup %6081  ;;  %5668 = vmatprep.subr.bf16.mxu0 %v7662_v33 }
 0xb89   :  { %v2295_v25 = vmul.f32 %v6082_v15, %v6066_v7 }
 0xb8a   :  { %5659 = vmatmul.mubr.msk.bf16.vlgmr.msra.gmra.mxu0 %vm455_vm3, %v2306_v58  ;;  %v2592_v57 = vpop.permute.xlu0 %2591 }
 0xb8b   :  { %5670 = vmatprep.mubr.msk.bf16.mxu0 %vm6358_vm1, %v7662_v33  ;;  %v7024_v53 = vadd.f32 %v2295_v25, %v6867_v63  ;;  %v2597_v63 = vsel %vm249_vm2, %v2592_v57, 0 }
 0xb8c   :  { %v6084_v0 = vpop.eup %6083 }
 0xb8d   :  { %v2296_v16 = vmul.f32 %v6084_v0, %v6072_v8 }
 0xb8e   :  { %v2643_v19 = vpop.permute.xlu0 %2642 }
 0xb8f   :  { %v7027_v31 = vadd.f32 %v2296_v16, %v6876_v3  ;;  %v2308_v7 = vpack.c.bf16 %v2296_v16, %v2295_v25  ;;  %v2648_v30 = vsel %vm249_vm2, %v2643_v19, 0 }
 0xb90   :  { %v6086_v38 = vpop.eup %6085 }
 0xb91   :  { %v2294_v28 = vmul.f32 %v6086_v38, %v6070_v32 }
 0xb92   :  { %v2641_v13 = vpop.permute.xlu0 %2640 }
 0xb93   :  { %v7030_v17 = vadd.f32 %v2294_v28, %v6886_v21 }
 0xbaf   :  { %v2271_v27 = vpop.xlane.xlu1 %2270 }
 0xbb0   :  { %6087 = vrcp.f32 %v2271_v27 }
 0xbb3   :  { %v2404_v42 = vpop.permute.xlu1 %2403 }
 0xbb4   :  { %5663 = vmatpush3.bf16.msra.mxu1 %v2404_v42 }
 0xbb7   :  { %v2451_v61 = vpop.permute.xlu1 %2450 }
 0xbb8   :  { %5669 = vmatpush3.bf16.msra.mxu0 %v2451_v61 }
 0xbb9   :  { %5684 = vmatprep.subr.bf16.mxu0 %v7662_v33 }
 0xbbb   :  { %5671 = vmatmul.mubr.msk.bf16.vlgmr.msra.gmra.mxu0 %vm455_vm3, %v2308_v7  ;;  %v2590_v3 = vpop.permute.xlu1 %2589 }
 0xbbc   :  { %5685 = vmatpush3.bf16.xpose.msra.mxu0 %v2597_v63  ;;  %5686 = vmatprep.mubr.msk.bf16.mxu0 %vm6358_vm1, %v7662_v33 }
 0xbbd   :  { %v6088_v21 = vpop.eup %6087  ;;  %5690 = vmatprep.subr.bf16.mxu0 %v7662_v33 }
 0xbbe   :  { %v2293_v34 = vmul.f32 %v6088_v21, %v6080_v18 }
 0xbbf   :  { %v2694_v8 = vpop.permute.xlu1 %2693 }
 0xbc0   :  { %v7039_v32 = vadd.f32 %v2293_v34, %v6905_v6  ;;  %v2307_v48 = vpack.c.bf16 %v2294_v28, %v2293_v34  ;;  %v233_v6 = vld [vmem:[#allocation7 + $0xc] sm:$0xf]  ;;  %v2699_v26 = vsel %vm249_vm2, %v2694_v8, 0 }
 0xbc1   :  { %5919 = vmatprep.subr.msk.bf16.mxu1 %vm1256_vm4, %v233_v6  ;;  %v2514_v11 = vsel %vm1256_vm4, %v233_v6, 0  ;;  %v2692_v6 = vpop.permute.xlu0 %2691 }
 0xbc2   :  { %5665 = vmatmul.mubr.msk.bf16.vlgmr.msra.gmra.mxu1 %vm455_vm3, %v2307_v48 }
 0xbc3   :  { %5687 = vmatmul.mubr.msk.bf16.vlgmr.msra.gmra.mxu0 %vm249_vm2, %v2590_v3  ;;  %v2745_v52 = vpop.permute.xlu1 %2744  ;;  %5675 = vmatpush3.bf16.msra.mxu1 %v2514_v11 }
 0xbc4   :  { %5691 = vmatpush3.bf16.xpose.msra.mxu0 %v2648_v30  ;;  %5692 = vmatprep.mubr.msk.bf16.mxu0 %vm6358_vm1, %v7662_v33  ;;  %v2750_v51 = vsel %vm249_vm2, %v2745_v52, 0 }
 0xbc5   :  { %5702 = vmatprep.subr.bf16.mxu0 %v7662_v33  ;;  %5696 = vmatprep.subr.bf16.mxu1 %v7662_v33 }
 0xbc7   :  { %v2743_v54 = vpop.permute.xlu1 %2742 }
 0xbcb   :  { %5693 = vmatmul.mubr.msk.bf16.vlgmr.msra.gmra.mxu0 %vm249_vm2, %v2641_v13 }
 0xbcc   :  { %5703 = vmatpush3.bf16.xpose.msra.mxu0 %v2750_v51  ;;  %5704 = vmatprep.mubr.msk.bf16.mxu0 %vm6358_vm1, %v7662_v33 }
 0xbcd   :  { %5714 = vmatprep.subr.bf16.mxu0 %v7662_v33 }
 0xbd3   :  { %5705 = vmatmul.mubr.msk.bf16.vlgmr.msra.gmra.mxu0 %vm249_vm2, %v2743_v54 }
 0xbd4   :  { %5716 = vmatprep.mubr.msk.bf16.mxu0 %vm6358_vm1, %v7662_v33 }
 0xc42   :  { %v2349_v60 = vpop.f32.mrf.mxu1 }
 0xc44   :  { %v5654_v5 = vpop.f32.mrf.mxu1 }
 0xc46   :  { %v2352_v29 = vpop.f32.mrf.mxu1 }
 0xc47   :  { %v2497_v22 = vpack.c.bf16 %v2352_v29, %v2349_v60 }
 0xc48   :  { %v5655_v18 = vpop.f32.mrf.mxu1 }
 0xc49   :  { %5676 = vmatprep.mubr.msk.bf16.mxu1 %vm249_vm2, %v2497_v22 }
 0xc4a   :  { %v2396_v23 = vpop.f32.mrf.mxu0 }
 0xc4c   :  { %v5660_v50 = vpop.f32.mrf.mxu0 }
 0xc4e   :  { %v2399_v40 = vpop.f32.mrf.mxu0 }
 0xc4f   :  { %v2498_v62 = vpack.c.bf16 %v2399_v40, %v2396_v23  ;;  %v7663_v40 = vld [vmem:[#allocation15_spill] sm:$0xff] }
 0xc50   :  { %v5661_v37 = vpop.f32.mrf.mxu0 }
 0xc51   :  { %5677 = vmatmul.mubr.msk.bf16.vlgmr.msra.gmra.mxu1 %vm249_vm2, %v2498_v62  ;;  %v1378_v62 = vadd.f32 %v7663_v40, %v6783_v45 }
 0xc52   :  { %5697 = vmatpush3.bf16.xpose.msra.mxu1 %v2699_v26 }
 0xc53   :  { %5708 = vmatprep.subr.bf16.mxu1 %v7662_v33 }
 0xc7b   :  { %v2490_v1 = vpop.f32.mrf.mxu0 }
 0xc7d   :  { %v5672_v15 = vpop.f32.mrf.mxu0 }
 0xc7f   :  { %v2493_v58 = vpop.f32.mrf.mxu0 }
 0xc80   :  { %v2500_v63 = vpack.c.bf16 %v2493_v58, %v2490_v1  ;;  %v1990_v1 = vadd.f32 %v6951_v9, %v1378_v62  ;;  %v7665_v9 = vld [vmem:[#allocation16_spill] sm:$0xff] }
 0xc81   :  { %v5673_v25 = vpop.f32.mrf.mxu0 }
 0xc82   :  { %v2443_v0 = vpop.f32.mrf.mxu1 }
 0xc83   :  { %v2633_v16 = vpop.f32.mrf.mxu0 }
 0xc84   :  { %v2793_v38 = vmul.f32 0.35355338, %v2633_v16  ;;  %v5666_v28 = vpop.f32.mrf.mxu1 }
 0xc85   :  { %v5688_v27 = vpop.f32.mrf.mxu0 }
 0xc86   :  { %v2446_v42 = vpop.f32.mrf.mxu1  ;;  %v2801_v61 = vsel %vm455_vm3, %v2793_v38, -inf }
 0xc87   :  { %v2499_v57 = vpack.c.bf16 %v2446_v42, %v2443_v0  ;;  %2802 = vmax.xlane.f32.xlu0 %v2801_v61  ;;  %v2636_v7 = vpop.f32.mrf.mxu0 }
 0xc88   :  { %v2794_v3 = vmul.f32 0.35355338, %v2636_v7  ;;  %v5667_v21 = vpop.f32.mrf.mxu1  ;;  %v7664_v7 = vld [vmem:[#allocation17_spill] sm:$0xff] }
 0xc89   :  { %5680 = vmatprep.mubr.msk.bf16.mxu1 %vm249_vm2, %v2499_v57  ;;  %v5689_v34 = vpop.f32.mrf.mxu0 }
 0xc8a   :  { %5681 = vmatmul.mubr.msk.bf16.gmra.mxu1 %vm249_vm2, %v2500_v63  ;;  %v2804_v19 = vsel %vm455_vm3, %v2794_v3, -inf  ;;  %v1394_v63 = vadd.f32 %v7665_v9, %v7664_v7 }
 0xc8b   :  { %2805 = vmax.xlane.f32.xlu1 %v2804_v19  ;;  %v2684_v48 = vpop.f32.mrf.mxu0  ;;  %5698 = vmatprep.mubr.msk.bf16.mxu1 %vm6358_vm1, %v7662_v33 }
 0xc8c   :  { %v2795_v8 = vmul.f32 0.35355338, %v2684_v48 }
 0xc8d   :  { %v5694_v30 = vpop.f32.mrf.mxu0 }
 0xc8e   :  { %v2807_v52 = vsel %vm455_vm3, %v2795_v8, -inf }
 0xc8f   :  { %2808 = vmax.xlane.f32.xlu0 %v2807_v52  ;;  %v2687_v13 = vpop.f32.mrf.mxu0 }
 0xc90   :  { %v2796_v51 = vmul.f32 0.35355338, %v2687_v13 }
 0xc91   :  { %v5695_v11 = vpop.f32.mrf.mxu0 }
 0xc92   :  { %5699 = vmatmul.mubr.msk.bf16.vlgmr.msra.gmra.mxu1 %vm249_vm2, %v2692_v6  ;;  %v2810_v54 = vsel %vm455_vm3, %v2796_v51, -inf }
 0xc93   :  { %2811 = vmax.xlane.f32.xlu0 %v2810_v54  ;;  %v2786_v60 = vpop.f32.mrf.mxu0  ;;  %5710 = vmatprep.mubr.msk.bf16.mxu1 %vm6358_vm1, %v7662_v33 }
 0xc95   :  { %v5706_v5 = vpop.f32.mrf.mxu0 }
 0xc97   :  { %v2789_v29 = vpop.f32.mrf.mxu0 }
 0xc98   :  { %v2800_v5 = vmul.f32 0.35355338, %v2789_v29 }
 0xc99   :  { %v5707_v22 = vpop.f32.mrf.mxu0 }
 0xc9a   :  { %v2822_v62 = vsel %vm455_vm3, %v2800_v5, -inf }
 0xd10   :  { %v2803_v0 = vpop.xlane.xlu0 %2802 }
 0xd11   :  { %v5678_v18 = vpop.f32.mrf.mxu1 }
 0xd12   :  { %v7074_v23 = vadd.f32 %v5678_v18, %v6943_v55  ;;  %v2825_v55 = vsub.f32 %v2793_v38, %v2803_v0 }
 0xd13   :  { %v2550_v50 = vpop.f32.mrf.mxu1 }
 0xd14   :  { %v7079_v37 = vadd.f32 %v2550_v50, %v6947_v20  ;;  %v2806_v28 = vpop.xlane.xlu1 %2805  ;;  %v2833_v42 = vmul.f32 1.442695, %v2825_v55 }
 0xd15   :  { %v5679_v26 = vpop.f32.mrf.mxu1  ;;  %v2826_v27 = vsub.f32 %v2794_v3, %v2806_v28  ;;  %v1994_v3 = vadd.f32 %v6965_v12, %v1394_v63 }
 0xd16   :  { %v7083_v15 = vadd.f32 %v5679_v26, %v6949_v41  ;;  %6089 = vpow2.f32 %v2833_v42 }
 0xd17   :  { %v2553_v58 = vpop.f32.mrf.mxu1  ;;  %v2835_v41 = vmul.f32 1.442695, %v2826_v27 }
 0xd18   :  { %v7085_v25 = vadd.f32 %v2553_v58, %v1990_v1  ;;  %v2809_v16 = vpop.xlane.xlu0 %2808 }
 0xd19   :  { %v2827_v61 = vsub.f32 %v2795_v8, %v2809_v16  ;;  %6091 = vpow2.f32 %v2835_v41 }
 0xd1b   :  { %v2837_v34 = vmul.f32 1.442695, %v2827_v61 }
 0xd1c   :  { %v2812_v45 = vpop.xlane.xlu0 %2811 }
 0xd1d   :  { %v2828_v19 = vsub.f32 %v2796_v51, %v2812_v45  ;;  %6093 = vpow2.f32 %v2837_v34  ;;  %v2799_v51 = vmul.f32 0.35355338, %v2786_v60 }
 0xd1f   :  { %v2839_v30 = vmul.f32 1.442695, %v2828_v19  ;;  %v2819_v22 = vsel %vm455_vm3, %v2799_v51, -inf }
 0xd21   :  { %6095 = vpow2.f32 %v2839_v30 }
 0xd23   :  { %v6090_v50 = vpop.eup %6089 }
 0xd24   :  { %v2849_v60 = vsel %vm455_vm3, %v6090_v50, 0.0 }
 0xd26   :  { %v6092_v40 = vpop.eup %6091 }
 0xd27   :  { %v2852_v1 = vsel %vm455_vm3, %v6092_v40, 0.0 }
 0xd2a   :  { %v6094_v26 = vpop.eup %6093 }
 0xd2b   :  { %v2855_v58 = vsel %vm455_vm3, %v6094_v26, 0.0 }
 0xd2e   :  { %v6096_v29 = vpop.eup %6095 }
 0xd2f   :  { %v2858_v0 = vsel %vm455_vm3, %v6096_v29, 0.0 }
 0xd4a   :  { %v5682_v57 = vpop.f32.mrf.mxu1 }
 0xd4b   :  { %v7088_v20 = vadd.f32 %v5682_v57, %v6957_v43 }
 0xd4c   :  { %v2566_v21 = vpop.f32.mrf.mxu1 }
 0xd4d   :  { %v7093_v48 = vadd.f32 %v2566_v21, %v6961_v14 }
 0xd4e   :  { %v5683_v38 = vpop.f32.mrf.mxu1 }
 0xd4f   :  { %v7097_v8 = vadd.f32 %v5683_v38, %v6963_v47 }
 0xd50   :  { %v2569_v43 = vpop.f32.mrf.mxu1 }
 0xd51   :  { %v7099_v52 = vadd.f32 %v2569_v43, %v1994_v3 }
 0xd52   :  { %v2735_v13 = vpop.f32.mrf.mxu1 }
 0xd53   :  { %v7101_v6 = vmul.f32 0.35355338, %v2735_v13 }
 0xd54   :  { %v5700_v11 = vpop.f32.mrf.mxu1 }
 0xd55   :  { %v2813_v14 = vsel %vm455_vm3, %v7101_v6, -inf }
 0xd56   :  { %2814 = vmax.xlane.f32.xlu1 %v2813_v14  ;;  %v2738_v12 = vpop.f32.mrf.mxu1 }
 0xd57   :  { %v2798_v54 = vmul.f32 0.35355338, %v2738_v12 }
 0xd58   :  { %v5701_v47 = vpop.f32.mrf.mxu1 }
 0xd59   :  { %v2816_v18 = vsel %vm455_vm3, %v2798_v54, -inf }
 0xd5a   :  { %2820 = vmax.xlane.f32.xlu1 %v2819_v22  ;;  %2817 = vmax.xlane.f32.xlu0 %v2816_v18 }
 0xd5e   :  { %2823 = vmax.xlane.f32.xlu0 %v2822_v62  ;;  %2850 = vadd.xlane.f32.xlu1 %v2849_v60 }
 0xd62   :  { %2853 = vadd.xlane.f32.xlu0 %v2852_v1  ;;  %2856 = vadd.xlane.f32.xlu1 %v2855_v58 }
 0xd66   :  { %2859 = vadd.xlane.f32.xlu0 %v2858_v0 }
 0xddf   :  { %v2815_v16 = vpop.xlane.xlu1 %2814 }
 0xde3   :  { %v2821_v55 = vpop.xlane.xlu1 %2820  ;;  %v2818_v28 = vpop.xlane.xlu0 %2817 }
 0xde4   :  { %v2831_v27 = vsub.f32 %v2799_v51, %v2821_v55  ;;  %v2830_v42 = vsub.f32 %v2798_v54, %v2818_v28 }
 0xde6   :  { %v2845_v61 = vmul.f32 1.442695, %v2831_v27  ;;  %v2843_v45 = vmul.f32 1.442695, %v2830_v42 }
 0xde7   :  { %v2851_v57 = vpop.xlane.xlu1 %2850  ;;  %v2824_v7 = vpop.xlane.xlu0 %2823 }
 0xde8   :  { %6097 = vpow2.f32 %v2845_v61  ;;  %v2832_v9 = vsub.f32 %v2800_v5, %v2824_v7 }
 0xde9   :  { %6099 = vrcp.f32 %v2851_v57 }
 0xdea   :  { %v2847_v63 = vmul.f32 1.442695, %v2832_v9  ;;  %6101 = vpow2.f32 %v2843_v45 }
 0xdeb   :  { %v2857_v41 = vpop.xlane.xlu1 %2856  ;;  %v2854_v21 = vpop.xlane.xlu0 %2853 }
 0xdec   :  { %6103 = vpow2.f32 %v2847_v63 }
 0xded   :  { %6105 = vrcp.f32 %v2857_v41 }
 0xdee   :  { %6107 = vrcp.f32 %v2854_v21 }
 0xdef   :  { %v2860_v34 = vpop.xlane.xlu0 %2859 }
 0xdf0   :  { %6109 = vrcp.f32 %v2860_v34 }
 0xdf5   :  { %v6098_v19 = vpop.eup %6097 }
 0xdf6   :  { %v2867_v38 = vsel %vm455_vm3, %v6098_v19, 0.0  ;;  %v6100_v3 = vpop.eup %6099 }
 0xdf7   :  { %2868 = vadd.xlane.f32.xlu1 %v2867_v38  ;;  %v6102_v43 = vpop.eup %6101  ;;  %v2881_v30 = vmul.f32 %v6100_v3, %v6090_v50 }
 0xdf8   :  { %v2864_v18 = vsel %vm455_vm3, %v6102_v43, 0.0 }
 0xdf9   :  { %v6104_v13 = vpop.eup %6103  ;;  %v7115_v14 = vadd.f32 %v2881_v30, %v6981_v24  ;;  %v2829_v24 = vsub.f32 %v7101_v6, %v2815_v16 }
 0xdfa   :  { %v6106_v11 = vpop.eup %6105  ;;  %v2870_v51 = vsel %vm455_vm3, %v6104_v13, 0.0 }
 0xdfb   :  { %v6108_v12 = vpop.eup %6107  ;;  %2871 = vadd.xlane.f32.xlu0 %v2870_v51  ;;  %v2883_v54 = vmul.f32 %v6106_v11, %v6094_v26 }
 0xdfc   :  { %v2882_v47 = vmul.f32 %v6108_v12, %v6092_v40 }
 0xdfd   :  { %v6110_v5 = vpop.eup %6109  ;;  %v7118_v22 = vadd.f32 %v2883_v54, %v6984_v44  ;;  %v2841_v44 = vmul.f32 1.442695, %v2829_v24 }
 0xdfe   :  { %v7122_v62 = vadd.f32 %v2882_v47, %v6988_v35  ;;  %v2884_v50 = vmul.f32 %v6110_v5, %v6096_v29  ;;  %v2897_v1 = vpack.c.bf16 %v2882_v47, %v2881_v30 }
 0xdff   :  { %2865 = vadd.xlane.f32.xlu0 %v2864_v18  ;;  %6111 = vpow2.f32 %v2841_v44 }
 0xe00   :  { %v7125_v60 = vadd.f32 %v2884_v50, %v6991_v10  ;;  %v2898_v16 = vpack.c.bf16 %v2884_v50, %v2883_v54 }
 0xe08   :  { %2901 = vrot.lane.b32.xlu1 %v6451_v39, %s6366_s29 }
 0xe0c   :  { %v6112_v35 = vpop.eup %6111 }
 0xe0d   :  { %v2861_v10 = vsel %vm455_vm3, %v6112_v35, 0.0 }
 0xe15   :  { %2948 = vrot.lane.b32.xlu0 %v6457_v49, %s6366_s29 }
 0xe19   :  { %3183 = vrot.lane.b32.xlu0 %v6449_v36, %s6367_s30 }
 0xe1d   :  { %3234 = vrot.lane.b32.xlu0 %v6455_v46, %s6367_s30 }
 0xe21   :  { %3232 = vrot.lane.b32.xlu0 %v6455_v46, %s6368_s9 }
 0xe25   :  { %3283 = vrot.lane.b32.xlu0 %v6463_v56, %s6368_s9 }
 0xe2c   :  { %2862 = vadd.xlane.f32.xlu1 %v2861_v10 }
 0xe3d   :  { %2995 = vrot.lane.b32.xlu1 %v6465_v59, %s6366_s29 }
 0xe41   :  { %3042 = vrot.lane.b32.xlu1 %v6471_v4, %s6366_s29 }
 0xe45   :  { %3181 = vrot.lane.b32.xlu1 %v6449_v36, %s6368_s9 }
 0xe49   :  { %3285 = vrot.lane.b32.xlu1 %v6463_v56, %s6367_s30 }
 0xe4d   :  { %3336 = vrot.lane.b32.xlu1 %v6469_v2, %s6367_s30 }
 0xe51   :  { %3334 = vrot.lane.b32.xlu1 %v6469_v2, %s6368_s9 }
 0xe80   :  { %v2869_v6 = vpop.xlane.xlu1 %2868 }
 0xe81   :  { %6113 = vrcp.f32 %v2869_v6 }
 0xe84   :  { %v2902_v40 = vpop.permute.xlu1 %2901  ;;  %v2872_v26 = vpop.xlane.xlu0 %2871 }
 0xe85   :  { %6115 = vrcp.f32 %v2872_v26  ;;  %5709 = vmatpush3.bf16.msra.mxu1 %v2902_v40 }
 0xe86   :  { %5720 = vmatprep.subr.bf16.mxu1 %v7662_v33 }
 0xe88   :  { %5711 = vmatmul.mubr.msk.bf16.vlgmr.msra.gmra.mxu1 %vm455_vm3, %v2897_v1  ;;  %v2866_v58 = vpop.xlane.xlu0 %2865 }
 0xe89   :  { %6117 = vrcp.f32 %v2866_v58  ;;  %5722 = vmatprep.mubr.msk.bf16.mxu1 %vm6358_vm1, %v7662_v33 }
 0xe8c   :  { %v2949_v29 = vpop.permute.xlu0 %2948 }
 0xe8d   :  { %5715 = vmatpush3.bf16.msra.mxu0 %v2949_v29 }
 0xe8e   :  { %v6114_v0 = vpop.eup %6113  ;;  %5726 = vmatprep.subr.bf16.mxu0 %v7662_v33 }
 0xe8f   :  { %v2887_v55 = vmul.f32 %v6114_v0, %v6098_v19 }
 0xe90   :  { %5717 = vmatmul.mubr.msk.bf16.vlgmr.msra.gmra.mxu0 %vm455_vm3, %v2898_v16  ;;  %v3184_v21 = vpop.permute.xlu0 %3183 }
 0xe91   :  { %5728 = vmatprep.mubr.msk.bf16.mxu0 %vm6358_vm1, %v7662_v33  ;;  %v7158_v28 = vadd.f32 %v2887_v55, %v7024_v53  ;;  %v3189_v53 = vsel %vm249_vm2, %v3184_v21, 0 }
 0xe92   :  { %v6116_v27 = vpop.eup %6115 }
 0xe93   :  { %v2888_v42 = vmul.f32 %v6116_v27, %v6104_v13 }
 0xe94   :  { %v3235_v38 = vpop.permute.xlu0 %3234 }
 0xe95   :  { %v7161_v61 = vadd.f32 %v2888_v42, %v7027_v31  ;;  %v2900_v34 = vpack.c.bf16 %v2888_v42, %v2887_v55  ;;  %v3240_v13 = vsel %vm249_vm2, %v3235_v38, 0 }
 0xe96   :  { %v6118_v45 = vpop.eup %6117 }
 0xe97   :  { %v2886_v57 = vmul.f32 %v6118_v45, %v6102_v43 }
 0xe98   :  { %v3233_v51 = vpop.permute.xlu0 %3232 }
 0xe99   :  { %v7164_v7 = vadd.f32 %v2886_v57, %v7030_v17 }
 0xeb5   :  { %v2863_v9 = vpop.xlane.xlu1 %2862 }
 0xeb6   :  { %6119 = vrcp.f32 %v2863_v9 }
 0xeb9   :  { %v2996_v63 = vpop.permute.xlu1 %2995 }
 0xeba   :  { %5721 = vmatpush3.bf16.msra.mxu1 %v2996_v63 }
 0xebd   :  { %v3043_v41 = vpop.permute.xlu1 %3042 }
 0xebe   :  { %5727 = vmatpush3.bf16.msra.mxu0 %v3043_v41 }
 0xebf   :  { %5742 = vmatprep.subr.bf16.mxu0 %v7662_v33 }
 0xec1   :  { %5729 = vmatmul.mubr.msk.bf16.vlgmr.msra.gmra.mxu0 %vm455_vm3, %v2900_v34  ;;  %v3182_v31 = vpop.permute.xlu1 %3181 }
 0xec2   :  { %5743 = vmatpush3.bf16.xpose.msra.mxu0 %v3189_v53  ;;  %5744 = vmatprep.mubr.msk.bf16.mxu0 %vm6358_vm1, %v7662_v33 }
 0xec3   :  { %v6120_v17 = vpop.eup %6119  ;;  %5748 = vmatprep.subr.bf16.mxu0 %v7662_v33 }
 0xec4   :  { %v2885_v19 = vmul.f32 %v6120_v17, %v6112_v35 }
 0xec5   :  { %v3286_v30 = vpop.permute.xlu1 %3285 }
 0xec6   :  { %v7173_v3 = vadd.f32 %v2885_v19, %v7039_v32  ;;  %v2899_v43 = vpack.c.bf16 %v2886_v57, %v2885_v19  ;;  %v234_v32 = vld [vmem:[#allocation7 + $0x10] sm:$0xf]  ;;  %v3291_v1 = vsel %vm249_vm2, %v3286_v30, 0 }
 0xec7   :  { %5920 = vmatprep.subr.msk.bf16.mxu1 %vm1256_vm4, %v234_v32  ;;  %v3106_v54 = vsel %vm1256_vm4, %v234_v32, 0 }
 0xec8   :  { %5723 = vmatmul.mubr.msk.bf16.vlgmr.msra.gmra.mxu1 %vm455_vm3, %v2899_v43 }
 0xec9   :  { %5745 = vmatmul.mubr.msk.bf16.vlgmr.msra.gmra.mxu0 %vm249_vm2, %v3182_v31  ;;  %v3337_v11 = vpop.permute.xlu1 %3336  ;;  %5733 = vmatpush3.bf16.msra.mxu1 %v3106_v54 }
 0xeca   :  { %5749 = vmatpush3.bf16.xpose.msra.mxu0 %v3240_v13  ;;  %5750 = vmatprep.mubr.msk.bf16.mxu0 %vm6358_vm1, %v7662_v33  ;;  %v3342_v12 = vsel %vm249_vm2, %v3337_v11, 0 }
 0xecb   :  { %5760 = vmatprep.subr.bf16.mxu0 %v7662_v33  ;;  %5754 = vmatprep.subr.bf16.mxu1 %v7662_v33 }
 0xecd   :  { %v3335_v47 = vpop.permute.xlu1 %3334 }
 0xed1   :  { %5751 = vmatmul.mubr.msk.bf16.vlgmr.msra.gmra.mxu0 %vm249_vm2, %v3233_v51 }
 0xed2   :  { %5761 = vmatpush3.bf16.xpose.msra.mxu0 %v3342_v12  ;;  %5762 = vmatprep.mubr.msk.bf16.mxu0 %vm6358_vm1, %v7662_v33  ;;  %v3284_v12 = vpop.permute.xlu0 %3283 }
 0xed3   :  { %5772 = vmatprep.subr.bf16.mxu0 %v7662_v33 }
 0xed9   :  { %5763 = vmatmul.mubr.msk.bf16.vlgmr.msra.gmra.mxu0 %vm249_vm2, %v3335_v47 }
 0xeda   :  { %5774 = vmatprep.mubr.msk.bf16.mxu0 %vm6358_vm1, %v7662_v33 }
 0xf48   :  { %v2941_v5 = vpop.f32.mrf.mxu1 }
 0xf4a   :  { %v5712_v18 = vpop.f32.mrf.mxu1 }
 0xf4c   :  { %v2944_v50 = vpop.f32.mrf.mxu1 }
 0xf4d   :  { %v3089_v24 = vpack.c.bf16 %v2944_v50, %v2941_v5 }
 0xf4e   :  { %v5713_v44 = vpop.f32.mrf.mxu1 }
 0xf4f   :  { %5734 = vmatprep.mubr.msk.bf16.mxu1 %vm249_vm2, %v3089_v24 }
 0xf50   :  { %v2988_v35 = vpop.f32.mrf.mxu0 }
 0xf52   :  { %v5718_v10 = vpop.f32.mrf.mxu0 }
 0xf54   :  { %v2991_v6 = vpop.f32.mrf.mxu0 }
 0xf55   :  { %v3090_v40 = vpack.c.bf16 %v2991_v6, %v2988_v35 }
 0xf56   :  { %v5719_v26 = vpop.f32.mrf.mxu0 }
 0xf57   :  { %5735 = vmatmul.mubr.msk.bf16.vlgmr.msra.gmra.mxu1 %vm249_vm2, %v3090_v40 }
 0xf58   :  { %5755 = vmatpush3.bf16.xpose.msra.mxu1 %v3291_v1 }
 0xf59   :  { %5766 = vmatprep.subr.bf16.mxu1 %v7662_v33 }
 0xf81   :  { %v3082_v58 = vpop.f32.mrf.mxu0 }
 0xf83   :  { %v5730_v29 = vpop.f32.mrf.mxu0 }
 0xf85   :  { %v3085_v0 = vpop.f32.mrf.mxu0 }
 0xf86   :  { %v3092_v34 = vpack.c.bf16 %v3085_v0, %v3082_v58 }
 0xf87   :  { %v5731_v16 = vpop.f32.mrf.mxu0 }
 0xf88   :  { %v3035_v55 = vpop.f32.mrf.mxu1 }
 0xf89   :  { %v3225_v27 = vpop.f32.mrf.mxu0 }
 0xf8a   :  { %v3385_v42 = vmul.f32 0.35355338, %v3225_v27  ;;  %v5724_v45 = vpop.f32.mrf.mxu1 }
 0xf8b   :  { %v5746_v57 = vpop.f32.mrf.mxu0 }
 0xf8c   :  { %v3038_v9 = vpop.f32.mrf.mxu1  ;;  %v3393_v63 = vsel %vm455_vm3, %v3385_v42, -inf }
 0xf8d   :  { %v3091_v41 = vpack.c.bf16 %v3038_v9, %v3035_v55  ;;  %3394 = vmax.xlane.f32.xlu0 %v3393_v63  ;;  %v3228_v21 = vpop.f32.mrf.mxu0 }
 0xf8e   :  { %v3386_v53 = vmul.f32 0.35355338, %v3228_v21  ;;  %v5725_v31 = vpop.f32.mrf.mxu1 }
 0xf8f   :  { %5738 = vmatprep.mubr.msk.bf16.mxu1 %vm249_vm2, %v3091_v41  ;;  %v5747_v17 = vpop.f32.mrf.mxu0 }
 0xf90   :  { %5739 = vmatmul.mubr.msk.bf16.gmra.mxu1 %vm249_vm2, %v3092_v34  ;;  %v3396_v19 = vsel %vm455_vm3, %v3386_v53, -inf }
 0xf91   :  { %3397 = vmax.xlane.f32.xlu1 %v3396_v19  ;;  %v3276_v38 = vpop.f32.mrf.mxu0  ;;  %5756 = vmatprep.mubr.msk.bf16.mxu1 %vm6358_vm1, %v7662_v33 }
 0xf92   :  { %v3387_v43 = vmul.f32 0.35355338, %v3276_v38 }
 0xf93   :  { %v5752_v30 = vpop.f32.mrf.mxu0 }
 0xf94   :  { %v3399_v13 = vsel %vm455_vm3, %v3387_v43, -inf }
 0xf95   :  { %3400 = vmax.xlane.f32.xlu0 %v3399_v13  ;;  %v3279_v11 = vpop.f32.mrf.mxu0 }
 0xf96   :  { %v3388_v51 = vmul.f32 0.35355338, %v3279_v11 }
 0xf97   :  { %v5753_v32 = vpop.f32.mrf.mxu0 }
 0xf98   :  { %5757 = vmatmul.mubr.msk.bf16.vlgmr.msra.gmra.mxu1 %vm249_vm2, %v3284_v12  ;;  %v3402_v54 = vsel %vm455_vm3, %v3388_v51, -inf }
 0xf99   :  { %3403 = vmax.xlane.f32.xlu0 %v3402_v54  ;;  %v3378_v47 = vpop.f32.mrf.mxu0  ;;  %5768 = vmatprep.mubr.msk.bf16.mxu1 %vm6358_vm1, %v7662_v33 }
 0xf9a   :  { %v3391_v38 = vmul.f32 0.35355338, %v3378_v47 }
 0xf9b   :  { %v5764_v5 = vpop.f32.mrf.mxu0 }
 0xf9c   :  { %v3411_v11 = vsel %vm455_vm3, %v3391_v38, -inf }
 0xf9d   :  { %v3381_v18 = vpop.f32.mrf.mxu0 }
 0xf9e   :  { %v3392_v13 = vmul.f32 0.35355338, %v3381_v18 }
 0xf9f   :  { %v5765_v50 = vpop.f32.mrf.mxu0 }
 0xfa0   :  { %v3414_v32 = vsel %vm455_vm3, %v3392_v13, -inf }
0x1016   :  { %v3395_v58 = vpop.xlane.xlu0 %3394 }
0x1017   :  { %v5736_v24 = vpop.f32.mrf.mxu1  ;;  %v3417_v0 = vsub.f32 %v3385_v42, %v3395_v58 }
0x1018   :  { %v7208_v44 = vadd.f32 %v5736_v24, %v7074_v23 }
0x1019   :  { %v3142_v35 = vpop.f32.mrf.mxu1  ;;  %v3425_v27 = vmul.f32 1.442695, %v3417_v0 }
0x101a   :  { %v7211_v10 = vadd.f32 %v3142_v35, %v7079_v37  ;;  %v3398_v16 = vpop.xlane.xlu1 %3397 }
0x101b   :  { %v5737_v6 = vpop.f32.mrf.mxu1  ;;  %v3418_v55 = vsub.f32 %v3386_v53, %v3398_v16  ;;  %6121 = vpow2.f32 %v3425_v27 }
0x101c   :  { %v7214_v40 = vadd.f32 %v5737_v6, %v7083_v15 }
0x101d   :  { %v3145_v26 = vpop.f32.mrf.mxu1  ;;  %v3427_v9 = vmul.f32 1.442695, %v3418_v55 }
0x101e   :  { %v7217_v1 = vadd.f32 %v3145_v26, %v7085_v25  ;;  %v3401_v29 = vpop.xlane.xlu0 %3400 }
0x101f   :  { %v3419_v23 = vsub.f32 %v3387_v43, %v3401_v29  ;;  %6123 = vpow2.f32 %v3427_v9 }
0x1021   :  { %v3429_v15 = vmul.f32 1.442695, %v3419_v23 }
0x1022   :  { %v3404_v45 = vpop.xlane.xlu0 %3403 }
0x1023   :  { %v3420_v41 = vsub.f32 %v3388_v51, %v3404_v45  ;;  %6125 = vpow2.f32 %v3429_v15 }
0x1025   :  { %v3431_v53 = vmul.f32 1.442695, %v3420_v41 }
0x1027   :  { %6127 = vpow2.f32 %v3431_v53 }
0x1050   :  { %v5740_v57 = vpop.f32.mrf.mxu1 }
0x1051   :  { %v7220_v37 = vadd.f32 %v5740_v57, %v7088_v20 }
0x1052   :  { %v3158_v63 = vpop.f32.mrf.mxu1 }
0x1053   :  { %v7223_v25 = vadd.f32 %v3158_v63, %v7093_v48 }
0x1054   :  { %v5741_v21 = vpop.f32.mrf.mxu1 }
0x1055   :  { %v7226_v42 = vadd.f32 %v5741_v21, %v7097_v8 }
0x1056   :  { %v3161_v34 = vpop.f32.mrf.mxu1 }
0x1057   :  { %v7229_v31 = vadd.f32 %v3161_v34, %v7099_v52  ;;  %v6122_v52 = vpop.eup %6121 }
0x1058   :  { %v3327_v20 = vpop.f32.mrf.mxu1  ;;  %v6124_v12 = vpop.eup %6123  ;;  %v3441_v54 = vsel %vm455_vm3, %v6122_v52, 0.0 }
0x1059   :  { %v7231_v17 = vmul.f32 0.35355338, %v3327_v20  ;;  %v6126_v47 = vpop.eup %6125  ;;  %v3444_v5 = vsel %vm455_vm3, %v6124_v12, 0.0 }
0x105a   :  { %v5758_v19 = vpop.f32.mrf.mxu1  ;;  %v3447_v50 = vsel %vm455_vm3, %v6126_v47, 0.0  ;;  %v6128_v18 = vpop.eup %6127 }
0x105b   :  { %v3405_v48 = vsel %vm455_vm3, %v7231_v17, -inf  ;;  %v3450_v24 = vsel %vm455_vm3, %v6128_v18, 0.0 }
0x105c   :  { %3406 = vmax.xlane.f32.xlu1 %v3405_v48  ;;  %v3330_v43 = vpop.f32.mrf.mxu1 }
0x105d   :  { %v3390_v8 = vmul.f32 0.35355338, %v3330_v43 }
0x105e   :  { %v5759_v30 = vpop.f32.mrf.mxu1 }
0x105f   :  { %v3408_v51 = vsel %vm455_vm3, %v3390_v8, -inf }
0x1060   :  { %3412 = vmax.xlane.f32.xlu1 %v3411_v11  ;;  %3409 = vmax.xlane.f32.xlu0 %v3408_v51 }
0x1064   :  { %3415 = vmax.xlane.f32.xlu0 %v3414_v32  ;;  %3442 = vadd.xlane.f32.xlu1 %v3441_v54 }
0x1068   :  { %3445 = vadd.xlane.f32.xlu0 %v3444_v5  ;;  %3448 = vadd.xlane.f32.xlu1 %v3447_v50 }
0x106c   :  { %3451 = vadd.xlane.f32.xlu0 %v3450_v24 }
0x10e5   :  { %v3407_v35 = vpop.xlane.xlu1 %3406 }
0x10e6   :  { %v3421_v54 = vsub.f32 %v7231_v17, %v3407_v35 }
0x10e9   :  { %v3413_v6 = vpop.xlane.xlu1 %3412  ;;  %v3410_v26 = vpop.xlane.xlu0 %3409 }
0x10ea   :  { %v3423_v58 = vsub.f32 %v3391_v38, %v3413_v6  ;;  %v3422_v29 = vsub.f32 %v3390_v8, %v3410_v26 }
0x10ec   :  { %v3437_v0 = vmul.f32 1.442695, %v3423_v58  ;;  %v3435_v16 = vmul.f32 1.442695, %v3422_v29 }
0x10ed   :  { %v3443_v55 = vpop.xlane.xlu1 %3442  ;;  %v3416_v27 = vpop.xlane.xlu0 %3415 }
0x10ee   :  { %6129 = vpow2.f32 %v3437_v0  ;;  %v3424_v23 = vsub.f32 %v3392_v13, %v3416_v27 }
0x10ef   :  { %6131 = vrcp.f32 %v3443_v55 }
0x10f0   :  { %v3439_v45 = vmul.f32 1.442695, %v3424_v23  ;;  %6133 = vpow2.f32 %v3435_v16 }
0x10f1   :  { %v3449_v57 = vpop.xlane.xlu1 %3448  ;;  %v3446_v9 = vpop.xlane.xlu0 %3445 }
0x10f2   :  { %6135 = vpow2.f32 %v3439_v45 }
0x10f3   :  { %6137 = vrcp.f32 %v3449_v57 }
0x10f4   :  { %6139 = vrcp.f32 %v3446_v9 }
0x10f5   :  { %v3452_v63 = vpop.xlane.xlu0 %3451 }
0x10f6   :  { %6141 = vrcp.f32 %v3452_v63 }
0x10fb   :  { %v6130_v15 = vpop.eup %6129 }
0x10fc   :  { %v3459_v41 = vsel %vm455_vm3, %v6130_v15, 0.0  ;;  %v6132_v21 = vpop.eup %6131 }
0x10fd   :  { %3460 = vadd.xlane.f32.xlu1 %v3459_v41  ;;  %v6134_v34 = vpop.eup %6133  ;;  %v3473_v53 = vmul.f32 %v6132_v21, %v6122_v52 }
0x10fe   :  { %v3456_v52 = vsel %vm455_vm3, %v6134_v34, 0.0 }
0x10ff   :  { %v6136_v20 = vpop.eup %6135  ;;  %v7244_v38 = vadd.f32 %v3473_v53, %v7115_v14 }
0x1100   :  { %v6138_v19 = vpop.eup %6137  ;;  %v3462_v48 = vsel %vm455_vm3, %v6136_v20, 0.0 }
0x1101   :  { %v6140_v43 = vpop.eup %6139  ;;  %v3475_v8 = vmul.f32 %v6138_v19, %v6126_v47  ;;  %3463 = vadd.xlane.f32.xlu0 %v3462_v48 }
0x1102   :  { %v3474_v30 = vmul.f32 %v6140_v43, %v6124_v12 }
0x1103   :  { %v6142_v13 = vpop.eup %6141  ;;  %v7248_v11 = vadd.f32 %v3475_v8, %v7118_v22  ;;  %v3433_v22 = vmul.f32 1.442695, %v3421_v54 }
0x1104   :  { %v7251_v51 = vadd.f32 %v3474_v30, %v7122_v62  ;;  %v3476_v32 = vmul.f32 %v6142_v13, %v6128_v18  ;;  %v3489_v5 = vpack.c.bf16 %v3474_v30, %v3473_v53 }
0x1105   :  { %3457 = vadd.xlane.f32.xlu0 %v3456_v52  ;;  %6143 = vpow2.f32 %v3433_v22 }
0x1106   :  { %v7255_v14 = vadd.f32 %v3476_v32, %v7125_v60  ;;  %v3490_v35 = vpack.c.bf16 %v3476_v32, %v3475_v8 }
0x110e   :  { %3493 = vrot.lane.b32.xlu1 %v6451_v39, %s6368_s9 }
0x1112   :  { %v6144_v62 = vpop.eup %6143 }
0x1113   :  { %v3453_v60 = vsel %vm455_vm3, %v6144_v62, 0.0 }
0x111b   :  { %3540 = vrot.lane.b32.xlu0 %v6457_v49, %s6368_s9 }
0x111f   :  { %3775 = vrot.lane.b32.xlu0 %v6449_v36, %s6369_s12 }
0x1123   :  { %3826 = vrot.lane.b32.xlu0 %v6455_v46, %s6369_s12 }
0x1127   :  { %3824 = vrot.lane.b32.xlu0 %v6455_v46, %s6370_s13 }
0x112b   :  { %3875 = vrot.lane.b32.xlu0 %v6463_v56, %s6370_s13 }
0x1132   :  { %3454 = vadd.xlane.f32.xlu1 %v3453_v60 }
0x1143   :  { %3587 = vrot.lane.b32.xlu1 %v6465_v59, %s6368_s9 }
0x1147   :  { %3634 = vrot.lane.b32.xlu1 %v6471_v4, %s6368_s9 }
0x114b   :  { %3773 = vrot.lane.b32.xlu1 %v6449_v36, %s6370_s13 }
0x114f   :  { %3877 = vrot.lane.b32.xlu1 %v6463_v56, %s6369_s12 }
0x1153   :  { %3928 = vrot.lane.b32.xlu1 %v6469_v2, %s6369_s12 }
0x1157   :  { %3926 = vrot.lane.b32.xlu1 %v6469_v2, %s6370_s13 }
0x1186   :  { %v3461_v17 = vpop.xlane.xlu1 %3460 }
0x1187   :  { %6145 = vrcp.f32 %v3461_v17 }
0x118a   :  { %v3494_v12 = vpop.permute.xlu1 %3493  ;;  %v3464_v47 = vpop.xlane.xlu0 %3463 }
0x118b   :  { %6147 = vrcp.f32 %v3464_v47  ;;  %5767 = vmatpush3.bf16.msra.mxu1 %v3494_v12 }
0x118c   :  { %5778 = vmatprep.subr.bf16.mxu1 %v7662_v33 }
0x118e   :  { %5769 = vmatmul.mubr.msk.bf16.vlgmr.msra.gmra.mxu1 %vm455_vm3, %v3489_v5  ;;  %v3458_v50 = vpop.xlane.xlu0 %3457 }
0x118f   :  { %6149 = vrcp.f32 %v3458_v50  ;;  %5780 = vmatprep.mubr.msk.bf16.mxu1 %vm6358_vm1, %v7662_v33 }
0x1192   :  { %v3541_v18 = vpop.permute.xlu0 %3540 }
0x1193   :  { %5773 = vmatpush3.bf16.msra.mxu0 %v3541_v18 }
0x1194   :  { %v6146_v24 = vpop.eup %6145  ;;  %5784 = vmatprep.subr.bf16.mxu0 %v7662_v33 }
0x1195   :  { %v3479_v6 = vmul.f32 %v6146_v24, %v6130_v15 }
0x1196   :  { %5775 = vmatmul.mubr.msk.bf16.vlgmr.msra.gmra.mxu0 %vm455_vm3, %v3490_v35 }
0x1197   :  { %v7286_v26 = vadd.f32 %v3479_v6, %v7158_v28  ;;  %5786 = vmatprep.mubr.msk.bf16.mxu0 %vm6358_vm1, %v7662_v33  ;;  %v3776_v28 = vpop.permute.xlu0 %3775 }
0x1198   :  { %v6148_v58 = vpop.eup %6147  ;;  %v3781_v63 = vsel %vm249_vm2, %v3776_v28, 0 }
0x1199   :  { %v3480_v29 = vmul.f32 %v6148_v58, %v6136_v20 }
0x119b   :  { %v7291_v0 = vadd.f32 %v3480_v29, %v7161_v61  ;;  %v3492_v9 = vpack.c.bf16 %v3480_v29, %v3479_v6  ;;  %v3827_v41 = vpop.permute.xlu0 %3826 }
0x119c   :  { %v6150_v16 = vpop.eup %6149  ;;  %v3832_v20 = vsel %vm249_vm2, %v3827_v41, 0 }
0x119d   :  { %v3478_v55 = vmul.f32 %v6150_v16, %v6134_v34 }
0x119f   :  { %v7294_v27 = vadd.f32 %v3478_v55, %v7164_v7  ;;  %v3825_v48 = vpop.permute.xlu0 %3824 }
0x11bb   :  { %v3455_v23 = vpop.xlane.xlu1 %3454 }
0x11bc   :  { %6151 = vrcp.f32 %v3455_v23 }
0x11bf   :  { %v3588_v45 = vpop.permute.xlu1 %3587 }
0x11c0   :  { %5779 = vmatpush3.bf16.msra.mxu1 %v3588_v45 }
0x11c3   :  { %v3635_v57 = vpop.permute.xlu1 %3634 }
0x11c4   :  { %5785 = vmatpush3.bf16.msra.mxu0 %v3635_v57 }
0x11c5   :  { %5800 = vmatprep.subr.bf16.mxu0 %v7662_v33 }
0x11c7   :  { %5787 = vmatmul.mubr.msk.bf16.vlgmr.msra.gmra.mxu0 %vm455_vm3, %v3492_v9  ;;  %v3774_v61 = vpop.permute.xlu1 %3773 }
0x11c8   :  { %5801 = vmatpush3.bf16.xpose.msra.mxu0 %v3781_v63  ;;  %5802 = vmatprep.mubr.msk.bf16.mxu0 %vm6358_vm1, %v7662_v33 }
0x11c9   :  { %v6152_v7 = vpop.eup %6151  ;;  %5806 = vmatprep.subr.bf16.mxu0 %v7662_v33 }
0x11ca   :  { %v3477_v15 = vmul.f32 %v6152_v7, %v6144_v62 }
0x11cb   :  { %v3878_v53 = vpop.permute.xlu1 %3877 }
0x11cc   :  { %v7303_v21 = vadd.f32 %v3477_v15, %v7173_v3  ;;  %v3491_v34 = vpack.c.bf16 %v3478_v55, %v3477_v15  ;;  %v235_v3 = vld [vmem:[#allocation7 + $0x14] sm:$0xf]  ;;  %v3883_v5 = vsel %vm249_vm2, %v3878_v53, 0 }
0x11cd   :  { %5921 = vmatprep.subr.msk.bf16.mxu1 %vm1256_vm4, %v235_v3  ;;  %v3698_v8 = vsel %vm1256_vm4, %v235_v3, 0 }
0x11ce   :  { %5781 = vmatmul.mubr.msk.bf16.vlgmr.msra.gmra.mxu1 %vm455_vm3, %v3491_v34 }
0x11cf   :  { %5803 = vmatmul.mubr.msk.bf16.vlgmr.msra.gmra.mxu0 %vm249_vm2, %v3774_v61  ;;  %v3929_v19 = vpop.permute.xlu1 %3928  ;;  %5791 = vmatpush3.bf16.msra.mxu1 %v3698_v8 }
0x11d0   :  { %5807 = vmatpush3.bf16.xpose.msra.mxu0 %v3832_v20  ;;  %5808 = vmatprep.mubr.msk.bf16.mxu0 %vm6358_vm1, %v7662_v33  ;;  %v3934_v43 = vsel %vm249_vm2, %v3929_v19, 0 }
0x11d1   :  { %5818 = vmatprep.subr.bf16.mxu0 %v7662_v33  ;;  %5812 = vmatprep.subr.bf16.mxu1 %v7662_v33 }
0x11d3   :  { %v3927_v30 = vpop.permute.xlu1 %3926 }
0x11d7   :  { %5809 = vmatmul.mubr.msk.bf16.vlgmr.msra.gmra.mxu0 %vm249_vm2, %v3825_v48 }
0x11d8   :  { %5819 = vmatpush3.bf16.xpose.msra.mxu0 %v3934_v43  ;;  %5820 = vmatprep.mubr.msk.bf16.mxu0 %vm6358_vm1, %v7662_v33  ;;  %v3876_v43 = vpop.permute.xlu0 %3875 }
0x11d9   :  { %5830 = vmatprep.subr.bf16.mxu0 %v7662_v33 }
0x11df   :  { %5821 = vmatmul.mubr.msk.bf16.vlgmr.msra.gmra.mxu0 %vm249_vm2, %v3927_v30 }
0x11e0   :  { %5832 = vmatprep.mubr.msk.bf16.mxu0 %vm6358_vm1, %v7662_v33 }
0x124e   :  { %v3533_v13 = vpop.f32.mrf.mxu1 }
0x1250   :  { %v5770_v32 = vpop.f32.mrf.mxu1 }
0x1252   :  { %v3536_v52 = vpop.f32.mrf.mxu1 }
0x1253   :  { %v3681_v54 = vpack.c.bf16 %v3536_v52, %v3533_v13 }
0x1254   :  { %v5771_v22 = vpop.f32.mrf.mxu1 }
0x1255   :  { %5792 = vmatprep.mubr.msk.bf16.mxu1 %vm249_vm2, %v3681_v54 }
0x1256   :  { %v3580_v62 = vpop.f32.mrf.mxu0 }
0x1258   :  { %v5776_v60 = vpop.f32.mrf.mxu0 }
0x125a   :  { %v3583_v17 = vpop.f32.mrf.mxu0 }
0x125b   :  { %v3682_v12 = vpack.c.bf16 %v3583_v17, %v3580_v62 }
0x125c   :  { %v5777_v47 = vpop.f32.mrf.mxu0 }
0x125d   :  { %5793 = vmatmul.mubr.msk.bf16.vlgmr.msra.gmra.mxu1 %vm249_vm2, %v3682_v12 }
0x125e   :  { %5813 = vmatpush3.bf16.xpose.msra.mxu1 %v3883_v5 }
0x125f   :  { %5824 = vmatprep.subr.bf16.mxu1 %v7662_v33 }
0x1287   :  { %v3674_v50 = vpop.f32.mrf.mxu0 }
0x1289   :  { %v5788_v18 = vpop.f32.mrf.mxu0 }
0x128b   :  { %v3677_v24 = vpop.f32.mrf.mxu0 }
0x128c   :  { %v3684_v9 = vpack.c.bf16 %v3677_v24, %v3674_v50 }
0x128d   :  { %v5789_v35 = vpop.f32.mrf.mxu0 }
0x128e   :  { %v3627_v6 = vpop.f32.mrf.mxu1 }
0x128f   :  { %v3817_v58 = vpop.f32.mrf.mxu0 }
0x1290   :  { %v3977_v29 = vmul.f32 0.35355338, %v3817_v58  ;;  %v5782_v16 = vpop.f32.mrf.mxu1 }
0x1291   :  { %v5804_v55 = vpop.f32.mrf.mxu0 }
0x1292   :  { %v3630_v23 = vpop.f32.mrf.mxu1  ;;  %v3985_v45 = vsel %vm455_vm3, %v3977_v29, -inf }
0x1293   :  { %v3683_v57 = vpack.c.bf16 %v3630_v23, %v3627_v6  ;;  %3986 = vmax.xlane.f32.xlu0 %v3985_v45  ;;  %v3820_v28 = vpop.f32.mrf.mxu0 }
0x1294   :  { %v3978_v63 = vmul.f32 0.35355338, %v3820_v28  ;;  %v5783_v61 = vpop.f32.mrf.mxu1 }
0x1295   :  { %5796 = vmatprep.mubr.msk.bf16.mxu1 %vm249_vm2, %v3683_v57  ;;  %v5805_v7 = vpop.f32.mrf.mxu0 }
0x1296   :  { %5797 = vmatmul.mubr.msk.bf16.gmra.mxu1 %vm249_vm2, %v3684_v9  ;;  %v3988_v15 = vsel %vm455_vm3, %v3978_v63, -inf }
0x1297   :  { %3989 = vmax.xlane.f32.xlu1 %v3988_v15  ;;  %v3868_v41 = vpop.f32.mrf.mxu0  ;;  %5814 = vmatprep.mubr.msk.bf16.mxu1 %vm6358_vm1, %v7662_v33 }
0x1298   :  { %v3979_v34 = vmul.f32 0.35355338, %v3868_v41 }
0x1299   :  { %v5810_v53 = vpop.f32.mrf.mxu0 }
0x129a   :  { %v3991_v20 = vsel %vm455_vm3, %v3979_v34, -inf }
0x129b   :  { %3992 = vmax.xlane.f32.xlu0 %v3991_v20  ;;  %v3871_v19 = vpop.f32.mrf.mxu0 }
0x129c   :  { %v3980_v48 = vmul.f32 0.35355338, %v3871_v19 }
0x129d   :  { %v5811_v3 = vpop.f32.mrf.mxu0 }
0x129e   :  { %5815 = vmatmul.mubr.msk.bf16.vlgmr.msra.gmra.mxu1 %vm249_vm2, %v3876_v43  ;;  %v3994_v8 = vsel %vm455_vm3, %v3980_v48, -inf }
0x129f   :  { %3995 = vmax.xlane.f32.xlu0 %v3994_v8  ;;  %v3970_v30 = vpop.f32.mrf.mxu0  ;;  %5826 = vmatprep.mubr.msk.bf16.mxu1 %vm6358_vm1, %v7662_v33 }
0x12a0   :  { %v3983_v41 = vmul.f32 0.35355338, %v3970_v30 }
0x12a1   :  { %v5822_v13 = vpop.f32.mrf.mxu0 }
0x12a2   :  { %v4003_v19 = vsel %vm455_vm3, %v3983_v41, -inf }
0x12a3   :  { %v3973_v32 = vpop.f32.mrf.mxu0 }
0x12a4   :  { %v3984_v20 = vmul.f32 0.35355338, %v3973_v32 }
0x12a5   :  { %v5823_v52 = vpop.f32.mrf.mxu0 }
0x12a6   :  { %v4006_v3 = vsel %vm455_vm3, %v3984_v20, -inf }
0x131c   :  { %v3987_v50 = vpop.xlane.xlu0 %3986 }
0x131d   :  { %v5794_v54 = vpop.f32.mrf.mxu1  ;;  %v4009_v24 = vsub.f32 %v3977_v29, %v3987_v50 }
0x131e   :  { %v7338_v22 = vadd.f32 %v5794_v54, %v7208_v44 }
0x131f   :  { %v3734_v62 = vpop.f32.mrf.mxu1  ;;  %v4017_v58 = vmul.f32 1.442695, %v4009_v24 }
0x1320   :  { %v7341_v60 = vadd.f32 %v3734_v62, %v7211_v10  ;;  %v3990_v35 = vpop.xlane.xlu1 %3989 }
0x1321   :  { %v5795_v17 = vpop.f32.mrf.mxu1  ;;  %v4010_v6 = vsub.f32 %v3978_v63, %v3990_v35  ;;  %6153 = vpow2.f32 %v4017_v58 }
0x1322   :  { %v7344_v12 = vadd.f32 %v5795_v17, %v7214_v40 }
0x1323   :  { %v3737_v47 = vpop.f32.mrf.mxu1  ;;  %v4019_v23 = vmul.f32 1.442695, %v4010_v6 }
0x1324   :  { %v7347_v5 = vadd.f32 %v3737_v47, %v7217_v1  ;;  %v3993_v18 = vpop.xlane.xlu0 %3992 }
0x1325   :  { %v4011_v44 = vsub.f32 %v3979_v34, %v3993_v18  ;;  %6155 = vpow2.f32 %v4019_v23 }
0x1327   :  { %v4021_v40 = vmul.f32 1.442695, %v4011_v44 }
0x1328   :  { %v3996_v16 = vpop.xlane.xlu0 %3995 }
0x1329   :  { %v4012_v57 = vsub.f32 %v3980_v48, %v3996_v16  ;;  %6157 = vpow2.f32 %v4021_v40 }
0x132b   :  { %v4023_v63 = vmul.f32 1.442695, %v4012_v57 }
0x132d   :  { %6159 = vpow2.f32 %v4023_v63 }
0x1356   :  { %v5798_v55 = vpop.f32.mrf.mxu1 }
0x1357   :  { %v7350_v10 = vadd.f32 %v5798_v55, %v7220_v37 }
0x1358   :  { %v3750_v45 = vpop.f32.mrf.mxu1 }
0x1359   :  { %v7353_v1 = vadd.f32 %v3750_v45, %v7223_v25 }
0x135a   :  { %v5799_v28 = vpop.f32.mrf.mxu1 }
0x135b   :  { %v7356_v29 = vadd.f32 %v5799_v28, %v7226_v42 }
0x135c   :  { %v3753_v9 = vpop.f32.mrf.mxu1 }
0x135d   :  { %v7359_v61 = vadd.f32 %v3753_v9, %v7229_v31  ;;  %v6154_v31 = vpop.eup %6153 }
0x135e   :  { %v3919_v37 = vpop.f32.mrf.mxu1  ;;  %v6156_v43 = vpop.eup %6155  ;;  %v4033_v8 = vsel %vm455_vm3, %v6154_v31, 0.0 }
0x135f   :  { %v7361_v7 = vmul.f32 0.35355338, %v3919_v37  ;;  %v6158_v30 = vpop.eup %6157  ;;  %v4036_v13 = vsel %vm455_vm3, %v6156_v43, 0.0 }
0x1360   :  { %v5816_v15 = vpop.f32.mrf.mxu1  ;;  %v4039_v52 = vsel %vm455_vm3, %v6158_v30, 0.0  ;;  %v6160_v32 = vpop.eup %6159 }
0x1361   :  { %v3997_v25 = vsel %vm455_vm3, %v7361_v7, -inf  ;;  %v4042_v54 = vsel %vm455_vm3, %v6160_v32, 0.0 }
0x1362   :  { %3998 = vmax.xlane.f32.xlu1 %v3997_v25  ;;  %v3922_v34 = vpop.f32.mrf.mxu1 }
0x1363   :  { %v3982_v42 = vmul.f32 0.35355338, %v3922_v34 }
0x1364   :  { %v5817_v53 = vpop.f32.mrf.mxu1 }
0x1365   :  { %v4000_v48 = vsel %vm455_vm3, %v3982_v42, -inf }
0x1366   :  { %4004 = vmax.xlane.f32.xlu1 %v4003_v19  ;;  %4001 = vmax.xlane.f32.xlu0 %v4000_v48 }
0x136a   :  { %4007 = vmax.xlane.f32.xlu0 %v4006_v3  ;;  %4034 = vadd.xlane.f32.xlu1 %v4033_v8 }
0x136e   :  { %4037 = vadd.xlane.f32.xlu0 %v4036_v13  ;;  %4040 = vadd.xlane.f32.xlu1 %v4039_v52 }
0x1372   :  { %4043 = vadd.xlane.f32.xlu0 %v4042_v54 }
0x13eb   :  { %v3999_v62 = vpop.xlane.xlu1 %3998 }
0x13ec   :  { %v4013_v8 = vsub.f32 %v7361_v7, %v3999_v62 }
0x13ef   :  { %v4005_v17 = vpop.xlane.xlu1 %4004  ;;  %v4002_v47 = vpop.xlane.xlu0 %4001 }
0x13f0   :  { %v4015_v50 = vsub.f32 %v3983_v41, %v4005_v17  ;;  %v4014_v18 = vsub.f32 %v3982_v42, %v4002_v47 }
0x13f2   :  { %v4029_v24 = vmul.f32 1.442695, %v4015_v50  ;;  %v4027_v35 = vmul.f32 1.442695, %v4014_v18 }
0x13f3   :  { %v4035_v6 = vpop.xlane.xlu1 %4034  ;;  %v4008_v58 = vpop.xlane.xlu0 %4007 }
0x13f4   :  { %6161 = vpow2.f32 %v4029_v24  ;;  %v4016_v44 = vsub.f32 %v3984_v20, %v4008_v58 }
0x13f5   :  { %6163 = vrcp.f32 %v4035_v6 }
0x13f6   :  { %v4031_v16 = vmul.f32 1.442695, %v4016_v44  ;;  %6165 = vpow2.f32 %v4027_v35 }
0x13f7   :  { %v4041_v55 = vpop.xlane.xlu1 %4040  ;;  %v4038_v23 = vpop.xlane.xlu0 %4037 }
0x13f8   :  { %6167 = vpow2.f32 %v4031_v16 }
0x13f9   :  { %6169 = vrcp.f32 %v4041_v55 }
0x13fa   :  { %6171 = vrcp.f32 %v4038_v23 }
0x13fb   :  { %v4044_v45 = vpop.xlane.xlu0 %4043 }
0x13fc   :  { %6173 = vrcp.f32 %v4044_v45 }
0x1401   :  { %v6162_v40 = vpop.eup %6161 }
0x1402   :  { %v4051_v57 = vsel %vm455_vm3, %v6162_v40, 0.0  ;;  %v6164_v28 = vpop.eup %6163 }
0x1403   :  { %4052 = vadd.xlane.f32.xlu1 %v4051_v57  ;;  %v6166_v9 = vpop.eup %6165  ;;  %v4065_v63 = vmul.f32 %v6164_v28, %v6154_v31 }
0x1404   :  { %v4048_v31 = vsel %vm455_vm3, %v6166_v9, 0.0 }
0x1405   :  { %v6168_v37 = vpop.eup %6167  ;;  %v7374_v41 = vadd.f32 %v4065_v63, %v7244_v38 }
0x1406   :  { %v6170_v15 = vpop.eup %6169  ;;  %v4054_v25 = vsel %vm455_vm3, %v6168_v37, 0.0 }
0x1407   :  { %v6172_v34 = vpop.eup %6171  ;;  %v4067_v42 = vmul.f32 %v6170_v15, %v6158_v30  ;;  %4055 = vadd.xlane.f32.xlu0 %v4054_v25 }
0x1408   :  { %v4066_v53 = vmul.f32 %v6172_v34, %v6156_v43 }
0x1409   :  { %v6174_v20 = vpop.eup %6173  ;;  %v7378_v19 = vadd.f32 %v4067_v42, %v7248_v11  ;;  %v4025_v11 = vmul.f32 1.442695, %v4013_v8 }
0x140a   :  { %v7381_v48 = vadd.f32 %v4066_v53, %v7251_v51  ;;  %v4068_v3 = vmul.f32 %v6174_v20, %v6160_v32  ;;  %v4081_v30 = vpack.c.bf16 %v4066_v53, %v4065_v63 }
0x140b   :  { %4049 = vadd.xlane.f32.xlu0 %v4048_v31  ;;  %6175 = vpow2.f32 %v4025_v11 }
0x140c   :  { %v7385_v38 = vadd.f32 %v4068_v3, %v7255_v14 }
0x1414   :  { %4085 = vrot.lane.b32.xlu1 %v6451_v39, %s6370_s13 }
0x1418   :  { %v6176_v51 = vpop.eup %6175 }
0x1419   :  { %v4045_v14 = vsel %vm455_vm3, %v6176_v51, 0.0 }
0x1421   :  { %4132 = vrot.lane.b32.xlu0 %v6457_v49, %s6370_s13 }
0x1425   :  { %4367 = vrot.lane.b32.xlu0 %v6449_v36, %s6352_s11 }
0x1429   :  { %4418 = vrot.lane.b32.xlu0 %v6455_v46, %s6352_s11 }
0x142d   :  { %4416 = vrot.lane.b32.xlu0 %v6455_v46, %s6371_s14 }
0x1431   :  { %4467 = vrot.lane.b32.xlu0 %v6463_v56, %s6371_s14 }
0x1438   :  { %4046 = vadd.xlane.f32.xlu1 %v4045_v14 }
0x1449   :  { %4179 = vrot.lane.b32.xlu1 %v6465_v59, %s6370_s13 }
0x144d   :  { %4226 = vrot.lane.b32.xlu1 %v6471_v4, %s6370_s13 }
0x1451   :  { %4365 = vrot.lane.b32.xlu1 %v6449_v36, %s6371_s14 }
0x1455   :  { %4469 = vrot.lane.b32.xlu1 %v6463_v56, %s6352_s11 }
0x1459   :  { %4520 = vrot.lane.b32.xlu1 %v6469_v2, %s6352_s11 }
0x145d   :  { %4518 = vrot.lane.b32.xlu1 %v6469_v2, %s6371_s14  ;;  %v4082_v2 = vpack.c.bf16 %v4068_v3, %v4067_v42 }
0x148c   :  { %v4053_v46 = vpop.xlane.xlu1 %4052 }
0x148d   :  { %6177 = vrcp.f32 %v4053_v46 }
0x1490   :  { %v4086_v7 = vpop.permute.xlu1 %4085  ;;  %v4056_v43 = vpop.xlane.xlu0 %4055 }
0x1491   :  { %6179 = vrcp.f32 %v4056_v43  ;;  %5825 = vmatpush3.bf16.msra.mxu1 %v4086_v7 }
0x1492   :  { %5836 = vmatprep.subr.bf16.mxu1 %v7662_v33 }
0x1494   :  { %5827 = vmatmul.mubr.msk.bf16.vlgmr.msra.gmra.mxu1 %vm455_vm3, %v4081_v30  ;;  %v4050_v36 = vpop.xlane.xlu0 %4049 }
0x1495   :  { %6181 = vrcp.f32 %v4050_v36  ;;  %5838 = vmatprep.mubr.msk.bf16.mxu1 %vm6358_vm1, %v7662_v33 }
0x1498   :  { %v4133_v56 = vpop.permute.xlu0 %4132 }
0x1499   :  { %5831 = vmatpush3.bf16.msra.mxu0 %v4133_v56 }
0x149a   :  { %v6178_v13 = vpop.eup %6177  ;;  %5842 = vmatprep.subr.bf16.mxu0 %v7662_v33 }
0x149b   :  { %v4071_v52 = vmul.f32 %v6178_v13, %v6162_v40 }
0x149c   :  { %5833 = vmatmul.mubr.msk.bf16.vlgmr.msra.gmra.mxu0 %vm455_vm3, %v4082_v2 }
0x149d   :  { %v7420_v32 = vadd.f32 %v4071_v52, %v7286_v26  ;;  %5844 = vmatprep.mubr.msk.bf16.mxu0 %vm6358_vm1, %v7662_v33  ;;  %v4368_v26 = vpop.permute.xlu0 %4367 }
0x149e   :  { %v6180_v54 = vpop.eup %6179  ;;  %v4373_v44 = vsel %vm249_vm2, %v4368_v26, 0 }
0x149f   :  { %v4072_v62 = vmul.f32 %v6180_v54, %v6168_v37 }
0x14a1   :  { %v7425_v17 = vadd.f32 %v4072_v62, %v7291_v0  ;;  %v4084_v58 = vpack.c.bf16 %v4072_v62, %v4071_v52  ;;  %v4419_v55 = vpop.permute.xlu0 %4418 }
0x14a2   :  { %v6182_v47 = vpop.eup %6181  ;;  %v4424_v57 = vsel %vm249_vm2, %v4419_v55, 0 }
0x14a3   :  { %v4070_v50 = vmul.f32 %v6182_v47, %v6166_v9 }
0x14a5   :  { %v7428_v18 = vadd.f32 %v4070_v50, %v7294_v27  ;;  %v4417_v9 = vpop.permute.xlu0 %4416 }
0x14c1   :  { %v4047_v24 = vpop.xlane.xlu1 %4046 }
0x14c2   :  { %6183 = vrcp.f32 %v4047_v24 }
0x14c5   :  { %v4180_v35 = vpop.permute.xlu1 %4179 }
0x14c6   :  { %5837 = vmatpush3.bf16.msra.mxu1 %v4180_v35 }
0x14c9   :  { %v4227_v6 = vpop.permute.xlu1 %4226 }
0x14ca   :  { %5843 = vmatpush3.bf16.msra.mxu0 %v4227_v6 }
0x14cb   :  { %5858 = vmatprep.subr.bf16.mxu0 %v7662_v33 }
0x14cd   :  { %5845 = vmatmul.mubr.msk.bf16.vlgmr.msra.gmra.mxu0 %vm455_vm3, %v4084_v58  ;;  %v4366_v0 = vpop.permute.xlu1 %4365 }
0x14ce   :  { %5859 = vmatpush3.bf16.xpose.msra.mxu0 %v4373_v44  ;;  %5860 = vmatprep.mubr.msk.bf16.mxu0 %vm6358_vm1, %v7662_v33 }
0x14cf   :  { %v6184_v27 = vpop.eup %6183  ;;  %5864 = vmatprep.subr.bf16.mxu0 %v7662_v33 }
0x14d0   :  { %v4069_v16 = vmul.f32 %v6184_v27, %v6176_v51 }
0x14d1   :  { %v4470_v40 = vpop.permute.xlu1 %4469 }
0x14d2   :  { %v7437_v23 = vadd.f32 %v4069_v16, %v7303_v21  ;;  %v4083_v45 = vpack.c.bf16 %v4070_v50, %v4069_v16  ;;  %v236_v21 = vld [vmem:[#allocation7 + $0x18] sm:$0xf]  ;;  %v4475_v14 = vsel %vm249_vm2, %v4470_v40, 0  ;;  %v4468_v40 = vpop.permute.xlu0 %4467 }
0x14d3   :  { %5922 = vmatprep.subr.msk.bf16.mxu1 %vm1256_vm4, %v236_v21  ;;  %v4290_v37 = vsel %vm1256_vm4, %v236_v21, 0 }
0x14d4   :  { %5839 = vmatmul.mubr.msk.bf16.vlgmr.msra.gmra.mxu1 %vm455_vm3, %v4083_v45 }
0x14d5   :  { %5861 = vmatmul.mubr.msk.bf16.vlgmr.msra.gmra.mxu0 %vm249_vm2, %v4366_v0  ;;  %v4521_v28 = vpop.permute.xlu1 %4520  ;;  %5849 = vmatpush3.bf16.msra.mxu1 %v4290_v37 }
0x14d6   :  { %5865 = vmatpush3.bf16.xpose.msra.mxu0 %v4424_v57  ;;  %5866 = vmatprep.mubr.msk.bf16.mxu0 %vm6358_vm1, %v7662_v33  ;;  %v4526_v63 = vsel %vm249_vm2, %v4521_v28, 0 }
0x14d7   :  { %5876 = vmatprep.subr.bf16.mxu0 %v7662_v33  ;;  %5870 = vmatprep.subr.bf16.mxu1 %v7662_v33 }
0x14d9   :  { %v4519_v15 = vpop.permute.xlu1 %4518 }
0x14dd   :  { %5867 = vmatmul.mubr.msk.bf16.vlgmr.msra.gmra.mxu0 %vm249_vm2, %v4417_v9 }
0x14de   :  { %5877 = vmatpush3.bf16.xpose.msra.mxu0 %v4526_v63  ;;  %5878 = vmatprep.mubr.msk.bf16.mxu0 %vm6358_vm1, %v7662_v33 }
0x14df   :  { %5888 = vmatprep.subr.bf16.mxu0 %v7662_v33 }
0x14e5   :  { %5879 = vmatmul.mubr.msk.bf16.vlgmr.msra.gmra.mxu0 %vm249_vm2, %v4519_v15 }
0x14e6   :  { %5890 = vmatprep.mubr.msk.bf16.mxu0 %vm6358_vm1, %v7662_v33 }
0x1554   :  { %v4125_v25 = vpop.f32.mrf.mxu1 }
0x1556   :  { %v5828_v34 = vpop.f32.mrf.mxu1 }
0x1558   :  { %v4128_v42 = vpop.f32.mrf.mxu1 }
0x1559   :  { %v4273_v53 = vpack.c.bf16 %v4128_v42, %v4125_v25 }
0x155a   :  { %v5829_v20 = vpop.f32.mrf.mxu1 }
0x155b   :  { %5850 = vmatprep.mubr.msk.bf16.mxu1 %vm249_vm2, %v4273_v53 }
0x155c   :  { %v4172_v3 = vpop.f32.mrf.mxu0 }
0x155e   :  { %v5834_v31 = vpop.f32.mrf.mxu0 }
0x1560   :  { %v4175_v8 = vpop.f32.mrf.mxu0 }
0x1561   :  { %v4274_v11 = vpack.c.bf16 %v4175_v8, %v4172_v3 }
0x1562   :  { %v5835_v51 = vpop.f32.mrf.mxu0 }
0x1563   :  { %5851 = vmatmul.mubr.msk.bf16.vlgmr.msra.gmra.mxu1 %vm249_vm2, %v4274_v11 }
0x1564   :  { %5871 = vmatpush3.bf16.xpose.msra.mxu1 %v4475_v14 }
0x1565   :  { %5882 = vmatprep.subr.bf16.mxu1 %v7662_v33 }
0x158d   :  { %v4266_v46 = vpop.f32.mrf.mxu0 }
0x158f   :  { %v5846_v7 = vpop.f32.mrf.mxu0 }
0x1591   :  { %v4269_v43 = vpop.f32.mrf.mxu0 }
0x1592   :  { %v4276_v24 = vpack.c.bf16 %v4269_v43, %v4266_v46 }
0x1593   :  { %v5847_v30 = vpop.f32.mrf.mxu0 }
0x1594   :  { %v4219_v36 = vpop.f32.mrf.mxu1 }
0x1595   :  { %v4409_v56 = vpop.f32.mrf.mxu0 }
0x1596   :  { %v4569_v13 = vmul.f32 0.35355338, %v4409_v56  ;;  %v5840_v2 = vpop.f32.mrf.mxu1 }
0x1597   :  { %v5862_v52 = vpop.f32.mrf.mxu0 }
0x1598   :  { %v4222_v54 = vpop.f32.mrf.mxu1  ;;  %v4577_v62 = vsel %vm455_vm3, %v4569_v13, -inf }
0x1599   :  { %v4275_v47 = vpack.c.bf16 %v4222_v54, %v4219_v36  ;;  %4578 = vmax.xlane.f32.xlu0 %v4577_v62  ;;  %v4412_v50 = vpop.f32.mrf.mxu0 }
0x159a   :  { %v4570_v35 = vmul.f32 0.35355338, %v4412_v50  ;;  %v5841_v6 = vpop.f32.mrf.mxu1 }
0x159b   :  { %5854 = vmatprep.mubr.msk.bf16.mxu1 %vm249_vm2, %v4275_v47  ;;  %v5863_v26 = vpop.f32.mrf.mxu0 }
0x159c   :  { %5855 = vmatmul.mubr.msk.bf16.gmra.mxu1 %vm249_vm2, %v4276_v24  ;;  %v4580_v58 = vsel %vm455_vm3, %v4570_v35, -inf }
0x159d   :  { %4581 = vmax.xlane.f32.xlu1 %v4580_v58  ;;  %v4460_v44 = vpop.f32.mrf.mxu0  ;;  %5872 = vmatprep.mubr.msk.bf16.mxu1 %vm6358_vm1, %v7662_v33 }
0x159e   :  { %v4571_v0 = vmul.f32 0.35355338, %v4460_v44 }
0x159f   :  { %v5868_v27 = vpop.f32.mrf.mxu0 }
0x15a0   :  { %v4583_v16 = vsel %vm455_vm3, %v4571_v0, -inf }
0x15a1   :  { %4584 = vmax.xlane.f32.xlu0 %v4583_v16  ;;  %v4463_v55 = vpop.f32.mrf.mxu0 }
0x15a2   :  { %v4572_v45 = vmul.f32 0.35355338, %v4463_v55 }
0x15a3   :  { %v5869_v57 = vpop.f32.mrf.mxu0 }
0x15a4   :  { %5873 = vmatmul.mubr.msk.bf16.vlgmr.msra.gmra.mxu1 %vm249_vm2, %v4468_v40  ;;  %v4586_v28 = vsel %vm455_vm3, %v4572_v45, -inf }
0x15a5   :  { %4587 = vmax.xlane.f32.xlu0 %v4586_v28  ;;  %v4562_v9 = vpop.f32.mrf.mxu0  ;;  %5884 = vmatprep.mubr.msk.bf16.mxu1 %vm6358_vm1, %v7662_v33 }
0x15a7   :  { %v5880_v63 = vpop.f32.mrf.mxu0 }
0x15a9   :  { %v4565_v21 = vpop.f32.mrf.mxu0 }
0x15aa   :  { %v4576_v58 = vmul.f32 0.35355338, %v4565_v21 }
0x15ab   :  { %v5881_v37 = vpop.f32.mrf.mxu0 }
0x15ac   :  { %v4598_v16 = vsel %vm455_vm3, %v4576_v58, -inf }
0x1622   :  { %v4579_v8 = vpop.xlane.xlu0 %4578 }
0x1623   :  { %v5852_v15 = vpop.f32.mrf.mxu1  ;;  %v4601_v51 = vsub.f32 %v4569_v13, %v4579_v8 }
0x1624   :  { %v7472_v25 = vadd.f32 %v5852_v15, %v7338_v22 }
0x1625   :  { %v4326_v34 = vpop.f32.mrf.mxu1  ;;  %v4609_v7 = vmul.f32 1.442695, %v4601_v51 }
0x1626   :  { %v7475_v42 = vadd.f32 %v4326_v34, %v7341_v60  ;;  %v4582_v14 = vpop.xlane.xlu1 %4581 }
0x1627   :  { %v5853_v53 = vpop.f32.mrf.mxu1  ;;  %v4602_v46 = vsub.f32 %v4570_v35, %v4582_v14  ;;  %6185 = vpow2.f32 %v4609_v7  ;;  %v4575_v35 = vmul.f32 0.35355338, %v4562_v9 }
0x1628   :  { %v7478_v20 = vadd.f32 %v5853_v53, %v7344_v12 }
0x1629   :  { %v4329_v3 = vpop.f32.mrf.mxu1  ;;  %v4611_v36 = vmul.f32 1.442695, %v4602_v46  ;;  %v4595_v44 = vsel %vm455_vm3, %v4575_v35, -inf }
0x162a   :  { %v7481_v31 = vadd.f32 %v4329_v3, %v7347_v5  ;;  %v4585_v11 = vpop.xlane.xlu0 %4584 }
0x162b   :  { %v4603_v22 = vsub.f32 %v4571_v0, %v4585_v11  ;;  %6187 = vpow2.f32 %v4611_v36 }
0x162d   :  { %v4613_v12 = vmul.f32 1.442695, %v4603_v22 }
0x162e   :  { %v4588_v43 = vpop.xlane.xlu0 %4587 }
0x162f   :  { %v4604_v2 = vsub.f32 %v4572_v45, %v4588_v43  ;;  %6189 = vpow2.f32 %v4613_v12 }
0x1631   :  { %v4615_v62 = vmul.f32 1.442695, %v4604_v2 }
0x1633   :  { %6191 = vpow2.f32 %v4615_v62 }
0x165c   :  { %v5856_v30 = vpop.f32.mrf.mxu1 }
0x165d   :  { %v7484_v60 = vadd.f32 %v5856_v30, %v7350_v10 }
0x165e   :  { %v4342_v56 = vpop.f32.mrf.mxu1 }
0x165f   :  { %v7487_v5 = vadd.f32 %v4342_v56, %v7353_v1 }
0x1660   :  { %v5857_v52 = vpop.f32.mrf.mxu1 }
0x1661   :  { %v7490_v13 = vadd.f32 %v5857_v52, %v7356_v29 }
0x1662   :  { %v4345_v54 = vpop.f32.mrf.mxu1 }
0x1663   :  { %v7493_v47 = vadd.f32 %v4345_v54, %v7359_v61  ;;  %v6186_v61 = vpop.eup %6185 }
0x1664   :  { %v4511_v10 = vpop.f32.mrf.mxu1  ;;  %v6188_v27 = vpop.eup %6187  ;;  %v4625_v55 = vsel %vm455_vm3, %v6186_v61, 0.0 }
0x1665   :  { %v7495_v50 = vmul.f32 0.35355338, %v4511_v10  ;;  %v6190_v45 = vpop.eup %6189  ;;  %v4628_v40 = vsel %vm455_vm3, %v6188_v27, 0.0 }
0x1666   :  { %v5874_v24 = vpop.f32.mrf.mxu1  ;;  %v4631_v57 = vsel %vm455_vm3, %v6190_v45, 0.0  ;;  %v6192_v28 = vpop.eup %6191 }
0x1667   :  { %v4589_v1 = vsel %vm455_vm3, %v7495_v50, -inf  ;;  %v4634_v9 = vsel %vm455_vm3, %v6192_v28, 0.0 }
0x1668   :  { %4590 = vmax.xlane.f32.xlu1 %v4589_v1  ;;  %v4514_v6 = vpop.f32.mrf.mxu1 }
0x1669   :  { %v4574_v29 = vmul.f32 0.35355338, %v4514_v6 }
0x166a   :  { %v5875_v26 = vpop.f32.mrf.mxu1 }
0x166b   :  { %v4592_v0 = vsel %vm455_vm3, %v4574_v29, -inf }
0x166c   :  { %4596 = vmax.xlane.f32.xlu1 %v4595_v44  ;;  %4593 = vmax.xlane.f32.xlu0 %v4592_v0 }
0x1670   :  { %4599 = vmax.xlane.f32.xlu0 %v4598_v16  ;;  %4626 = vadd.xlane.f32.xlu1 %v4625_v55 }
0x1674   :  { %4629 = vadd.xlane.f32.xlu0 %v4628_v40  ;;  %4632 = vadd.xlane.f32.xlu1 %v4631_v57 }
0x1678   :  { %4635 = vadd.xlane.f32.xlu0 %v4634_v9 }
0x16f1   :  { %v4591_v63 = vpop.xlane.xlu1 %4590 }
0x16f5   :  { %v4597_v21 = vpop.xlane.xlu1 %4596  ;;  %v4594_v37 = vpop.xlane.xlu0 %4593 }
0x16f6   :  { %v4607_v15 = vsub.f32 %v4575_v35, %v4597_v21  ;;  %v4606_v34 = vsub.f32 %v4574_v29, %v4594_v37 }
0x16f8   :  { %v4621_v53 = vmul.f32 1.442695, %v4607_v15  ;;  %v4619_v3 = vmul.f32 1.442695, %v4606_v34 }
0x16f9   :  { %v4627_v8 = vpop.xlane.xlu1 %4626  ;;  %v4600_v11 = vpop.xlane.xlu0 %4599 }
0x16fa   :  { %6193 = vpow2.f32 %v4621_v53  ;;  %v4608_v51 = vsub.f32 %v4576_v58, %v4600_v11 }
0x16fb   :  { %6195 = vrcp.f32 %v4627_v8 }
0x16fc   :  { %v4623_v14 = vmul.f32 1.442695, %v4608_v51  ;;  %6197 = vpow2.f32 %v4619_v3 }
0x16fd   :  { %v4633_v46 = vpop.xlane.xlu1 %4632  ;;  %v4630_v7 = vpop.xlane.xlu0 %4629 }
0x16fe   :  { %6199 = vpow2.f32 %v4623_v14 }
0x16ff   :  { %6201 = vrcp.f32 %v4633_v46 }
0x1700   :  { %6203 = vrcp.f32 %v4630_v7 }
0x1701   :  { %v4636_v22 = vpop.xlane.xlu0 %4635 }
0x1702   :  { %6205 = vrcp.f32 %v4636_v22 }
0x1707   :  { %v6194_v43 = vpop.eup %6193 }
0x1708   :  { %v4643_v30 = vsel %vm455_vm3, %v6194_v43, 0.0  ;;  %v6196_v36 = vpop.eup %6195 }
0x1709   :  { %4644 = vadd.xlane.f32.xlu1 %v4643_v30  ;;  %v7507_v56 = vpop.eup %6197  ;;  %v4657_v12 = vmul.f32 %v6196_v36, %v6186_v61 }
0x170a   :  { %v4640_v0 = vsel %vm455_vm3, %v7507_v56, 0.0 }
0x170b   :  { %v6200_v2 = vpop.eup %6199  ;;  %v4665_v54 = vadd.f32 %v4657_v12, %v7374_v41 }
0x170c   :  { %v6202_v52 = vpop.eup %6201  ;;  %v4646_v62 = vsel %vm455_vm3, %v6200_v2, 0.0 }
0x170d   :  { %v6204_v10 = vpop.eup %6203  ;;  %v4659_v24 = vmul.f32 %v6202_v52, %v6190_v45  ;;  %4647 = vadd.xlane.f32.xlu0 %v4646_v62  ;;  %v5123_v35 = vmul.f32 0.125, %v4665_v54 }
0x170e   :  { %v4658_v1 = vmul.f32 %v6204_v10, %v6188_v27 }
0x170f   :  { %v6206_v6 = vpop.eup %6205  ;;  %v4667_v29 = vadd.f32 %v4659_v24, %v7378_v19  ;;  %5131 = vst.msk [vmem:[#allocation9] sm:$0xff] %vm455_vm3, %v5123_v35 }
0x1710   :  { %v4666_v26 = vadd.f32 %v4658_v1, %v7381_v48  ;;  %v4673_v58 = vpack.c.bf16 %v4658_v1, %v4657_v12  ;;  %v4660_v44 = vmul.f32 %v6206_v6, %v6192_v28  ;;  %v4605_v48 = vsub.f32 %v7495_v50, %v4591_v63 }
0x1711   :  { %v5125_v41 = vmul.f32 0.125, %v4667_v29  ;;  %4641 = vadd.xlane.f32.xlu0 %v4640_v0 }
0x1712   :  { %v5124_v61 = vmul.f32 0.125, %v4666_v26  ;;  %v4668_v16 = vadd.f32 %v4660_v44, %v7385_v38  ;;  %v4674_v55 = vpack.c.bf16 %v4660_v44, %v4659_v24  ;;  %v4617_v27 = vmul.f32 1.442695, %v4605_v48 }
0x1713   :  { %5133 = vst.msk [vmem:[#allocation9 + $0x10] sm:$0xff] %vm455_vm3, %v5125_v41 }
0x1714   :  { %5132 = vst.msk [vmem:[#allocation9 + $0x8] sm:$0xff] %vm455_vm3, %v5124_v61  ;;  %v5126_v19 = vmul.f32 0.125, %v4668_v16  ;;  %6207 = vpow2.f32 %v4617_v27  ;;  %v5281_v16 = vld [vmem:[%s7652_s4] ss:$0 sm:$0xff]  ;;  %s6372_s4 = smov [#allocation9]  }
0x1715   :  { %s5156_s17 = sshll.u32 %s6372_s4, 4  ;;  %s5157_s17 = int_to_ptr.vmem [resolvable:$true] %s5156_s17 }
0x1716   :  { %5134 = vst.msk [vmem:[#allocation9 + $0x18] sm:$0xff] %vm455_vm3, %v5126_v19  ;;  %s6301_s18 = scalar_lea.vmem %s5157_s17, 1024  ;;  %p6306_p2 = scmp.lt.s32.totalorder %s5157_s17, %s5157_s17 }
0x1717   :  { %p6302_p1 = scmp.ne.s32.totalorder %s5157_s17, %s6301_s18  ;;  %p6307_p3 = scmp.lt.s32.totalorder %s6301_s18, %s6301_s18 }
0x1719   :  { %p6308_p4 = por %p6307_p3, %p6306_p2 }
0x171a   :  { %4677 = vrot.lane.b32.xlu1 %v6451_v39, %s6371_s14 }
0x171b   :  { %p6309_p5 = pnand %p6308_p4, %p6302_p1 }
0x1721   :  { %v6208_v45 = vpop.eup %6207 }
0x1722   :  { %v4637_v38 = vsel %vm455_vm3, %v6208_v45, 0.0 }
0x1727   :  { %4724 = vrot.lane.b32.xlu0 %v6457_v49, %s6371_s14 }
0x173e   :  { %4638 = vadd.xlane.f32.xlu1 %v4637_v38 }
0x174f   :  { %4771 = vrot.lane.b32.xlu1 %v6465_v59, %s6371_s14 }
0x1753   :  { %4818 = vrot.lane.b32.xlu1 %v6471_v4, %s6371_s14 }
0x1792   :  { %v4645_v40 = vpop.xlane.xlu1 %4644 }
0x1793   :  { %6209 = vrcp.f32 %v4645_v40 }
0x1796   :  { %v4678_v39 = vpop.permute.xlu1 %4677  ;;  %v4648_v57 = vpop.xlane.xlu0 %4647 }
0x1797   :  { %6211 = vrcp.f32 %v4648_v57  ;;  %5883 = vmatpush3.bf16.msra.mxu1 %v4678_v39  ;;  %v6233_v39 = vld [vmem:[#allocation2 + $0x10] sm:$0xff] }
0x1798   :  { %5894 = vmatprep.subr.bf16.mxu1 %v7662_v33 }
0x179a   :  { %5885 = vmatmul.mubr.msk.bf16.vlgmr.msra.gmra.mxu1 %vm455_vm3, %v4673_v58  ;;  %v4642_v49 = vpop.xlane.xlu0 %4641 }
0x179b   :  { %6213 = vrcp.f32 %v4642_v49  ;;  %5896 = vmatprep.mubr.msk.bf16.mxu1 %vm6358_vm1, %v7662_v33 }
0x179e   :  { %v4725_v50 = vpop.permute.xlu0 %4724 }
0x179f   :  { %5889 = vmatpush3.bf16.msra.mxu0 %v4725_v50 }
0x17a0   :  { %v6210_v59 = vpop.eup %6209  ;;  %5900 = vmatprep.subr.bf16.mxu0 %v7662_v33 }
0x17a1   :  { %v4663_v4 = vmul.f32 %v6210_v59, %v6194_v43 }
0x17a2   :  { %5891 = vmatmul.mubr.msk.bf16.vlgmr.msra.gmra.mxu0 %vm455_vm3, %v4674_v55 }
0x17a3   :  { %v4671_v28 = vadd.f32 %v4663_v4, %v7420_v32  ;;  %5902 = vmatprep.mubr.msk.bf16.mxu0 %vm6358_vm1, %v7662_v33 }
0x17a4   :  { %v6212_v9 = vpop.eup %6211 }
0x17a5   :  { %v5129_v63 = vmul.f32 0.125, %v4671_v28  ;;  %v4664_v21 = vmul.f32 %v6212_v9, %v6200_v2  ;;  %v6234_v28 = vld [vmem:[#allocation2] sm:$0xff] }
0x17a7   :  { %5137 = vst.msk [vmem:[#allocation9 + $0x30] sm:$0xff] %vm455_vm3, %v5129_v63  ;;  %v4672_v37 = vadd.f32 %v4664_v21, %v7425_v17  ;;  %v4676_v51 = vpack.c.bf16 %v4664_v21, %v4663_v4  ;;  %v6235_v21 = vld [vmem:[#allocation2 + $0x8] sm:$0xff] }
0x17a8   :  { %v6214_v15 = vpop.eup %6213 }
0x17a9   :  { %v5130_v34 = vmul.f32 0.125, %v4672_v37  ;;  %v4662_v53 = vmul.f32 %v6214_v15, %v7507_v56  ;;  %v6236_v37 = vld [vmem:[#allocation2 + $0x18] sm:$0xff] }
0x17ab   :  { %5138 = vst.msk [vmem:[#allocation9 + $0x38] sm:$0xff] %vm455_vm3, %v5130_v34  ;;  %v4670_v3 = vadd.f32 %v4662_v53, %v7428_v18  ;;  %v237_v18 = vld [vmem:[#allocation7 + $0x1c] sm:$0xf] }
0x17ac   :  { %v4882_v43 = vsel %vm1256_vm4, %v237_v18, 0 }
0x17ad   :  { %v5128_v8 = vmul.f32 0.125, %v4670_v3 }
0x17af   :  { %5136 = vst.msk [vmem:[#allocation9 + $0x28] sm:$0xff] %vm455_vm3, %v5128_v8 }
0x17c7   :  { %v4639_v32 = vpop.xlane.xlu1 %4638 }
0x17c8   :  { %6215 = vrcp.f32 %v4639_v32 }
0x17cb   :  { %v4772_v33 = vpop.permute.xlu1 %4771 }
0x17cc   :  { %5895 = vmatpush3.bf16.msra.mxu1 %v4772_v33 }
0x17cd   :  { %5923 = vmatprep.subr.msk.bf16.mxu1 %vm1256_vm4, %v237_v18 }
0x17cf   :  { %v4819_v11 = vpop.permute.xlu1 %4818 }
0x17d0   :  { %5901 = vmatpush3.bf16.msra.mxu0 %v4819_v11 }
0x17d3   :  { %5903 = vmatmul.mubr.msk.bf16.vlgmr.msra.gmra.mxu0 %vm455_vm3, %v4676_v51 }
0x17d5   :  { %v6216_v17 = vpop.eup %6215 }
0x17d6   :  { %v4661_v14 = vmul.f32 %v6216_v17, %v6208_v45 }
0x17d8   :  { %v4669_v46 = vadd.f32 %v4661_v14, %v7437_v23  ;;  %v4675_v7 = vpack.c.bf16 %v4662_v53, %v4661_v14 }
0x17da   :  { %v5127_v22 = vmul.f32 0.125, %v4669_v46  ;;  %5897 = vmatmul.mubr.msk.bf16.vlgmr.msra.gmra.mxu1 %vm455_vm3, %v4675_v7  ;;  %v6237_v7 = vld [vmem:[#allocation2 + $0x20] sm:$0xff] }
0x17db   :  { %5907 = vmatpush3.bf16.msra.mxu1 %v4882_v43 }
0x17dc   :  { %5135 = vst.msk [vmem:[#allocation9 + $0x20] sm:$0xff] %vm455_vm3, %v5127_v22 }
0x185a   :  { %v4717_v30 = vpop.f32.mrf.mxu1 }
0x185c   :  { %v5886_v36 = vpop.f32.mrf.mxu1 }
0x185e   :  { %v4720_v56 = vpop.f32.mrf.mxu1 }
0x185f   :  { %v4865_v12 = vpack.c.bf16 %v4720_v56, %v4717_v30  ;;  %v6238_v30 = vld [vmem:[#allocation2 + $0x30] sm:$0xff] }
0x1860   :  { %v5887_v2 = vpop.f32.mrf.mxu1 }
0x1861   :  { %5908 = vmatprep.mubr.msk.bf16.mxu1 %vm249_vm2, %v4865_v12  ;;  %v6240_v2 = vld [vmem:[#allocation2 + $0x38] sm:$0xff] }
0x1862   :  { %v4764_v23 = vpop.f32.mrf.mxu0 }
0x1864   :  { %v5892_v52 = vpop.f32.mrf.mxu0 }
0x1866   :  { %v4767_v54 = vpop.f32.mrf.mxu0 }
0x1867   :  { %v4866_v62 = vpack.c.bf16 %v4767_v54, %v4764_v23 }
0x1868   :  { %v5893_v10 = vpop.f32.mrf.mxu0 }
0x1869   :  { %5909 = vmatmul.mubr.msk.bf16.vlgmr.msra.gmra.mxu1 %vm249_vm2, %v4866_v62 }
0x1893   :  { %v4858_v24 = vpop.f32.mrf.mxu0 }
0x1895   :  { %v5904_v35 = vpop.f32.mrf.mxu0 }
0x1897   :  { %v4861_v1 = vpop.f32.mrf.mxu0 }
0x1898   :  { %v4868_v0 = vpack.c.bf16 %v4861_v1, %v4858_v24 }
0x1899   :  { %v5905_v6 = vpop.f32.mrf.mxu0 }
0x189a   :  { %v4811_v29 = vpop.f32.mrf.mxu1 }
0x189c   :  { %v5898_v26 = vpop.f32.mrf.mxu1 }
0x189e   :  { %v4814_v58 = vpop.f32.mrf.mxu1 }
0x189f   :  { %v4867_v44 = vpack.c.bf16 %v4814_v58, %v4811_v29 }
0x18a0   :  { %v5899_v41 = vpop.f32.mrf.mxu1 }
0x18a1   :  { %5912 = vmatprep.mubr.msk.bf16.mxu1 %vm249_vm2, %v4867_v44 }
0x18a2   :  { %5913 = vmatmul.mubr.msk.bf16.gmra.mxu1 %vm249_vm2, %v4868_v0 }
0x1929   :  { %v5910_v61 = vpop.f32.mrf.mxu1 }
0x192a   :  { %v4951_v55 = vadd.f32 %v5910_v61, %v7472_v25 }
0x192b   :  { %v4918_v19 = vpop.f32.mrf.mxu1 }
0x192c   :  { %v4966_v48 = vadd.f32 %v5281_v16, %v4951_v55  ;;  %v4949_v27 = vadd.f32 %v4918_v19, %v7475_v42 }
0x192d   :  { %v5911_v45 = vpop.f32.mrf.mxu1 }
0x192e   :  { %v4964_v38 = vadd.f32 %v5281_v16, %v4949_v27  ;;  %v4952_v40 = vadd.f32 %v5911_v45, %v7478_v20  ;;  %v4974_v57 = vadd.f32 %v6233_v39, %v4966_v48 }
0x192f   :  { %v4921_v49 = vpop.f32.mrf.mxu1 }
0x1930   :  { %v4967_v50 = vadd.f32 %v5281_v16, %v4952_v40  ;;  %v4950_v59 = vadd.f32 %v4921_v49, %v7481_v31  ;;  %v4986_v4 = vsel %vm144_vm0, %v4974_v57, 0.0  ;;  %v4972_v9 = vadd.f32 %v6234_v28, %v4964_v38 }
0x1931   :  { %4987 = vadd.xlane.f32.xlu0 %v4986_v4 }
0x1932   :  { %v4965_v25 = vadd.f32 %v5281_v16, %v4950_v59  ;;  %v4980_v63 = vsel %vm144_vm0, %v4972_v9, 0.0  ;;  %v4975_v15 = vadd.f32 %v6236_v37, %v4967_v50 }
0x1934   :  { %v4973_v42 = vadd.f32 %v6235_v21, %v4965_v25  ;;  %v4989_v34 = vsel %vm144_vm0, %v4975_v15, 0.0 }
0x1935   :  { %4981 = vadd.xlane.f32.xlu0 %v4980_v63 }
0x1936   :  { %v4983_v20 = vsel %vm144_vm0, %v4973_v42, 0.0 }
0x1937   :  { %4984 = vadd.xlane.f32.xlu1 %v4983_v20 }
0x1939   :  { %4990 = vadd.xlane.f32.xlu0 %v4989_v34 }
0x1962   :  { %v5914_v31 = vpop.f32.mrf.mxu1 }
0x1963   :  { %v4955_v53 = vadd.f32 %v5914_v31, %v7484_v60  ;;  %v6239_v60 = vld [vmem:[#allocation2 + $0x28] sm:$0xff] }
0x1964   :  { %v4934_v3 = vpop.f32.mrf.mxu1 }
0x1965   :  { %v4953_v8 = vadd.f32 %v4934_v3, %v7487_v5  ;;  %v4970_v33 = vadd.f32 %v5281_v16, %v4955_v53 }
0x1966   :  { %v5915_v32 = vpop.f32.mrf.mxu1 }
0x1967   :  { %v4968_v11 = vadd.f32 %v5281_v16, %v4953_v8  ;;  %v4956_v51 = vadd.f32 %v5915_v32, %v7490_v13  ;;  %v4978_v36 = vadd.f32 %v6238_v30, %v4970_v33 }
0x1968   :  { %v4937_v17 = vpop.f32.mrf.mxu1 }
0x1969   :  { %v4971_v14 = vadd.f32 %v5281_v16, %v4956_v51  ;;  %v4954_v46 = vadd.f32 %v4937_v17, %v7493_v47  ;;  %v4976_v22 = vadd.f32 %v6237_v7, %v4968_v11  ;;  %v4998_v5 = vsel %vm144_vm0, %v4978_v36, 0.0 }
0x196b   :  { %v4969_v18 = vadd.f32 %v5281_v16, %v4954_v46  ;;  %v4992_v43 = vsel %vm144_vm0, %v4976_v22, 0.0  ;;  %v4979_v13 = vadd.f32 %v6240_v2, %v4971_v14 }
0x196c   :  { %4993 = vadd.xlane.f32.xlu1 %v4992_v43 }
0x196d   :  { %v4977_v56 = vadd.f32 %v6239_v60, %v4969_v18  ;;  %v5001_v47 = vsel %vm144_vm0, %v4979_v13, 0.0 }
0x196f   :  { %v4995_v12 = vsel %vm144_vm0, %v4977_v56, 0.0 }
0x1970   :  { %4999 = vadd.xlane.f32.xlu1 %v4998_v5  ;;  %4996 = vadd.xlane.f32.xlu0 %v4995_v12 }
0x1974   :  { %5002 = vadd.xlane.f32.xlu0 %v5001_v47 }
0x19ba   :  { %v4988_v23 = vpop.xlane.xlu0 %4987 }
0x19bb   :  { %v5007_v52 = vmul.f32 0.015625, %v4988_v23 }
0x19bd   :  { %v7574_v24 = vsub.f32 %v4974_v57, %v5007_v52 }
0x19be   :  { %v4982_v54 = vpop.xlane.xlu0 %4981 }
0x19bf   :  { %v5005_v62 = vmul.f32 0.015625, %v4982_v54  ;;  %v5023_v61 = vmul.f32 %v7574_v24, %v7574_v24 }
0x19c0   :  { %v4985_v10 = vpop.xlane.xlu1 %4984 }
0x19c1   :  { %v7576_v35 = vsub.f32 %v4972_v9, %v5005_v62  ;;  %v5006_v1 = vmul.f32 0.015625, %v4985_v10  ;;  %v5035_v19 = vsel %vm144_vm0, %v5023_v61, 0.0 }
0x19c2   :  { %v4991_v6 = vpop.xlane.xlu0 %4990 }
0x19c3   :  { %v7578_v29 = vsub.f32 %v4973_v42, %v5006_v1  ;;  %v5008_v26 = vmul.f32 0.015625, %v4991_v6  ;;  %v5021_v58 = vmul.f32 %v7576_v35, %v7576_v35 }
0x19c5   :  { %v7582_v44 = vsub.f32 %v4975_v15, %v5008_v26  ;;  %v5029_v0 = vsel %vm144_vm0, %v5021_v58, 0.0  ;;  %v5022_v41 = vmul.f32 %v7578_v29, %v7578_v29 }
0x19c6   :  { %5030 = vadd.xlane.f32.xlu1 %v5029_v0 }
0x19c7   :  { %v5032_v16 = vsel %vm144_vm0, %v5022_v41, 0.0  ;;  %v5024_v55 = vmul.f32 %v7582_v44, %v7582_v44 }
0x19c8   :  { %5033 = vadd.xlane.f32.xlu0 %v5032_v16 }
0x19c9   :  { %v5038_v48 = vsel %vm144_vm0, %v5024_v55, 0.0 }
0x19ca   :  { %5036 = vadd.xlane.f32.xlu1 %v5035_v19 }
0x19cc   :  { %5039 = vadd.xlane.f32.xlu0 %v5038_v48 }
0x19f5   :  { %v4994_v27 = vpop.xlane.xlu1 %4993 }
0x19f6   :  { %v5009_v45 = vmul.f32 0.015625, %v4994_v27 }
0x19f8   :  { %v7594_v38 = vsub.f32 %v4976_v22, %v5009_v45 }
0x19f9   :  { %v5000_v40 = vpop.xlane.xlu1 %4999  ;;  %v4997_v39 = vpop.xlane.xlu0 %4996 }
0x19fa   :  { %v5011_v57 = vmul.f32 0.015625, %v5000_v40  ;;  %v5010_v49 = vmul.f32 0.015625, %v4997_v39  ;;  %v5025_v50 = vmul.f32 %v7594_v38, %v7594_v38 }
0x19fc   :  { %v7598_v59 = vsub.f32 %v4978_v36, %v5011_v57  ;;  %v7600_v4 = vsub.f32 %v4977_v56, %v5010_v49  ;;  %v5041_v28 = vsel %vm144_vm0, %v5025_v50, 0.0 }
0x19fd   :  { %5042 = vadd.xlane.f32.xlu1 %v5041_v28  ;;  %v5003_v9 = vpop.xlane.xlu0 %5002 }
0x19fe   :  { %v5012_v25 = vmul.f32 0.015625, %v5003_v9  ;;  %v5027_v63 = vmul.f32 %v7598_v59, %v7598_v59  ;;  %v5026_v21 = vmul.f32 %v7600_v4, %v7600_v4 }
0x1a00   :  { %v7607_v42 = vsub.f32 %v4979_v13, %v5012_v25  ;;  %v5047_v37 = vsel %vm144_vm0, %v5027_v63, 0.0  ;;  %v5044_v15 = vsel %vm144_vm0, %v5026_v21, 0.0 }
0x1a01   :  { %5048 = vadd.xlane.f32.xlu1 %v5047_v37  ;;  %5045 = vadd.xlane.f32.xlu0 %v5044_v15 }
0x1a02   :  { %v5028_v20 = vmul.f32 %v7607_v42, %v7607_v42 }
0x1a04   :  { %v5050_v34 = vsel %vm144_vm0, %v5028_v20, 0.0 }
0x1a05   :  { %5051 = vadd.xlane.f32.xlu0 %v5050_v34 }
0x1a06   :  { %6312 = shalt.err (!%p6309_p5)
}
0x1a07   :  { %5162 = dma.vmem_to_hbm [thread:$0]  %s5157_s17, 1024, %s7656_s8, [#allocation10], %s6351_s10, %s6351_s10, %s6352_s11  }
0x1a08   :  { %v5282_v18 = vld [vmem:[%s7653_s5] ss:$0 sm:$0xff]  ;;  %s6373_s5 = smov [#allocation8]  }
0x1a09   :  { %v5283_v36 = vld [vmem:[%s7654_s6] ss:$0 sm:$0xff]  ;;  %s5144_s6 = sshll.u32 %s6373_s5, 4  ;;  %s5145_s6 = int_to_ptr.vmem [resolvable:$true] %s5144_s6 }
0x1a0a   :  { %s6321_s0 = scalar_lea.vmem %s5145_s6, 1024  ;;  %p6326_p7 = scmp.lt.s32.totalorder %s5145_s6, %s5145_s6 }
0x1a0b   :  { %p6322_p6 = scmp.ne.s32.totalorder %s5145_s6, %s6321_s0  ;;  %p6327_p8 = scmp.lt.s32.totalorder %s6321_s0, %s6321_s0 }
0x1a0d   :  { %p6328_p9 = por %p6327_p8, %p6326_p7 }
0x1a0f   :  { %p6329_p10 = pnand %p6328_p9, %p6322_p6 }
0x1a4f   :  { %v5031_v31 = vpop.xlane.xlu1 %5030 }
0x1a50   :  { %v5053_v53 = vmul.f32 0.015625, %v5031_v31 }
0x1a51   :  { %v5034_v3 = vpop.xlane.xlu0 %5033 }
0x1a52   :  { %v5061_v8 = vadd.f32 1e-05, %v5053_v53  ;;  %v5054_v32 = vmul.f32 0.015625, %v5034_v3 }
0x1a53   :  { %v5037_v33 = vpop.xlane.xlu1 %5036 }
0x1a54   :  { %6217 = vrsqrt.f32 %v5061_v8  ;;  %v5062_v11 = vadd.f32 1e-05, %v5054_v32  ;;  %v5055_v51 = vmul.f32 0.015625, %v5037_v33 }
0x1a55   :  { %v5040_v17 = vpop.xlane.xlu0 %5039 }
0x1a56   :  { %6219 = vrsqrt.f32 %v5062_v11  ;;  %v5063_v14 = vadd.f32 1e-05, %v5055_v51  ;;  %v5056_v46 = vmul.f32 0.015625, %v5040_v17 }
0x1a58   :  { %6221 = vrsqrt.f32 %v5063_v14  ;;  %v5064_v7 = vadd.f32 1e-05, %v5056_v46 }
0x1a5a   :  { %6223 = vrsqrt.f32 %v5064_v7 }
0x1a61   :  { %v6218_v22 = vpop.eup %6217 }
0x1a62   :  { %v5077_v43 = vmul.f32 %v6218_v22, %v7576_v35 }
0x1a63   :  { %v6220_v30 = vpop.eup %6219 }
0x1a64   :  { %v5092_v60 = vmul.f32 %v5282_v18, %v5077_v43  ;;  %v5078_v56 = vmul.f32 %v6220_v30, %v7578_v29 }
0x1a65   :  { %v6222_v5 = vpop.eup %6221 }
0x1a66   :  { %v5107_v12 = vadd.f32 %v5283_v36, %v5092_v60  ;;  %v5093_v2 = vmul.f32 %v5282_v18, %v5078_v56  ;;  %v5079_v13 = vmul.f32 %v6222_v5, %v7574_v24 }
0x1a67   :  { %v6224_v47 = vpop.eup %6223 }
0x1a68   :  { %5115 = vst.msk [vmem:[#allocation8] sm:$0xff] %vm144_vm0, %v5107_v12  ;;  %v5108_v23 = vadd.f32 %v5283_v36, %v5093_v2  ;;  %v5094_v52 = vmul.f32 %v5282_v18, %v5079_v13  ;;  %v5080_v54 = vmul.f32 %v6224_v47, %v7582_v44 }
0x1a6a   :  { %5116 = vst.msk [vmem:[#allocation8 + $0x8] sm:$0xff] %vm144_vm0, %v5108_v23  ;;  %v5109_v62 = vadd.f32 %v5283_v36, %v5094_v52  ;;  %v5095_v10 = vmul.f32 %v5282_v18, %v5080_v54 }
0x1a6c   :  { %5117 = vst.msk [vmem:[#allocation8 + $0x10] sm:$0xff] %vm144_vm0, %v5109_v62  ;;  %v5110_v35 = vadd.f32 %v5283_v36, %v5095_v10 }
0x1a6e   :  { %5118 = vst.msk [vmem:[#allocation8 + $0x18] sm:$0xff] %vm144_vm0, %v5110_v35 }
0x1a86   :  { %v5043_v1 = vpop.xlane.xlu1 %5042 }
0x1a87   :  { %v5057_v6 = vmul.f32 0.015625, %v5043_v1 }
0x1a89   :  { %v5065_v29 = vadd.f32 1e-05, %v5057_v6 }
0x1a8a   :  { %v5049_v24 = vpop.xlane.xlu1 %5048  ;;  %v5046_v26 = vpop.xlane.xlu0 %5045 }
0x1a8b   :  { %6225 = vrsqrt.f32 %v5065_v29  ;;  %v5059_v58 = vmul.f32 0.015625, %v5049_v24  ;;  %v5058_v0 = vmul.f32 0.015625, %v5046_v26 }
0x1a8d   :  { %v5067_v41 = vadd.f32 1e-05, %v5059_v58  ;;  %v5066_v61 = vadd.f32 1e-05, %v5058_v0 }
0x1a8e   :  { %v5052_v44 = vpop.xlane.xlu0 %5051 }
0x1a8f   :  { %6227 = vrsqrt.f32 %v5067_v41  ;;  %v5060_v16 = vmul.f32 0.015625, %v5052_v44 }
0x1a90   :  { %6229 = vrsqrt.f32 %v5066_v61 }
0x1a91   :  { %v5068_v55 = vadd.f32 1e-05, %v5060_v16 }
0x1a93   :  { %6231 = vrsqrt.f32 %v5068_v55 }
0x1a98   :  { %v6226_v19 = vpop.eup %6225 }
0x1a99   :  { %v5081_v48 = vmul.f32 %v6226_v19, %v7594_v38 }
0x1a9b   :  { %v5096_v27 = vmul.f32 %v5282_v18, %v5081_v48 }
0x1a9c   :  { %v6228_v45 = vpop.eup %6227 }
0x1a9d   :  { %v6230_v40 = vpop.eup %6229  ;;  %v5111_v39 = vadd.f32 %v5283_v36, %v5096_v27  ;;  %v5083_v57 = vmul.f32 %v6228_v45, %v7598_v59 }
0x1a9e   :  { %v5082_v49 = vmul.f32 %v6230_v40, %v7600_v4 }
0x1a9f   :  { %5119 = vst.msk [vmem:[#allocation8 + $0x20] sm:$0xff] %vm144_vm0, %v5111_v39  ;;  %v5098_v50 = vmul.f32 %v5282_v18, %v5083_v57 }
0x1aa0   :  { %v6232_v28 = vpop.eup %6231  ;;  %v5097_v9 = vmul.f32 %v5282_v18, %v5082_v49 }
0x1aa1   :  { %v5113_v25 = vadd.f32 %v5283_v36, %v5098_v50  ;;  %v5084_v63 = vmul.f32 %v6232_v28, %v7607_v42 }
0x1aa2   :  { %v5112_v21 = vadd.f32 %v5283_v36, %v5097_v9 }
0x1aa3   :  { %5121 = vst.msk [vmem:[#allocation8 + $0x30] sm:$0xff] %vm144_vm0, %v5113_v25  ;;  %v5099_v38 = vmul.f32 %v5282_v18, %v5084_v63 }
0x1aa4   :  { %5120 = vst.msk [vmem:[#allocation8 + $0x28] sm:$0xff] %vm144_vm0, %v5112_v21 }
0x1aa5   :  { %v5114_v37 = vadd.f32 %v5283_v36, %v5099_v38 }
0x1aa7   :  { %5122 = vst.msk [vmem:[#allocation8 + $0x38] sm:$0xff] %vm144_vm0, %v5114_v37 }
0x1aa8   :  { %6332 = shalt.err (!%p6329_p10)
}
0x1aa9   :  { %5150 = dma.vmem_to_hbm [thread:$0]  %s5145_s6, 1024, %s7655_s7, [#allocation4], %s6351_s10, %s6351_s10, %s6352_s11  }
0x1aaa   :  { %6345 = dma.done.wait [#allocation4], 1024  }
0x1aab   :  { %6346 = vsyncadd [#allocation4], 4294966272 }
0x1aac   :  { %6347 = dma.done.wait [#allocation10], 1024  }
0x1aad   :  { %6348 = vsyncadd [#allocation10], 4294966272 }
0x1aae   :  { %5169 = vsyncpa [#allocation3], 1 }
0x1aaf   :  { %5170 = vsyncpa [#allocation6], 1 }
0x1ab0   :  { %5171 = vsyncpa [#allocation4], 1 }
0x1ab1   :  { %5172 = vsyncpa [#allocation10], 1 }

</bundles_post_ra>
